<compile_context>
chip_gen: v6e
topology: v6e:2x2x1
jax: 0.10.0
libtpu: 0.0.40
codegen_flags: <defaults>
</compile_context>

<pallas_src>
import jax
import jax.numpy as jnp
from jax import lax
from jax.experimental import pallas as pl
from jax.experimental.pallas import tpu as pltpu

IMG = 28 * 28          # 784 logical pixel features
IMG_PAD = 896          # 7 * 128, lane-aligned feature width
HID = 512
K_PAD = 128            # codebook rows padded to one full vreg lane width
IND_LANES = 128        # lane-dense int32 index output width


def _round_up(a, m):
    return (a + m - 1) // m * m


def vqvae_kernel(x_ref, w1_ref, b1_ref, w2_ref, b2_ref, cb_ref, cbsq_ref,
                 w3_ref, b3_ref, w4_ref, b4_ref,
                 xhat_ref, zcat_ref, ind_ref):
    # ---- Encoder: Linear(784,512) + ReLU + Linear(512,D) ----
    x = x_ref[...]                                                    # (TB, 896) bf16
    h = jnp.maximum(
        jnp.dot(x, w1_ref[...], preferred_element_type=jnp.float32) + b1_ref[...],
        0.0)                                                          # (TB, 512) f32
    z_e = jnp.dot(h, w2_ref[...], preferred_element_type=jnp.float32) + b2_ref[...]

    # ---- Vector quantization: argmin_k ||z_e - codebook_k||_2 ----
    cb = cb_ref[...]                                                  # (128, D) f32, fake rows = 0
    kp = cb.shape[0]
    ze_sq = jnp.sum(z_e * z_e, axis=1, keepdims=True)                 # (TB, 1)
    # cross term on the MXU, contraction on D (no explicit transpose)
    cross = lax.dot_general(z_e, cb, (((1,), (1,)), ((), ())),
                            preferred_element_type=jnp.float32)       # (TB, 128)
    # cbsq already carries +1e30 on padded codebook rows so they never win the argmin
    d2 = ze_sq + cbsq_ref[...] - 2.0 * cross                          # squared cdist (padded)
    # argmin with first-index tie-break (matches torch.argmin semantics)
    min_d = jnp.min(d2, axis=1, keepdims=True)
    col_ids = lax.broadcasted_iota(jnp.int32, d2.shape, 1)            # (TB, 128)
    inds = jnp.min(jnp.where(d2 <= min_d, col_ids, kp), axis=1, keepdims=True)
    ind_ref[...] = jnp.broadcast_to(inds, ind_ref.shape)              # lane-dense int32 store
    # gather codebook rows as a one-hot matmul (TPU-friendly gather)
    one_hot = (col_ids == inds).astype(jnp.float32)                   # (TB, 128)
    z_q = jnp.dot(one_hot, cb, preferred_element_type=jnp.float32)    # (TB, D)

    # one 2*D (=128)-lane unmasked store instead of two 64-lane masked stores
    zcat_ref[...] = jnp.concatenate([z_e, z_q], axis=1)

    # ---- Decoder: Linear(D,512) + ReLU + Linear(512,784) + Sigmoid ----
    h2 = jnp.maximum(
        jnp.dot(z_q, w3_ref[...], preferred_element_type=jnp.float32) + b3_ref[...],
        0.0)
    logits = jnp.dot(h2.astype(jnp.bfloat16), w4_ref[...],
                     preferred_element_type=jnp.float32) + b4_ref[...]
    xhat_ref[...] = jax.nn.sigmoid(logits)                            # (TB, 896)


def make_params(key, K=16, D=64):
    """Deterministic synthetic init mirroring PyTorch defaults (uniform +-1/sqrt(fan_in),
    codebook uniform +-1/K). Stored at native (unpadded) shapes."""
    ks = jax.random.split(key, 10)

    def lin(kw, kb, fan_in, fan_out):
        bound = 1.0 / float(fan_in) ** 0.5
        w = jax.random.uniform(kw, (fan_in, fan_out), jnp.float32, -bound, bound)
        b = jax.random.uniform(kb, (1, fan_out), jnp.float32, -bound, bound)
        return w, b

    w1, b1 = lin(ks[0], ks[1], IMG, HID)     # encoder fc1
    w2, b2 = lin(ks[2], ks[3], HID, D)       # encoder fc2
    cb = jax.random.uniform(ks[4], (K, D), jnp.float32, -1.0 / K, 1.0 / K)
    w3, b3 = lin(ks[5], ks[6], D, HID)       # decoder fc1
    w4, b4 = lin(ks[7], ks[8], HID, IMG)     # decoder fc2
    return (w1, b1, w2, b2, cb, w3, b3, w4, b4)


def _prepare_padded_params(params, K, D):
    """Pad to lane-aligned shapes and cast the two large matmul weights to bf16."""
    w1, b1, w2, b2, cb, w3, b3, w4, b4 = params
    assert K <= K_PAD
    w1p = jnp.zeros((IMG_PAD, HID), jnp.float32).at[:IMG, :].set(w1).astype(jnp.bfloat16)
    w4p = jnp.zeros((HID, IMG_PAD), jnp.float32).at[:, :IMG].set(w4).astype(jnp.bfloat16)
    b4p = jnp.zeros((1, IMG_PAD), jnp.float32).at[:, :IMG].set(b4)
    cbp = jnp.zeros((K_PAD, D), jnp.float32).at[:K, :].set(cb)
    penalty = jnp.where(jnp.arange(K_PAD) < K, 0.0, 1e30).astype(jnp.float32)
    cb_sqp = (jnp.sum(cbp * cbp, axis=1) + penalty)[None, :]          # (1, 128)
    return (w1p, b1, w2, b2, cbp, cb_sqp, w3, b3, w4p, b4p)


def vqvae_forward(x_nchw, params, *, block_b=256):
    B = x_nchw.shape[0]
    K, D = params[4].shape
    padded_params = _prepare_padded_params(params, K, D)

    # Batch padded to a multiple of 16 (bf16 sublane packing); tile TB rows per grid step.
    B_pad = _round_up(B, 16)
    TB = min(block_b, B_pad)
    grid = (pl.cdiv(B_pad, TB),)

    x_flat = x_nchw.reshape(B, IMG).astype(jnp.float32)
    x_pad = jnp.zeros((B_pad, IMG_PAD), jnp.float32).at[:B, :IMG].set(x_flat)
    x_pad = x_pad.astype(jnp.bfloat16)

    inputs = (x_pad,) + padded_params

    in_specs = [pl.BlockSpec((TB, IMG_PAD), lambda i: (i, 0))]        # x: tiled over batch
    in_specs += [pl.BlockSpec(p.shape, lambda i: (0, 0))              # params: resident in VMEM
                 for p in padded_params]

    out_shapes = (
        jax.ShapeDtypeStruct((B_pad, IMG_PAD), jnp.float32),          # x_hat (padded, flat)
        jax.ShapeDtypeStruct((B_pad, 2 * D), jnp.float32),            # [z_e | z_q]
        jax.ShapeDtypeStruct((B_pad, IND_LANES), jnp.int32),          # encoding_inds (broadcast)
    )
    out_specs = (
        pl.BlockSpec((TB, IMG_PAD), lambda i: (i, 0)),
        pl.BlockSpec((TB, 2 * D), lambda i: (i, 0)),
        pl.BlockSpec((TB, IND_LANES), lambda i: (i, 0)),
    )

    xhat_p, zcat, ind_p = pl.pallas_call(
        vqvae_kernel,
        grid=grid,
        in_specs=in_specs,
        out_specs=out_specs,
        out_shape=out_shapes,
        compiler_params=pltpu.CompilerParams(
            dimension_semantics=("parallel",),
            vmem_limit_bytes=32 * 1024 * 1024),
    )(*inputs)

    x_hat = xhat_p[:B, :IMG].reshape(B, 1, 28, 28)
    z_e = zcat[:B, :D]
    z_q = zcat[:B, D:2 * D]
    inds = ind_p[:B, 0]
    return x_hat, z_e, z_q, inds


if __name__ == "__main__":
    key = jax.random.PRNGKey(0)
    k_param, k_x = jax.random.split(key)

    K, D = 16, 64
    B = 8
    params = make_params(k_param, K=K, D=D)
    x = jax.random.uniform(k_x, (B, 1, 28, 28), jnp.float32)   # image-like input in [0, 1)

    x_hat, z_e, z_q, inds = vqvae_forward(x, params)
    jax.block_until_ready((x_hat, z_e, z_q, inds))

    # shape / range checks (match the PyTorch module's output contract)
    assert x_hat.shape == (B, 1, 28, 28)
    assert z_e.shape == (B, D)
    assert z_q.shape == (B, D)
    assert inds.shape == (B,)
    assert inds.dtype == jnp.int32
    assert bool(jnp.all((x_hat >= 0.0) & (x_hat <= 1.0)))
    assert bool(jnp.all((inds >= 0) & (inds < K)))

    # light numerical checks against a pure-JAX reference with matching precision
    w1, b1, w2, b2, cb, w3, b3, w4, b4 = params
    xf = x.reshape(B, IMG)
    h_ref = jnp.maximum(
        jnp.dot(xf.astype(jnp.bfloat16), w1.astype(jnp.bfloat16),
                preferred_element_type=jnp.float32) + b1, 0.0)
    z_e_ref = jnp.dot(h_ref, w2, preferred_element_type=jnp.float32) + b2
    assert bool(jnp.allclose(z_e, z_e_ref, atol=5e-3, rtol=5e-3))
    # quantized vectors must be actual codebook rows selected by the returned indices
    assert bool(jnp.allclose(z_q, cb[inds], atol=1e-5))

    print("KERNEL_OK")
</pallas_src>

<mosaic_0001>
module attributes {stable_mosaic.version = 11 : i64} {
  func.func @vqvae_kernel(%arg0: i32, %arg1: memref<16x896xbf16, #tpu.memory_space<vmem>>, %arg2: memref<896x512xbf16, #tpu.memory_space<vmem>>, %arg3: memref<1x512xf32, #tpu.memory_space<vmem>>, %arg4: memref<512x64xf32, #tpu.memory_space<vmem>>, %arg5: memref<1x64xf32, #tpu.memory_space<vmem>>, %arg6: memref<128x64xf32, #tpu.memory_space<vmem>>, %arg7: memref<1x128xf32, #tpu.memory_space<vmem>>, %arg8: memref<64x512xf32, #tpu.memory_space<vmem>>, %arg9: memref<1x512xf32, #tpu.memory_space<vmem>>, %arg10: memref<512x896xbf16, #tpu.memory_space<vmem>>, %arg11: memref<1x896xf32, #tpu.memory_space<vmem>>, %arg12: memref<16x896xf32, #tpu.memory_space<vmem>>, %arg13: memref<16x128xf32, #tpu.memory_space<vmem>>, %arg14: memref<16x128xi32, #tpu.memory_space<vmem>>) attributes {dimension_semantics = [#tpu.dimension_semantics<parallel>], iteration_bounds = array<i64: 1>, scalar_prefetch = 0 : i64, scratch_operands = 0 : i64, tpu.core_type = #tpu.core_type<tc>, window_params = [{transform_indices = @transform_0, window_bounds = array<i64: 16, 896>}, {pipeline_mode = #tpu.pipeline_mode<synchronous>, transform_indices = @transform_1, window_bounds = array<i64: 896, 512>}, {pipeline_mode = #tpu.pipeline_mode<synchronous>, transform_indices = @transform_2, window_bounds = array<i64: 1, 512>}, {pipeline_mode = #tpu.pipeline_mode<synchronous>, transform_indices = @transform_3, window_bounds = array<i64: 512, 64>}, {pipeline_mode = #tpu.pipeline_mode<synchronous>, transform_indices = @transform_4, window_bounds = array<i64: 1, 64>}, {pipeline_mode = #tpu.pipeline_mode<synchronous>, transform_indices = @transform_5, window_bounds = array<i64: 128, 64>}, {pipeline_mode = #tpu.pipeline_mode<synchronous>, transform_indices = @transform_6, window_bounds = array<i64: 1, 128>}, {pipeline_mode = #tpu.pipeline_mode<synchronous>, transform_indices = @transform_7, window_bounds = array<i64: 64, 512>}, {pipeline_mode = #tpu.pipeline_mode<synchronous>, transform_indices = @transform_8, window_bounds = array<i64: 1, 512>}, {pipeline_mode = #tpu.pipeline_mode<synchronous>, transform_indices = @transform_9, window_bounds = array<i64: 512, 896>}, {pipeline_mode = #tpu.pipeline_mode<synchronous>, transform_indices = @transform_10, window_bounds = array<i64: 1, 896>}, {transform_indices = @transform_11, window_bounds = array<i64: 16, 896>}, {transform_indices = @transform_12, window_bounds = array<i64: 16, 128>}, {transform_indices = @transform_13, window_bounds = array<i64: 16, 128>}]} {
    %c0 = arith.constant 0 : index
    %c0_0 = arith.constant 0 : index
    %0 = vector.load %arg1[%c0, %c0_0] : memref<16x896xbf16, #tpu.memory_space<vmem>>, vector<16x896xbf16>
    %c0_1 = arith.constant 0 : index
    %c0_2 = arith.constant 0 : index
    %1 = vector.load %arg2[%c0_1, %c0_2] : memref<896x512xbf16, #tpu.memory_space<vmem>>, vector<896x512xbf16>
    %cst = arith.constant dense<0.000000e+00> : vector<16x512xf32>
    %2 = tpu.matmul %0, %1, %cst {dimension_numbers = #tpu.dot_dimension_numbers<[1], [0], [0], [1], [0, 0, 1, 1], [], []>} : vector<16x896xbf16>, vector<896x512xbf16>, vector<16x512xf32> -> vector<16x512xf32>
    %c0_3 = arith.constant 0 : index
    %c0_4 = arith.constant 0 : index
    %3 = vector.load %arg3[%c0_3, %c0_4] : memref<1x512xf32, #tpu.memory_space<vmem>>, vector<1x512xf32>
    %4 = vector.broadcast %3 : vector<1x512xf32> to vector<16x512xf32>
    %5 = arith.addf %2, %4 : vector<16x512xf32>
    %cst_5 = arith.constant 0.000000e+00 : f32
    %6 = vector.broadcast %cst_5 : f32 to vector<16x512xf32>
    %7 = arith.maximumf %5, %6 : vector<16x512xf32>
    %c0_6 = arith.constant 0 : index
    %c0_7 = arith.constant 0 : index
    %8 = vector.load %arg4[%c0_6, %c0_7] : memref<512x64xf32, #tpu.memory_space<vmem>>, vector<512x64xf32>
    %cst_8 = arith.constant dense<0.000000e+00> : vector<16x64xf32>
    %9 = tpu.matmul %7, %8, %cst_8 {dimension_numbers = #tpu.dot_dimension_numbers<[1], [0], [0], [1], [0, 0, 1, 1], [], []>} : vector<16x512xf32>, vector<512x64xf32>, vector<16x64xf32> -> vector<16x64xf32>
    %c0_9 = arith.constant 0 : index
    %c0_10 = arith.constant 0 : index
    %10 = vector.load %arg5[%c0_9, %c0_10] : memref<1x64xf32, #tpu.memory_space<vmem>>, vector<1x64xf32>
    %11 = vector.broadcast %10 : vector<1x64xf32> to vector<16x64xf32>
    %12 = arith.addf %9, %11 : vector<16x64xf32>
    %c0_11 = arith.constant 0 : index
    %c0_12 = arith.constant 0 : index
    %13 = vector.load %arg6[%c0_11, %c0_12] : memref<128x64xf32, #tpu.memory_space<vmem>>, vector<128x64xf32>
    %14 = arith.mulf %12, %12 : vector<16x64xf32>
    %cst_13 = arith.constant dense<0.000000e+00> : vector<16xf32>
    %15 = vector.multi_reduction <add>, %14, %cst_13 [1] : vector<16x64xf32> to vector<16xf32>
    %16 = vector.shape_cast %15 : vector<16xf32> to vector<16x1xf32>
    %cst_14 = arith.constant dense<0.000000e+00> : vector<16x128xf32>
    %17 = tpu.matmul %12, %13, %cst_14 {dimension_numbers = #tpu.dot_dimension_numbers<[1], [1], [0], [0], [0, 0, 1, 0], [], []>} : vector<16x64xf32>, vector<128x64xf32>, vector<16x128xf32> -> vector<16x128xf32>
    %c0_15 = arith.constant 0 : index
    %c0_16 = arith.constant 0 : index
    %18 = vector.load %arg7[%c0_15, %c0_16] : memref<1x128xf32, #tpu.memory_space<vmem>>, vector<1x128xf32>
    %19 = vector.broadcast %16 : vector<16x1xf32> to vector<16x128xf32>
    %20 = vector.broadcast %18 : vector<1x128xf32> to vector<16x128xf32>
    %21 = arith.addf %19, %20 : vector<16x128xf32>
    %cst_17 = arith.constant 2.000000e+00 : f32
    %22 = vector.broadcast %cst_17 : f32 to vector<16x128xf32>
    %23 = arith.mulf %22, %17 : vector<16x128xf32>
    %24 = arith.subf %21, %23 : vector<16x128xf32>
    %cst_18 = arith.constant dense<0x7F800000> : vector<16xf32>
    %25 = vector.multi_reduction <minimumf>, %24, %cst_18 [1] : vector<16x128xf32> to vector<16xf32>
    %26 = vector.shape_cast %25 : vector<16xf32> to vector<16x1xf32>
    %27 = tpu.iota {dimensions = array<i32: 1>} : vector<16x128xi32>
    %28 = vector.broadcast %26 : vector<16x1xf32> to vector<16x128xf32>
    %29 = arith.cmpf ole, %24, %28 : vector<16x128xf32>
    %c128_i32 = arith.constant 128 : i32
    %30 = vector.broadcast %c128_i32 : i32 to vector<16x128xi32>
    %31 = arith.select %29, %27, %30 : vector<16x128xi1>, vector<16x128xi32>
    %cst_19 = arith.constant dense<2147483647> : vector<16xi32>
    %32 = vector.multi_reduction <minsi>, %31, %cst_19 [1] : vector<16x128xi32> to vector<16xi32>
    %33 = vector.shape_cast %32 : vector<16xi32> to vector<16x1xi32>
    %34 = vector.shape_cast %33 : vector<16x1xi32> to vector<16x1xi32>
    %35 = vector.broadcast %34 : vector<16x1xi32> to vector<16x128xi32>
    %c0_20 = arith.constant 0 : index
    %c0_21 = arith.constant 0 : index
    %36 = vector.load %arg14[%c0_20, %c0_21] : memref<16x128xi32, #tpu.memory_space<vmem>>, vector<16x128xi32>
    tpu.vector_store %arg14[%c0_20, %c0_21], %35 {strides = array<i32>} : memref<16x128xi32, #tpu.memory_space<vmem>>, vector<16x128xi32>,
    %37 = vector.broadcast %33 : vector<16x1xi32> to vector<16x128xi32>
    %38 = arith.cmpi eq, %27, %37 : vector<16x128xi32>
    %39 = arith.extui %38 : vector<16x128xi1> to vector<16x128xi32>
    %40 = arith.sitofp %39 : vector<16x128xi32> to vector<16x128xf32>
    %cst_22 = arith.constant dense<0.000000e+00> : vector<16x64xf32>
    %41 = tpu.matmul %40, %13, %cst_22 {dimension_numbers = #tpu.dot_dimension_numbers<[1], [0], [0], [1], [0, 0, 1, 1], [], []>} : vector<16x128xf32>, vector<128x64xf32>, vector<16x64xf32> -> vector<16x64xf32>
    %42 = tpu.concatenate %12, %41 in 1 : vector<16x64xf32>, vector<16x64xf32> -> vector<16x128xf32>
    %c0_23 = arith.constant 0 : index
    %c0_24 = arith.constant 0 : index
    %43 = vector.load %arg13[%c0_23, %c0_24] : memref<16x128xf32, #tpu.memory_space<vmem>>, vector<16x128xf32>
    tpu.vector_store %arg13[%c0_23, %c0_24], %42 {strides = array<i32>} : memref<16x128xf32, #tpu.memory_space<vmem>>, vector<16x128xf32>,
    %c0_25 = arith.constant 0 : index
    %c0_26 = arith.constant 0 : index
    %44 = vector.load %arg8[%c0_25, %c0_26] : memref<64x512xf32, #tpu.memory_space<vmem>>, vector<64x512xf32>
    %cst_27 = arith.constant dense<0.000000e+00> : vector<16x512xf32>
    %45 = tpu.matmul %41, %44, %cst_27 {dimension_numbers = #tpu.dot_dimension_numbers<[1], [0], [0], [1], [0, 0, 1, 1], [], []>} : vector<16x64xf32>, vector<64x512xf32>, vector<16x512xf32> -> vector<16x512xf32>
    %c0_28 = arith.constant 0 : index
    %c0_29 = arith.constant 0 : index
    %46 = vector.load %arg9[%c0_28, %c0_29] : memref<1x512xf32, #tpu.memory_space<vmem>>, vector<1x512xf32>
    %47 = vector.broadcast %46 : vector<1x512xf32> to vector<16x512xf32>
    %48 = arith.addf %45, %47 : vector<16x512xf32>
    %cst_30 = arith.constant 0.000000e+00 : f32
    %49 = vector.broadcast %cst_30 : f32 to vector<16x512xf32>
    %50 = arith.maximumf %48, %49 : vector<16x512xf32>
    %51 = arith.truncf %50 : vector<16x512xf32> to vector<16x512xbf16>
    %c0_31 = arith.constant 0 : index
    %c0_32 = arith.constant 0 : index
    %52 = vector.load %arg10[%c0_31, %c0_32] : memref<512x896xbf16, #tpu.memory_space<vmem>>, vector<512x896xbf16>
    %cst_33 = arith.constant dense<0.000000e+00> : vector<16x896xf32>
    %53 = tpu.matmul %51, %52, %cst_33 {dimension_numbers = #tpu.dot_dimension_numbers<[1], [0], [0], [1], [0, 0, 1, 1], [], []>} : vector<16x512xbf16>, vector<512x896xbf16>, vector<16x896xf32> -> vector<16x896xf32>
    %c0_34 = arith.constant 0 : index
    %c0_35 = arith.constant 0 : index
    %54 = vector.load %arg11[%c0_34, %c0_35] : memref<1x896xf32, #tpu.memory_space<vmem>>, vector<1x896xf32>
    %55 = vector.broadcast %54 : vector<1x896xf32> to vector<16x896xf32>
    %56 = arith.addf %53, %55 : vector<16x896xf32>
    %57 = arith.negf %56 : vector<16x896xf32>
    %58 = math.exp %57 : vector<16x896xf32>
    %cst_36 = arith.constant 1.000000e+00 : f32
    %59 = vector.broadcast %cst_36 : f32 to vector<16x896xf32>
    %60 = arith.addf %59, %58 : vector<16x896xf32>
    %61 = arith.divf %59, %60 : vector<16x896xf32>
    %c0_37 = arith.constant 0 : index
    %c0_38 = arith.constant 0 : index
    %62 = vector.load %arg12[%c0_37, %c0_38] : memref<16x896xf32, #tpu.memory_space<vmem>>, vector<16x896xf32>
    tpu.vector_store %arg12[%c0_37, %c0_38], %61 {strides = array<i32>} : memref<16x896xf32, #tpu.memory_space<vmem>>, vector<16x896xf32>,
    return
  }
  func.func @transform_0(%arg0: i32) -> (i32, i32) {
    %c0_i32 = arith.constant 0 : i32
    %c0_i32_0 = arith.constant 0 : i32
    return %arg0, %c0_i32 : i32, i32
  }
  func.func @transform_1(%arg0: i32) -> (i32, i32) {
    %c0_i32 = arith.constant 0 : i32
    %c0_i32_0 = arith.constant 0 : i32
    %c0_i32_1 = arith.constant 0 : i32
    return %c0_i32, %c0_i32_0 : i32, i32
  }
  func.func @transform_2(%arg0: i32) -> (i32, i32) {
    %c0_i32 = arith.constant 0 : i32
    %c0_i32_0 = arith.constant 0 : i32
    %c0_i32_1 = arith.constant 0 : i32
    return %c0_i32, %c0_i32_0 : i32, i32
  }
  func.func @transform_3(%arg0: i32) -> (i32, i32) {
    %c0_i32 = arith.constant 0 : i32
    %c0_i32_0 = arith.constant 0 : i32
    %c0_i32_1 = arith.constant 0 : i32
    return %c0_i32, %c0_i32_0 : i32, i32
  }
  func.func @transform_4(%arg0: i32) -> (i32, i32) {
    %c0_i32 = arith.constant 0 : i32
    %c0_i32_0 = arith.constant 0 : i32
    %c0_i32_1 = arith.constant 0 : i32
    return %c0_i32, %c0_i32_0 : i32, i32
  }
  func.func @transform_5(%arg0: i32) -> (i32, i32) {
    %c0_i32 = arith.constant 0 : i32
    %c0_i32_0 = arith.constant 0 : i32
    %c0_i32_1 = arith.constant 0 : i32
    return %c0_i32, %c0_i32_0 : i32, i32
  }
  func.func @transform_6(%arg0: i32) -> (i32, i32) {
    %c0_i32 = arith.constant 0 : i32
    %c0_i32_0 = arith.constant 0 : i32
    %c0_i32_1 = arith.constant 0 : i32
    return %c0_i32, %c0_i32_0 : i32, i32
  }
  func.func @transform_7(%arg0: i32) -> (i32, i32) {
    %c0_i32 = arith.constant 0 : i32
    %c0_i32_0 = arith.constant 0 : i32
    %c0_i32_1 = arith.constant 0 : i32
    return %c0_i32, %c0_i32_0 : i32, i32
  }
  func.func @transform_8(%arg0: i32) -> (i32, i32) {
    %c0_i32 = arith.constant 0 : i32
    %c0_i32_0 = arith.constant 0 : i32
    %c0_i32_1 = arith.constant 0 : i32
    return %c0_i32, %c0_i32_0 : i32, i32
  }
  func.func @transform_9(%arg0: i32) -> (i32, i32) {
    %c0_i32 = arith.constant 0 : i32
    %c0_i32_0 = arith.constant 0 : i32
    %c0_i32_1 = arith.constant 0 : i32
    return %c0_i32, %c0_i32_0 : i32, i32
  }
  func.func @transform_10(%arg0: i32) -> (i32, i32) {
    %c0_i32 = arith.constant 0 : i32
    %c0_i32_0 = arith.constant 0 : i32
    %c0_i32_1 = arith.constant 0 : i32
    return %c0_i32, %c0_i32_0 : i32, i32
  }
  func.func @transform_11(%arg0: i32) -> (i32, i32) {
    %c0_i32 = arith.constant 0 : i32
    %c0_i32_0 = arith.constant 0 : i32
    return %arg0, %c0_i32 : i32, i32
  }
  func.func @transform_12(%arg0: i32) -> (i32, i32) {
    %c0_i32 = arith.constant 0 : i32
    %c0_i32_0 = arith.constant 0 : i32
    return %arg0, %c0_i32 : i32, i32
  }
  func.func @transform_13(%arg0: i32) -> (i32, i32) {
    %c0_i32 = arith.constant 0 : i32
    %c0_i32_0 = arith.constant 0 : i32
    return %arg0, %c0_i32 : i32, i32
  }
}

</mosaic_0001>

<bundles_post_ra>
// kernel: tpu_custom_call.1
= control target key start
LH: loop header
LB: loop body
LE: loop exit
PB: predicated region body
PF: predicated region fallthrough
CT: control target
= control target key end

     0   :  { %19 = vsyncpa [#allocation3], 0  ;;  %s6718_s0 = inlined_call_operand.vmem [shape: bf16[16,896], index: 0, kind: input, shape index: {}]   ;;  %s6719_s1 = inlined_call_operand.hbm [shape: bf16[896,512], index: 1, kind: input, shape index: {}]   ;;  %s6720_s2 = inlined_call_operand.vmem [shape: f32[1,512], index: 2, kind: input, shape index: {}]   ;;  %s6721_s3 = inlined_call_operand.vmem [shape: f32[512,64], index: 3, kind: input, shape index: {}]   ;;  %s6722_s4 = inlined_call_operand.vmem [shape: f32[1,64], index: 4, kind: input, shape index: {}]   ;;  %s6723_s5 = inlined_call_operand.vmem [shape: f32[128,64], index: 5, kind: input, shape index: {}]   ;;  %s6724_s6 = inlined_call_operand.vmem [shape: f32[1,128], index: 6, kind: input, shape index: {}]   ;;  %s6725_s7 = inlined_call_operand.vmem [shape: f32[64,512], index: 7, kind: input, shape index: {}]   ;;  %s6726_s8 = inlined_call_operand.vmem [shape: f32[1,512], index: 8, kind: input, shape index: {}]   ;;  %s6727_s9 = inlined_call_operand.hbm [shape: bf16[512,896], index: 9, kind: input, shape index: {}]   ;;  %s6728_s10 = inlined_call_operand.vmem [shape: f32[1,896], index: 10, kind: input, shape index: {}]   ;;  %s6729_s11 = inlined_call_operand.hbm [shape: f32[16,896], index: 11, kind: output, shape index: {0}]   ;;  %s6730_s12 = inlined_call_operand.hbm [shape: f32[16,128], index: 12, kind: output, shape index: {1}]   ;;  %s6731_s13 = inlined_call_operand.hbm [shape: s32[16,128], index: 13, kind: output, shape index: {2}]  }
   0x1   :  { %20 = vsyncpa [#allocation6], 0 }
   0x2   :  { %21 = vsyncpa [#allocation4], 0 }
   0x3   :  { %22 = vsyncpa [#allocation9], 0  ;;  %s6083_s25 = smov [#allocation2]  }
   0x4   :  { %s30_s26 = sshll.u32 %s6083_s25, 4  ;;  %s31_s26 = int_to_ptr.vmem [resolvable:$true] %s30_s26 }
   0x5   :  { %s5983_s27 = scalar_lea.vmem %s31_s26, 28672  ;;  %p5988_p1 = scmp.lt.s32.totalorder %s31_s26, %s31_s26 }
   0x6   :  { %p5984_p0 = scmp.ne.s32.totalorder %s31_s26, %s5983_s27  ;;  %p5989_p2 = scmp.lt.s32.totalorder %s5983_s27, %s5983_s27 }
   0x8   :  { %p5990_p3 = por %p5989_p2, %p5988_p1 }
   0xa   :  { %p5991_p4 = pnand %p5990_p3, %p5984_p0 }
   0xc   :  { %5994 = shalt.err (!%p5991_p4)
}
   0xd   :  { %s6084_s28 = smov 256   ;;  %s6085_s29 = smov 16  }
   0xe   :  { %36 = dma.hbm_to_vmem [thread:$0]  %s6719_s1, 28672, %s31_s26, [#allocation3], %s6084_s28, %s6084_s28, %s6085_s29  }
   0xf   :  { %s6086_s15 = smov [#allocation5]  }
  0x10   :  { %s56_s16 = sshll.u32 %s6086_s15, 4  ;;  %s57_s16 = int_to_ptr.vmem [resolvable:$true] %s56_s16 }
  0x11   :  { %s6003_s17 = scalar_lea.vmem %s57_s16, 28672  ;;  %p6008_p6 = scmp.lt.s32.totalorder %s57_s16, %s57_s16 }
  0x12   :  { %p6004_p5 = scmp.ne.s32.totalorder %s57_s16, %s6003_s17  ;;  %p6009_p7 = scmp.lt.s32.totalorder %s6003_s17, %s6003_s17 }
  0x14   :  { %p6010_p8 = por %p6009_p7, %p6008_p6 }
  0x16   :  { %p6011_p9 = pnand %p6010_p8, %p6004_p5 }
  0x18   :  { %6014 = shalt.err (!%p6011_p9)
}
  0x19   :  { %s6087_s18 = smov 448   ;;  %s6088_s19 = smov 28  }
  0x1a   :  { %62 = dma.hbm_to_vmem [thread:$0]  %s6727_s9, 28672, %s57_s16, [#allocation6], %s6087_s18, %s6087_s18, %s6088_s19  }
  0x1b   :  { %6075 = dma.done.wait [#allocation3], 28672  }
  0x1c   :  { %6076 = vsyncadd [#allocation3], 4294938624 }
  0x1d   :  { %6077 = dma.done.wait [#allocation6], 28672  }
  0x1e   :  { %6078 = vsyncadd [#allocation6], 4294938624  ;;  %v5251_v0 = vld [vmem:[#allocation2 + $0xe4] ss:$16 sps:$4 sm:$0xff]   ;;  %v5255_v2 = vld [vmem:[#allocation2 + $0xe0] ss:$16 sps:$4 sm:$0xff]  }
  0x1f   :  { %v5253_v1 = vld [vmem:[#allocation2 + $0x2e4] ss:$16 sps:$4 sm:$0xff]   ;;  %1482 = vmatprep.subr.bf16.mxu0 %v5251_v0  ;;  %v5256_v3 = vld [vmem:[#allocation2 + $0x2e0] ss:$16 sps:$4 sm:$0xff]   ;;  %v6184_v51 = vld [vmem:[%s6718_s0 + $0xc] ss:$28 sps:$4 sm:$0xff]  }
  0x20   :  { %1525 = vmatprep.subr.bf16.mxu1 %v5253_v1  ;;  %v5257_v4 = vld [vmem:[#allocation2 + $0xc4] ss:$16 sps:$4 sm:$0xff]   ;;  %1483 = vmatpush1.bf16.msra.mxu0 %v5255_v2  ;;  %v5261_v6 = vld [vmem:[#allocation2 + $0xc0] ss:$16 sps:$4 sm:$0xff]   ;;  %vm2073_vm0 = vcmask 523264   ;;  %s6092_s27 = smov 64  }
  0x21   :  { %1526 = vmatpush1.bf16.msra.mxu1 %v5256_v3  ;;  %v5259_v5 = vld [vmem:[#allocation2 + $0x2c4] ss:$16 sps:$4 sm:$0xff]   ;;  %1484 = vmatprep.subr.bf16.mxu0 %v5257_v4  ;;  %v5262_v7 = vld [vmem:[#allocation2 + $0x2c0] ss:$16 sps:$4 sm:$0xff]  }
  0x22   :  { %1527 = vmatprep.subr.bf16.mxu1 %v5259_v5  ;;  %v5263_v8 = vld [vmem:[#allocation2 + $0xa4] ss:$16 sps:$4 sm:$0xff]   ;;  %v5267_v10 = vld [vmem:[#allocation2 + $0xa0] ss:$16 sps:$4 sm:$0xff]   ;;  %1557 = vmatprep.mubr.bf16.mxu1 %v6184_v51 }
  0x23   :  { %v5265_v9 = vld [vmem:[#allocation2 + $0x2a4] ss:$16 sps:$4 sm:$0xff]   ;;  %v5268_v11 = vld [vmem:[#allocation2 + $0x2a0] ss:$16 sps:$4 sm:$0xff]  }
  0x24   :  { %1485 = vmatpush1.bf16.msra.mxu0 %v5261_v6  ;;  %v5269_v12 = vld [vmem:[#allocation2 + $0x84] ss:$16 sps:$4 sm:$0xff]   ;;  %v5273_v14 = vld [vmem:[#allocation2 + $0x80] ss:$16 sps:$4 sm:$0xff]  }
  0x25   :  { %1528 = vmatpush1.bf16.msra.mxu1 %v5262_v7  ;;  %1486 = vmatprep.subr.bf16.mxu0 %v5263_v8  ;;  %v5271_v13 = vld [vmem:[#allocation2 + $0x284] ss:$16 sps:$4 sm:$0xff]   ;;  %v5274_v15 = vld [vmem:[#allocation2 + $0x280] ss:$16 sps:$4 sm:$0xff]  }
  0x26   :  { %1529 = vmatprep.subr.bf16.mxu1 %v5265_v9  ;;  %v5275_v16 = vld [vmem:[#allocation2 + $0x64] ss:$16 sps:$4 sm:$0xff]   ;;  %v5279_v18 = vld [vmem:[#allocation2 + $0x60] ss:$16 sps:$4 sm:$0xff]  }
  0x27   :  { %v5277_v17 = vld [vmem:[#allocation2 + $0x264] ss:$16 sps:$4 sm:$0xff]   ;;  %v5280_v19 = vld [vmem:[#allocation2 + $0x260] ss:$16 sps:$4 sm:$0xff]  }
  0x28   :  { %1487 = vmatpush1.bf16.msra.mxu0 %v5267_v10  ;;  %v5281_v20 = vld [vmem:[#allocation2 + $0x44] ss:$16 sps:$4 sm:$0xff]   ;;  %v5285_v22 = vld [vmem:[#allocation2 + $0x40] ss:$16 sps:$4 sm:$0xff]  }
  0x29   :  { %1530 = vmatpush1.bf16.msra.mxu1 %v5268_v11  ;;  %1488 = vmatprep.subr.bf16.mxu0 %v5269_v12  ;;  %v5283_v21 = vld [vmem:[#allocation2 + $0x244] ss:$16 sps:$4 sm:$0xff]   ;;  %v5286_v23 = vld [vmem:[#allocation2 + $0x240] ss:$16 sps:$4 sm:$0xff]  }
  0x2a   :  { %1531 = vmatprep.subr.bf16.mxu1 %v5271_v13  ;;  %v5287_v24 = vld [vmem:[#allocation2 + $0x24] ss:$16 sps:$4 sm:$0xff]   ;;  %v5291_v26 = vld [vmem:[#allocation2 + $0x20] ss:$16 sps:$4 sm:$0xff]  }
  0x2b   :  { %v5289_v25 = vld [vmem:[#allocation2 + $0x224] ss:$16 sps:$4 sm:$0xff]   ;;  %v5292_v27 = vld [vmem:[#allocation2 + $0x220] ss:$16 sps:$4 sm:$0xff]  }
  0x2c   :  { %1489 = vmatpush1.bf16.msra.mxu0 %v5273_v14  ;;  %v5293_v28 = vld [vmem:[#allocation2 + $0x4] ss:$16 sps:$4 sm:$0xff]   ;;  %v5297_v30 = vld [vmem:[#allocation2] ss:$16 sps:$4 sm:$0xff]   ;;  %v6089_v14 = vmov 0  }
  0x2d   :  { %1532 = vmatpush1.bf16.msra.mxu1 %v5274_v15  ;;  %1490 = vmatprep.subr.bf16.mxu0 %v5275_v16  ;;  %v5295_v29 = vld [vmem:[#allocation2 + $0x204] ss:$16 sps:$4 sm:$0xff]   ;;  %v5298_v31 = vld [vmem:[#allocation2 + $0x200] ss:$16 sps:$4 sm:$0xff]  }
  0x2e   :  { %1533 = vmatprep.subr.bf16.mxu1 %v5277_v17  ;;  %v5299_v32 = vld [vmem:[#allocation2 + $0x1e4] ss:$16 sps:$4 sm:$0xff]   ;;  %v5303_v34 = vld [vmem:[#allocation2 + $0x1e0] ss:$16 sps:$4 sm:$0xff]  }
  0x2f   :  { %v5301_v33 = vld [vmem:[#allocation2 + $0x3e4] ss:$16 sps:$4 sm:$0xff]   ;;  %v5304_v35 = vld [vmem:[#allocation2 + $0x3e0] ss:$16 sps:$4 sm:$0xff]  }
  0x30   :  { %1491 = vmatpush1.bf16.msra.mxu0 %v5279_v18  ;;  %v5305_v36 = vld [vmem:[#allocation2 + $0x1c4] ss:$16 sps:$4 sm:$0xff]   ;;  %v5309_v38 = vld [vmem:[#allocation2 + $0x1c0] ss:$16 sps:$4 sm:$0xff]  }
  0x31   :  { %1534 = vmatpush1.bf16.msra.mxu1 %v5280_v19  ;;  %1492 = vmatprep.subr.bf16.mxu0 %v5281_v20  ;;  %v5307_v37 = vld [vmem:[#allocation2 + $0x3c4] ss:$16 sps:$4 sm:$0xff]   ;;  %v5310_v39 = vld [vmem:[#allocation2 + $0x3c0] ss:$16 sps:$4 sm:$0xff]  }
  0x32   :  { %1535 = vmatprep.subr.bf16.mxu1 %v5283_v21  ;;  %v5311_v40 = vld [vmem:[#allocation2 + $0x1a4] ss:$16 sps:$4 sm:$0xff]   ;;  %v5315_v42 = vld [vmem:[#allocation2 + $0x1a0] ss:$16 sps:$4 sm:$0xff]  }
  0x33   :  { %v5313_v41 = vld [vmem:[#allocation2 + $0x3a4] ss:$16 sps:$4 sm:$0xff]   ;;  %v5316_v43 = vld [vmem:[#allocation2 + $0x3a0] ss:$16 sps:$4 sm:$0xff]  }
  0x34   :  { %1493 = vmatpush1.bf16.msra.mxu0 %v5285_v22  ;;  %v5317_v44 = vld [vmem:[#allocation2 + $0x184] ss:$16 sps:$4 sm:$0xff]   ;;  %v5321_v46 = vld [vmem:[#allocation2 + $0x180] ss:$16 sps:$4 sm:$0xff]  }
  0x35   :  { %1536 = vmatpush1.bf16.msra.mxu1 %v5286_v23  ;;  %1494 = vmatprep.subr.bf16.mxu0 %v5287_v24  ;;  %v5319_v45 = vld [vmem:[#allocation2 + $0x384] ss:$16 sps:$4 sm:$0xff]   ;;  %v5322_v47 = vld [vmem:[#allocation2 + $0x380] ss:$16 sps:$4 sm:$0xff]  }
  0x36   :  { %1537 = vmatprep.subr.bf16.mxu1 %v5289_v25  ;;  %v5323_v48 = vld [vmem:[#allocation2 + $0x164] ss:$16 sps:$4 sm:$0xff]   ;;  %v5327_v52 = vld [vmem:[#allocation2 + $0x160] ss:$16 sps:$4 sm:$0xff]  }
  0x37   :  { %v6179_v49 = vld [vmem:[%s6718_s0 + $0x4] ss:$28 sps:$4 sm:$0xff]  }
  0x38   :  { %1495 = vmatpush1.bf16.msra.mxu0 %v5291_v26  ;;  %v5325_v50 = vld [vmem:[#allocation2 + $0x364] ss:$16 sps:$4 sm:$0xff]   ;;  %1514 = vmatprep.mubr.bf16.mxu0 %v6179_v49  ;;  %v5328_v53 = vld [vmem:[#allocation2 + $0x360] ss:$16 sps:$4 sm:$0xff]  }
  0x39   :  { %1538 = vmatpush1.bf16.msra.mxu1 %v5292_v27  ;;  %1496 = vmatprep.subr.bf16.mxu0 %v5293_v28  ;;  %v5329_v54 = vld [vmem:[#allocation2 + $0x144] ss:$16 sps:$4 sm:$0xff]   ;;  %v5333_v56 = vld [vmem:[#allocation2 + $0x140] ss:$16 sps:$4 sm:$0xff]  }
  0x3a   :  { %1539 = vmatprep.subr.bf16.mxu1 %v5295_v29  ;;  %v5331_v55 = vld [vmem:[#allocation2 + $0x344] ss:$16 sps:$4 sm:$0xff]   ;;  %v5334_v57 = vld [vmem:[#allocation2 + $0x340] ss:$16 sps:$4 sm:$0xff]  }
  0x3b   :  { %v5335_v58 = vld [vmem:[#allocation2 + $0x124] ss:$16 sps:$4 sm:$0xff]   ;;  %v5339_v60 = vld [vmem:[#allocation2 + $0x120] ss:$16 sps:$4 sm:$0xff]  }
  0x3c   :  { %1497 = vmatpush1.bf16.msra.mxu0 %v5297_v30  ;;  %v5337_v59 = vld [vmem:[#allocation2 + $0x324] ss:$16 sps:$4 sm:$0xff]   ;;  %v5340_v61 = vld [vmem:[#allocation2 + $0x320] ss:$16 sps:$4 sm:$0xff]  }
  0x3d   :  { %1540 = vmatpush1.bf16.msra.mxu1 %v5298_v31  ;;  %1498 = vmatprep.subr.bf16.mxu0 %v5299_v32  ;;  %v5341_v62 = vld [vmem:[#allocation2 + $0x104] ss:$16 sps:$4 sm:$0xff]   ;;  %v5345_v0 = vld [vmem:[#allocation2 + $0x100] ss:$16 sps:$4 sm:$0xff]  }
  0x3e   :  { %1541 = vmatprep.subr.bf16.mxu1 %v5301_v33  ;;  %v5343_v63 = vld [vmem:[#allocation2 + $0x304] ss:$16 sps:$4 sm:$0xff]   ;;  %v5346_v1 = vld [vmem:[#allocation2 + $0x300] ss:$16 sps:$4 sm:$0xff]  }
  0x3f   :  { %v5355_v2 = vld [vmem:[#allocation2 + $0x4e4] ss:$16 sps:$4 sm:$0xff]   ;;  %v6191_v4 = vld [vmem:[%s6718_s0] ss:$28 sps:$4 sm:$0xff]  }
  0x40   :  { %1499 = vmatpush2.bf16.msra.mxu0 %v5303_v34  ;;  %v5358_v3 = vld [vmem:[#allocation2 + $0x6e4] ss:$16 sps:$4 sm:$0xff]   ;;  %v5353_v6 = vld [vmem:[#allocation2 + $0x4e0] ss:$16 sps:$4 sm:$0xff]  }
  0x41   :  { %1542 = vmatpush2.bf16.msra.mxu1 %v5304_v35  ;;  %1500 = vmatprep.subr.bf16.mxu0 %v5305_v36  ;;  %v5350_v5 = vld [vmem:[%s6718_s0 + $0x8] ss:$28 sps:$4 sm:$0xff]   ;;  %v5356_v7 = vld [vmem:[#allocation2 + $0x6e0] ss:$16 sps:$4 sm:$0xff]  }
  0x42   :  { %1543 = vmatprep.subr.bf16.mxu1 %v5307_v37  ;;  %v5361_v8 = vld [vmem:[#allocation2 + $0x4c4] ss:$16 sps:$4 sm:$0xff]   ;;  %v5359_v10 = vld [vmem:[#allocation2 + $0x4c0] ss:$16 sps:$4 sm:$0xff]  }
  0x43   :  { %v5364_v9 = vld [vmem:[#allocation2 + $0x6c4] ss:$16 sps:$4 sm:$0xff]   ;;  %v5362_v11 = vld [vmem:[#allocation2 + $0x6c0] ss:$16 sps:$4 sm:$0xff]  }
  0x44   :  { %1501 = vmatpush2.bf16.msra.mxu0 %v5309_v38  ;;  %v5367_v12 = vld [vmem:[#allocation2 + $0x4a4] ss:$16 sps:$4 sm:$0xff]   ;;  %v5365_v15 = vld [vmem:[#allocation2 + $0x4a0] ss:$16 sps:$4 sm:$0xff]  }
  0x45   :  { %1544 = vmatpush2.bf16.msra.mxu1 %v5310_v39  ;;  %1502 = vmatprep.subr.bf16.mxu0 %v5311_v40  ;;  %v5370_v13 = vld [vmem:[#allocation2 + $0x6a4] ss:$16 sps:$4 sm:$0xff]   ;;  %v5368_v16 = vld [vmem:[#allocation2 + $0x6a0] ss:$16 sps:$4 sm:$0xff]   ;;  %v5407_v39 = vld [vmem:[#allocation2 + $0xec] ss:$16 sps:$4 sm:$0xff]  }
  0x46   :  { %1545 = vmatprep.subr.bf16.mxu1 %v5313_v41  ;;  %v5373_v17 = vld [vmem:[#allocation2 + $0x484] ss:$16 sps:$4 sm:$0xff]   ;;  %v5371_v19 = vld [vmem:[#allocation2 + $0x480] ss:$16 sps:$4 sm:$0xff]  }
  0x47   :  { %v5376_v18 = vld [vmem:[#allocation2 + $0x684] ss:$16 sps:$4 sm:$0xff]   ;;  %v5374_v20 = vld [vmem:[#allocation2 + $0x680] ss:$16 sps:$4 sm:$0xff]  }
  0x48   :  { %1503 = vmatpush2.bf16.msra.mxu0 %v5315_v42  ;;  %v5379_v21 = vld [vmem:[#allocation2 + $0x464] ss:$16 sps:$4 sm:$0xff]   ;;  %v5377_v23 = vld [vmem:[#allocation2 + $0x460] ss:$16 sps:$4 sm:$0xff]   ;;  %v5405_v42 = vld [vmem:[#allocation2 + $0xe8] ss:$16 sps:$4 sm:$0xff]  }
  0x49   :  { %1546 = vmatpush2.bf16.msra.mxu1 %v5316_v43  ;;  %1504 = vmatprep.subr.bf16.mxu0 %v5317_v44  ;;  %v5382_v22 = vld [vmem:[#allocation2 + $0x664] ss:$16 sps:$4 sm:$0xff]   ;;  %v5380_v24 = vld [vmem:[#allocation2 + $0x660] ss:$16 sps:$4 sm:$0xff]   ;;  %v5413_v44 = vld [vmem:[#allocation2 + $0xcc] ss:$16 sps:$4 sm:$0xff]  }
  0x4a   :  { %1547 = vmatprep.subr.bf16.mxu1 %v5319_v45  ;;  %v5385_v25 = vld [vmem:[#allocation2 + $0x444] ss:$16 sps:$4 sm:$0xff]   ;;  %v5383_v27 = vld [vmem:[#allocation2 + $0x440] ss:$16 sps:$4 sm:$0xff]  }
  0x4b   :  { %v5388_v26 = vld [vmem:[#allocation2 + $0x644] ss:$16 sps:$4 sm:$0xff]   ;;  %v5386_v28 = vld [vmem:[#allocation2 + $0x640] ss:$16 sps:$4 sm:$0xff]  }
  0x4c   :  { %1505 = vmatpush2.bf16.msra.mxu0 %v5321_v46  ;;  %v5391_v29 = vld [vmem:[#allocation2 + $0x424] ss:$16 sps:$4 sm:$0xff]   ;;  %v5389_v31 = vld [vmem:[#allocation2 + $0x420] ss:$16 sps:$4 sm:$0xff]   ;;  %v5411_v46 = vld [vmem:[#allocation2 + $0xc8] ss:$16 sps:$4 sm:$0xff]  }
  0x4d   :  { %1548 = vmatpush2.bf16.msra.mxu1 %v5322_v47  ;;  %1506 = vmatprep.subr.bf16.mxu0 %v5323_v48  ;;  %v5394_v30 = vld [vmem:[#allocation2 + $0x624] ss:$16 sps:$4 sm:$0xff]   ;;  %v5392_v32 = vld [vmem:[#allocation2 + $0x620] ss:$16 sps:$4 sm:$0xff]   ;;  %v5419_v48 = vld [vmem:[#allocation2 + $0xac] ss:$16 sps:$4 sm:$0xff]  }
  0x4e   :  { %1549 = vmatprep.subr.bf16.mxu1 %v5325_v50  ;;  %v5397_v33 = vld [vmem:[#allocation2 + $0x404] ss:$16 sps:$4 sm:$0xff]   ;;  %v5395_v36 = vld [vmem:[#allocation2 + $0x400] ss:$16 sps:$4 sm:$0xff]  }
  0x4f   :  { %v5400_v34 = vld [vmem:[#allocation2 + $0x604] ss:$16 sps:$4 sm:$0xff]   ;;  %v5398_v37 = vld [vmem:[#allocation2 + $0x600] ss:$16 sps:$4 sm:$0xff]  }
  0x50   :  { %1507 = vmatpush2.bf16.msra.mxu0 %v5327_v52  ;;  %v6201_v35 = vld [vmem:[%s6718_s0 + $0x14] ss:$28 sps:$4 sm:$0xff]   ;;  %v5417_v52 = vld [vmem:[#allocation2 + $0xa8] ss:$16 sps:$4 sm:$0xff]  }
  0x51   :  { %1550 = vmatpush2.bf16.msra.mxu1 %v5328_v53  ;;  %1508 = vmatprep.subr.bf16.mxu0 %v5329_v54  ;;  %v5403_v38 = vld [vmem:[#allocation2 + $0x5e4] ss:$16 sps:$4 sm:$0xff]   ;;  %v5401_v40 = vld [vmem:[#allocation2 + $0x5e0] ss:$16 sps:$4 sm:$0xff]   ;;  %v5425_v54 = vld [vmem:[#allocation2 + $0x8c] ss:$16 sps:$4 sm:$0xff]  }
  0x52   :  { %1551 = vmatprep.subr.bf16.mxu1 %v5331_v55  ;;  %v5404_v41 = vld [vmem:[%s6718_s0 + $0x18] ss:$28 sps:$4 sm:$0xff]   ;;  %v5408_v45 = vld [vmem:[#allocation2 + $0x5c0] ss:$16 sps:$4 sm:$0xff]  }
  0x53   :  { %v5410_v43 = vld [vmem:[#allocation2 + $0x5c4] ss:$16 sps:$4 sm:$0xff]   ;;  %v5414_v50 = vld [vmem:[#allocation2 + $0x5a0] ss:$16 sps:$4 sm:$0xff]  }
  0x54   :  { %1509 = vmatpush2.bf16.msra.mxu0 %v5333_v56  ;;  %v5416_v47 = vld [vmem:[#allocation2 + $0x5a4] ss:$16 sps:$4 sm:$0xff]   ;;  %v5420_v55 = vld [vmem:[#allocation2 + $0x580] ss:$16 sps:$4 sm:$0xff]   ;;  %v5423_v56 = vld [vmem:[#allocation2 + $0x88] ss:$16 sps:$4 sm:$0xff]  }
  0x55   :  { %1552 = vmatpush2.bf16.msra.mxu1 %v5334_v57  ;;  %1510 = vmatprep.subr.bf16.mxu0 %v5335_v58  ;;  %v5422_v53 = vld [vmem:[#allocation2 + $0x584] ss:$16 sps:$4 sm:$0xff]   ;;  %v5431_v58 = vld [vmem:[#allocation2 + $0x6c] ss:$16 sps:$4 sm:$0xff]  }
  0x56   :  { %1553 = vmatprep.subr.bf16.mxu1 %v5337_v59  ;;  %v5428_v57 = vld [vmem:[#allocation2 + $0x564] ss:$16 sps:$4 sm:$0xff]   ;;  %v5426_v59 = vld [vmem:[#allocation2 + $0x560] ss:$16 sps:$4 sm:$0xff]  }
  0x58   :  { %1511 = vmatpush2.bf16.msra.mxu0 %v5339_v60  ;;  %v5434_v60 = vld [vmem:[#allocation2 + $0x544] ss:$16 sps:$4 sm:$0xff]  }
  0x59   :  { %1554 = vmatpush2.bf16.msra.mxu1 %v5340_v61  ;;  %1512 = vmatprep.subr.bf16.mxu0 %v5341_v62  ;;  %v5437_v61 = vld [vmem:[#allocation2 + $0x4c] ss:$16 sps:$4 sm:$0xff]   ;;  %v5432_v62 = vld [vmem:[#allocation2 + $0x540] ss:$16 sps:$4 sm:$0xff]  }
  0x5a   :  { %1555 = vmatprep.subr.bf16.mxu1 %v5343_v63  ;;  %v5435_v63 = vld [vmem:[#allocation2 + $0x48] ss:$16 sps:$4 sm:$0xff]  }
  0x5c   :  { %1513 = vmatpush2.bf16.msra.mxu0 %v5345_v0  ;;  %v5440_v0 = vld [vmem:[#allocation2 + $0x524] ss:$16 sps:$4 sm:$0xff]  }
  0x5d   :  { %1556 = vmatpush2.bf16.msra.mxu1 %v5346_v1  ;;  %1568 = vmatprep.subr.bf16.mxu0 %v5355_v2  ;;  %v5443_v1 = vld [vmem:[#allocation2 + $0x2c] ss:$16 sps:$4 sm:$0xff]   ;;  %v5438_v2 = vld [vmem:[#allocation2 + $0x520] ss:$16 sps:$4 sm:$0xff]  }
  0x5e   :  { %1611 = vmatprep.subr.bf16.mxu1 %v5358_v3  ;;  %v5441_v3 = vld [vmem:[#allocation2 + $0x28] ss:$16 sps:$4 sm:$0xff]  }
  0x5f   :  { %1515 = vmatmul.mubr.bf16.vlgmr.msra.gmra.mxu0 %v6191_v4 }
  0x60   :  { %1558 = vmatmul.mubr.bf16.vlgmr.msra.gmra.mxu1 %v5350_v5  ;;  %1569 = vmatpush1.bf16.msra.mxu0 %v5353_v6  ;;  %v5446_v5 = vld [vmem:[#allocation2 + $0x504] ss:$16 sps:$4 sm:$0xff]   ;;  %v5449_v6 = vld [vmem:[#allocation2 + $0xc] ss:$16 sps:$4 sm:$0xff]  }
  0x61   :  { %1612 = vmatpush1.bf16.msra.mxu1 %v5356_v7  ;;  %1570 = vmatprep.subr.bf16.mxu0 %v5361_v8  ;;  %v5444_v7 = vld [vmem:[#allocation2 + $0x500] ss:$16 sps:$4 sm:$0xff]   ;;  %v5447_v8 = vld [vmem:[#allocation2 + $0x8] ss:$16 sps:$4 sm:$0xff]  }
  0x62   :  { %1613 = vmatprep.subr.bf16.mxu1 %v5364_v9  ;;  %1643 = vmatprep.mubr.bf16.mxu1 %v6089_v14  ;;  %v5455_v9 = vld [vmem:[#allocation2 + $0x1ec] ss:$16 sps:$4 sm:$0xff]  }
  0x63   :  { %1600 = vmatprep.mubr.bf16.mxu0 %v6201_v35 }
  0x64   :  { %1571 = vmatpush1.bf16.msra.mxu0 %v5359_v10  ;;  %v5458_v10 = vld [vmem:[#allocation2 + $0x2ec] ss:$16 sps:$4 sm:$0xff]  }
  0x65   :  { %1614 = vmatpush1.bf16.msra.mxu1 %v5362_v11  ;;  %1572 = vmatprep.subr.bf16.mxu0 %v5367_v12  ;;  %v6211_v11 = vld [vmem:[%s6718_s0 + $0x10] ss:$28 sps:$4 sm:$0xff]   ;;  %v5453_v12 = vld [vmem:[#allocation2 + $0x1e8] ss:$16 sps:$4 sm:$0xff]  }
  0x66   :  { %1615 = vmatprep.subr.bf16.mxu1 %v5370_v13  ;;  %v5456_v13 = vld [vmem:[#allocation2 + $0x2e8] ss:$16 sps:$4 sm:$0xff]  }
  0x68   :  { %1573 = vmatpush1.bf16.msra.mxu0 %v5365_v15  ;;  %v5461_v15 = vld [vmem:[#allocation2 + $0x1cc] ss:$16 sps:$4 sm:$0xff]  }
  0x69   :  { %1616 = vmatpush1.bf16.msra.mxu1 %v5368_v16  ;;  %1574 = vmatprep.subr.bf16.mxu0 %v5373_v17  ;;  %v5464_v16 = vld [vmem:[#allocation2 + $0x2cc] ss:$16 sps:$4 sm:$0xff]   ;;  %v5459_v17 = vld [vmem:[#allocation2 + $0x1c8] ss:$16 sps:$4 sm:$0xff]  }
  0x6a   :  { %1617 = vmatprep.subr.bf16.mxu1 %v5376_v18  ;;  %v5462_v18 = vld [vmem:[#allocation2 + $0x2c8] ss:$16 sps:$4 sm:$0xff]  }
  0x6c   :  { %1575 = vmatpush1.bf16.msra.mxu0 %v5371_v19  ;;  %v5467_v19 = vld [vmem:[#allocation2 + $0x1ac] ss:$16 sps:$4 sm:$0xff]  }
  0x6d   :  { %1618 = vmatpush1.bf16.msra.mxu1 %v5374_v20  ;;  %1576 = vmatprep.subr.bf16.mxu0 %v5379_v21  ;;  %v5470_v20 = vld [vmem:[#allocation2 + $0x2ac] ss:$16 sps:$4 sm:$0xff]   ;;  %v5465_v21 = vld [vmem:[#allocation2 + $0x1a8] ss:$16 sps:$4 sm:$0xff]  }
  0x6e   :  { %1619 = vmatprep.subr.bf16.mxu1 %v5382_v22  ;;  %v5468_v22 = vld [vmem:[#allocation2 + $0x2a8] ss:$16 sps:$4 sm:$0xff]  }
  0x70   :  { %1577 = vmatpush1.bf16.msra.mxu0 %v5377_v23  ;;  %v5473_v23 = vld [vmem:[#allocation2 + $0x18c] ss:$16 sps:$4 sm:$0xff]  }
  0x71   :  { %1620 = vmatpush1.bf16.msra.mxu1 %v5380_v24  ;;  %1578 = vmatprep.subr.bf16.mxu0 %v5385_v25  ;;  %v5476_v24 = vld [vmem:[#allocation2 + $0x28c] ss:$16 sps:$4 sm:$0xff]   ;;  %v5471_v25 = vld [vmem:[#allocation2 + $0x188] ss:$16 sps:$4 sm:$0xff]  }
  0x72   :  { %1621 = vmatprep.subr.bf16.mxu1 %v5388_v26  ;;  %v5474_v26 = vld [vmem:[#allocation2 + $0x288] ss:$16 sps:$4 sm:$0xff]  }
  0x74   :  { %1579 = vmatpush1.bf16.msra.mxu0 %v5383_v27  ;;  %v5479_v27 = vld [vmem:[#allocation2 + $0x16c] ss:$16 sps:$4 sm:$0xff]  }
  0x75   :  { %1622 = vmatpush1.bf16.msra.mxu1 %v5386_v28  ;;  %1580 = vmatprep.subr.bf16.mxu0 %v5391_v29  ;;  %v5482_v28 = vld [vmem:[#allocation2 + $0x26c] ss:$16 sps:$4 sm:$0xff]   ;;  %v5477_v29 = vld [vmem:[#allocation2 + $0x168] ss:$16 sps:$4 sm:$0xff]  }
  0x76   :  { %1623 = vmatprep.subr.bf16.mxu1 %v5394_v30  ;;  %v5485_v30 = vld [vmem:[#allocation2 + $0x14c] ss:$16 sps:$4 sm:$0xff]  }
  0x78   :  { %1581 = vmatpush1.bf16.msra.mxu0 %v5389_v31  ;;  %v5488_v31 = vld [vmem:[#allocation2 + $0x24c] ss:$16 sps:$4 sm:$0xff]  }
  0x79   :  { %1624 = vmatpush1.bf16.msra.mxu1 %v5392_v32  ;;  %1582 = vmatprep.subr.bf16.mxu0 %v5397_v33  ;;  %v5483_v32 = vld [vmem:[#allocation2 + $0x148] ss:$16 sps:$4 sm:$0xff]  }
  0x7a   :  { %1625 = vmatprep.subr.bf16.mxu1 %v5400_v34  ;;  %v5486_v33 = vld [vmem:[#allocation2 + $0x248] ss:$16 sps:$4 sm:$0xff]   ;;  %v5491_v34 = vld [vmem:[#allocation2 + $0x12c] ss:$16 sps:$4 sm:$0xff]  }
  0x7c   :  { %1583 = vmatpush1.bf16.msra.mxu0 %v5395_v36  ;;  %v5494_v36 = vld [vmem:[#allocation2 + $0x22c] ss:$16 sps:$4 sm:$0xff]  }
  0x7d   :  { %1626 = vmatpush1.bf16.msra.mxu1 %v5398_v37  ;;  %1584 = vmatprep.subr.bf16.mxu0 %v5403_v38  ;;  %v5489_v37 = vld [vmem:[#allocation2 + $0x128] ss:$16 sps:$4 sm:$0xff]  }
  0x7e   :  { %1654 = vmatprep.subr.bf16.mxu1 %v5407_v39  ;;  %v5492_v38 = vld [vmem:[#allocation2 + $0x228] ss:$16 sps:$4 sm:$0xff]   ;;  %v5497_v39 = vld [vmem:[#allocation2 + $0x10c] ss:$16 sps:$4 sm:$0xff]  }
  0x80   :  { %1644 = vmatmul.mubr.bf16.vlgmr.msra.gmra.mxu1 %v5404_v41  ;;  %1585 = vmatpush2.bf16.msra.mxu0 %v5401_v40  ;;  %v5500_v40 = vld [vmem:[#allocation2 + $0x20c] ss:$16 sps:$4 sm:$0xff]   ;;  %v5495_v41 = vld [vmem:[#allocation2 + $0x108] ss:$16 sps:$4 sm:$0xff]  }
  0x81   :  { %1655 = vmatpush1.bf16.msra.mxu1 %v5405_v42  ;;  %1586 = vmatprep.subr.bf16.mxu0 %v5410_v43  ;;  %v5498_v42 = vld [vmem:[#allocation2 + $0x208] ss:$16 sps:$4 sm:$0xff]   ;;  %v5503_v43 = vld [vmem:[#allocation2 + $0x3ec] ss:$16 sps:$4 sm:$0xff]  }
  0x82   :  { %1656 = vmatprep.subr.bf16.mxu1 %v5413_v44  ;;  %1686 = vmatprep.mubr.bf16.mxu1 %v6179_v49  ;;  %v5429_v49 = vld [vmem:[#allocation2 + $0x68] ss:$16 sps:$4 sm:$0xff]   ;;  %v5506_v44 = vld [vmem:[#allocation2 + $0x4ec] ss:$16 sps:$4 sm:$0xff]  }
  0x84   :  { %1587 = vmatpush2.bf16.msra.mxu0 %v5408_v45  ;;  %v5501_v45 = vld [vmem:[#allocation2 + $0x3e8] ss:$16 sps:$4 sm:$0xff]  }
  0x85   :  { %1657 = vmatpush1.bf16.msra.mxu1 %v5411_v46  ;;  %1588 = vmatprep.subr.bf16.mxu0 %v5416_v47  ;;  %v5504_v46 = vld [vmem:[#allocation2 + $0x4e8] ss:$16 sps:$4 sm:$0xff]   ;;  %v5509_v47 = vld [vmem:[#allocation2 + $0x3cc] ss:$16 sps:$4 sm:$0xff]  }
  0x86   :  { %1658 = vmatprep.subr.bf16.mxu1 %v5419_v48  ;;  %v5512_v48 = vld [vmem:[#allocation2 + $0x4cc] ss:$16 sps:$4 sm:$0xff]  }
  0x88   :  { %1589 = vmatpush2.bf16.msra.mxu0 %v5414_v50  ;;  %v5507_v50 = vld [vmem:[#allocation2 + $0x3c8] ss:$16 sps:$4 sm:$0xff]  }
  0x89   :  { %1659 = vmatpush1.bf16.msra.mxu1 %v5417_v52  ;;  %1590 = vmatprep.subr.bf16.mxu0 %v5422_v53  ;;  %v5510_v52 = vld [vmem:[#allocation2 + $0x4c8] ss:$16 sps:$4 sm:$0xff]   ;;  %v5515_v53 = vld [vmem:[#allocation2 + $0x3ac] ss:$16 sps:$4 sm:$0xff]  }
  0x8a   :  { %1660 = vmatprep.subr.bf16.mxu1 %v5425_v54  ;;  %v5518_v54 = vld [vmem:[#allocation2 + $0x4ac] ss:$16 sps:$4 sm:$0xff]  }
  0x8c   :  { %1591 = vmatpush2.bf16.msra.mxu0 %v5420_v55  ;;  %v5513_v55 = vld [vmem:[#allocation2 + $0x3a8] ss:$16 sps:$4 sm:$0xff]  }
  0x8d   :  { %1661 = vmatpush1.bf16.msra.mxu1 %v5423_v56  ;;  %1592 = vmatprep.subr.bf16.mxu0 %v5428_v57  ;;  %v5516_v56 = vld [vmem:[#allocation2 + $0x4a8] ss:$16 sps:$4 sm:$0xff]   ;;  %v5521_v57 = vld [vmem:[#allocation2 + $0x38c] ss:$16 sps:$4 sm:$0xff]  }
  0x8e   :  { %1662 = vmatprep.subr.bf16.mxu1 %v5431_v58  ;;  %v5524_v58 = vld [vmem:[#allocation2 + $0x48c] ss:$16 sps:$4 sm:$0xff]  }
  0x90   :  { %1593 = vmatpush2.bf16.msra.mxu0 %v5426_v59  ;;  %v5519_v59 = vld [vmem:[#allocation2 + $0x388] ss:$16 sps:$4 sm:$0xff]  }
  0x91   :  { %1663 = vmatpush1.bf16.msra.mxu1 %v5429_v49  ;;  %1594 = vmatprep.subr.bf16.mxu0 %v5434_v60  ;;  %v5527_v49 = vld [vmem:[#allocation2 + $0x36c] ss:$16 sps:$4 sm:$0xff]  }
  0x92   :  { %1664 = vmatprep.subr.bf16.mxu1 %v5437_v61  ;;  %v5530_v60 = vld [vmem:[#allocation2 + $0x46c] ss:$16 sps:$4 sm:$0xff]   ;;  %v5525_v61 = vld [vmem:[#allocation2 + $0x368] ss:$16 sps:$4 sm:$0xff]  }
  0x94   :  { %1595 = vmatpush2.bf16.msra.mxu0 %v5432_v62  ;;  %v5528_v62 = vld [vmem:[#allocation2 + $0x468] ss:$16 sps:$4 sm:$0xff]  }
  0x95   :  { %1665 = vmatpush1.bf16.msra.mxu1 %v5435_v63  ;;  %1596 = vmatprep.subr.bf16.mxu0 %v5440_v0  ;;  %v5533_v63 = vld [vmem:[#allocation2 + $0x34c] ss:$16 sps:$4 sm:$0xff]   ;;  %v5531_v0 = vld [vmem:[#allocation2 + $0x348] ss:$16 sps:$4 sm:$0xff]  }
  0x96   :  { %1666 = vmatprep.subr.bf16.mxu1 %v5443_v1  ;;  %v5534_v1 = vld [vmem:[#allocation2 + $0x448] ss:$16 sps:$4 sm:$0xff]  }
  0x98   :  { %1597 = vmatpush2.bf16.msra.mxu0 %v5438_v2  ;;  %v5539_v2 = vld [vmem:[#allocation2 + $0x32c] ss:$16 sps:$4 sm:$0xff]  }
  0x99   :  { %1667 = vmatpush1.bf16.msra.mxu1 %v5441_v3  ;;  %1598 = vmatprep.subr.bf16.mxu0 %v5446_v5  ;;  %v5542_v3 = vld [vmem:[#allocation2 + $0x42c] ss:$16 sps:$4 sm:$0xff]   ;;  %v5537_v5 = vld [vmem:[#allocation2 + $0x328] ss:$16 sps:$4 sm:$0xff]  }
  0x9a   :  { %1668 = vmatprep.subr.bf16.mxu1 %v5449_v6  ;;  %v5540_v6 = vld [vmem:[#allocation2 + $0x428] ss:$16 sps:$4 sm:$0xff]  }
  0x9c   :  { %1599 = vmatpush2.bf16.msra.mxu0 %v5444_v7  ;;  %v5545_v7 = vld [vmem:[#allocation2 + $0x30c] ss:$16 sps:$4 sm:$0xff]  }
  0x9d   :  { %1669 = vmatpush1.bf16.msra.mxu1 %v5447_v8  ;;  %1697 = vmatprep.subr.bf16.mxu0 %v5458_v10  ;;  %v5548_v8 = vld [vmem:[#allocation2 + $0x40c] ss:$16 sps:$4 sm:$0xff]   ;;  %v5546_v10 = vld [vmem:[#allocation2 + $0x408] ss:$16 sps:$4 sm:$0xff]  }
  0x9e   :  { %1670 = vmatprep.subr.bf16.mxu1 %v5455_v9  ;;  %v5543_v9 = vld [vmem:[#allocation2 + $0x308] ss:$16 sps:$4 sm:$0xff]  }
  0x9f   :  { %1601 = vmatmul.mubr.bf16.vlgmr.msra.gmra.mxu0 %v6211_v11 }
  0xa0   :  { %1698 = vmatpush1.bf16.msra.mxu0 %v5456_v13  ;;  %1729 = vmatprep.mubr.bf16.mxu0 %v6184_v51  ;;  %v5480_v51 = vld [vmem:[#allocation2 + $0x268] ss:$16 sps:$4 sm:$0xff]   ;;  %v5554_v13 = vld [vmem:[#allocation2 + $0x6ec] ss:$16 sps:$4 sm:$0xff]  }
  0xa1   :  { %1671 = vmatpush2.bf16.msra.mxu1 %v5453_v12  ;;  %1699 = vmatprep.subr.bf16.mxu0 %v5464_v16  ;;  %v5551_v12 = vld [vmem:[#allocation2 + $0x5ec] ss:$16 sps:$4 sm:$0xff]   ;;  %v5552_v16 = vld [vmem:[#allocation2 + $0x6e8] ss:$16 sps:$4 sm:$0xff]  }
  0xa2   :  { %1672 = vmatprep.subr.bf16.mxu1 %v5461_v15  ;;  %v5549_v15 = vld [vmem:[#allocation2 + $0x5e8] ss:$16 sps:$4 sm:$0xff]  }
  0xa4   :  { %1700 = vmatpush1.bf16.msra.mxu0 %v5462_v18  ;;  %v5560_v18 = vld [vmem:[#allocation2 + $0x6cc] ss:$16 sps:$4 sm:$0xff]  }
  0xa5   :  { %1673 = vmatpush2.bf16.msra.mxu1 %v5459_v17  ;;  %1701 = vmatprep.subr.bf16.mxu0 %v5470_v20  ;;  %v5557_v17 = vld [vmem:[#allocation2 + $0x5cc] ss:$16 sps:$4 sm:$0xff]   ;;  %v5973_v20 = vld [vmem:[%s6718_s0 + $0x8] ss:$28 sps:$4 sm:$0xff]  }
  0xa6   :  { %1674 = vmatprep.subr.bf16.mxu1 %v5467_v19  ;;  %v5555_v19 = vld [vmem:[#allocation2 + $0x5c8] ss:$16 sps:$4 sm:$0xff]  }
  0xa8   :  { %1702 = vmatpush1.bf16.msra.mxu0 %v5468_v22  ;;  %v5563_v22 = vld [vmem:[#allocation2 + $0x5ac] ss:$16 sps:$4 sm:$0xff]  }
  0xa9   :  { %1675 = vmatpush2.bf16.msra.mxu1 %v5465_v21  ;;  %1703 = vmatprep.subr.bf16.mxu0 %v5476_v24  ;;  %v5558_v21 = vld [vmem:[#allocation2 + $0x6c8] ss:$16 sps:$4 sm:$0xff]  }
  0xaa   :  { %1676 = vmatprep.subr.bf16.mxu1 %v5473_v23  ;;  %v5566_v23 = vld [vmem:[#allocation2 + $0x6ac] ss:$16 sps:$4 sm:$0xff]   ;;  %v5561_v24 = vld [vmem:[#allocation2 + $0x5a8] ss:$16 sps:$4 sm:$0xff]  }
  0xac   :  { %1704 = vmatpush1.bf16.msra.mxu0 %v5474_v26  ;;  %v5569_v26 = vld [vmem:[#allocation2 + $0x58c] ss:$16 sps:$4 sm:$0xff]  }
  0xad   :  { %1677 = vmatpush2.bf16.msra.mxu1 %v5471_v25  ;;  %1705 = vmatprep.subr.bf16.mxu0 %v5482_v28  ;;  %v5564_v25 = vld [vmem:[#allocation2 + $0x6a8] ss:$16 sps:$4 sm:$0xff]  }
  0xae   :  { %1678 = vmatprep.subr.bf16.mxu1 %v5479_v27  ;;  %v5572_v27 = vld [vmem:[#allocation2 + $0x68c] ss:$16 sps:$4 sm:$0xff]   ;;  %v5567_v28 = vld [vmem:[#allocation2 + $0x588] ss:$16 sps:$4 sm:$0xff]  }
  0xb0   :  { %1706 = vmatpush1.bf16.msra.mxu0 %v5480_v51  ;;  %v5575_v51 = vld [vmem:[#allocation2 + $0x56c] ss:$16 sps:$4 sm:$0xff]  }
  0xb1   :  { %1679 = vmatpush2.bf16.msra.mxu1 %v5477_v29  ;;  %1707 = vmatprep.subr.bf16.mxu0 %v5488_v31  ;;  %v5570_v29 = vld [vmem:[#allocation2 + $0x688] ss:$16 sps:$4 sm:$0xff]  }
  0xb2   :  { %1680 = vmatprep.subr.bf16.mxu1 %v5485_v30  ;;  %v5578_v30 = vld [vmem:[#allocation2 + $0x66c] ss:$16 sps:$4 sm:$0xff]   ;;  %v5573_v31 = vld [vmem:[#allocation2 + $0x568] ss:$16 sps:$4 sm:$0xff]  }
  0xb4   :  { %1708 = vmatpush1.bf16.msra.mxu0 %v5486_v33  ;;  %v5581_v33 = vld [vmem:[#allocation2 + $0x54c] ss:$16 sps:$4 sm:$0xff]  }
  0xb5   :  { %1681 = vmatpush2.bf16.msra.mxu1 %v5483_v32  ;;  %1709 = vmatprep.subr.bf16.mxu0 %v5494_v36  ;;  %v5576_v32 = vld [vmem:[#allocation2 + $0x668] ss:$16 sps:$4 sm:$0xff]  }
  0xb6   :  { %1682 = vmatprep.subr.bf16.mxu1 %v5491_v34  ;;  %v5584_v34 = vld [vmem:[#allocation2 + $0x64c] ss:$16 sps:$4 sm:$0xff]   ;;  %v5582_v36 = vld [vmem:[#allocation2 + $0x648] ss:$16 sps:$4 sm:$0xff]  }
  0xb8   :  { %1710 = vmatpush1.bf16.msra.mxu0 %v5492_v38  ;;  %v5590_v38 = vld [vmem:[#allocation2 + $0x62c] ss:$16 sps:$4 sm:$0xff]  }
  0xb9   :  { %1683 = vmatpush2.bf16.msra.mxu1 %v5489_v37  ;;  %1711 = vmatprep.subr.bf16.mxu0 %v5500_v40  ;;  %v5587_v37 = vld [vmem:[#allocation2 + $0x52c] ss:$16 sps:$4 sm:$0xff]   ;;  %v5588_v40 = vld [vmem:[#allocation2 + $0x628] ss:$16 sps:$4 sm:$0xff]  }
  0xba   :  { %1684 = vmatprep.subr.bf16.mxu1 %v5497_v39  ;;  %v5585_v39 = vld [vmem:[#allocation2 + $0x528] ss:$16 sps:$4 sm:$0xff]  }
  0xbc   :  { %1712 = vmatpush1.bf16.msra.mxu0 %v5498_v42  ;;  %v5596_v42 = vld [vmem:[#allocation2 + $0x60c] ss:$16 sps:$4 sm:$0xff]  }
  0xbd   :  { %1685 = vmatpush2.bf16.msra.mxu1 %v5495_v41  ;;  %1713 = vmatprep.subr.bf16.mxu0 %v5503_v43  ;;  %v5593_v41 = vld [vmem:[#allocation2 + $0x50c] ss:$16 sps:$4 sm:$0xff]   ;;  %v5591_v43 = vld [vmem:[#allocation2 + $0x508] ss:$16 sps:$4 sm:$0xff]  }
  0xbe   :  { %1740 = vmatprep.subr.bf16.mxu1 %v5506_v44  ;;  %v5594_v44 = vld [vmem:[#allocation2 + $0x608] ss:$16 sps:$4 sm:$0xff]  }
  0xc0   :  { %1687 = vmatmul.mubr.bf16.vlgmr.msra.gmra.mxu1 %v6191_v4  ;;  %1714 = vmatpush2.bf16.msra.mxu0 %v5501_v45  ;;  %v5522_v4 = vld [vmem:[#allocation2 + $0x488] ss:$16 sps:$4 sm:$0xff]  }
  0xc1   :  { %1741 = vmatpush1.bf16.msra.mxu1 %v5504_v46  ;;  %1715 = vmatprep.subr.bf16.mxu0 %v5509_v47  ;;  %v1865_v45 = vld [vmem:[%s6721_s3 + $0xf8] sm:$0xff]  ;;  %v1864_v47 = vld [vmem:[%s6721_s3 + $0xf0] sm:$0xff] }
  0xc2   :  { %1742 = vmatprep.subr.bf16.mxu1 %v5512_v48  ;;  %1772 = vmatprep.mubr.bf16.mxu1 %v6201_v35  ;;  %v5536_v35 = vld [vmem:[#allocation2 + $0x44c] ss:$16 sps:$4 sm:$0xff]   ;;  %v1848_v48 = vld [vmem:[%s6721_s3 + $0x70] sm:$0xff] }
  0xc3   :  { %v1849_v46 = vld [vmem:[%s6721_s3 + $0x78] sm:$0xff] }
  0xc4   :  { %1716 = vmatpush2.bf16.msra.mxu0 %v5507_v50  ;;  %v1863_v50 = vld [vmem:[%s6721_s3 + $0xe8] sm:$0xff] }
  0xc5   :  { %1743 = vmatpush1.bf16.msra.mxu1 %v5510_v52  ;;  %1717 = vmatprep.subr.bf16.mxu0 %v5515_v53  ;;  %v5974_v52 = vld [vmem:[%s6718_s0 + $0x18] ss:$28 sps:$4 sm:$0xff]   ;;  %v1847_v53 = vld [vmem:[%s6721_s3 + $0x68] sm:$0xff] }
  0xc6   :  { %1744 = vmatprep.subr.bf16.mxu1 %v5518_v54  ;;  %v1862_v54 = vld [vmem:[%s6721_s3 + $0xe0] sm:$0xff] }
  0xc8   :  { %1718 = vmatpush2.bf16.msra.mxu0 %v5513_v55  ;;  %v1846_v55 = vld [vmem:[%s6721_s3 + $0x60] sm:$0xff] }
  0xc9   :  { %1745 = vmatpush1.bf16.msra.mxu1 %v5516_v56  ;;  %1719 = vmatprep.subr.bf16.mxu0 %v5521_v57  ;;  %v1845_v56 = vld [vmem:[%s6721_s3 + $0x58] sm:$0xff]  ;;  %v1860_v57 = vld [vmem:[%s6721_s3 + $0xd0] sm:$0xff] }
  0xca   :  { %1746 = vmatprep.subr.bf16.mxu1 %v5524_v58  ;;  %v1844_v58 = vld [vmem:[%s6721_s3 + $0x50] sm:$0xff] }
  0xcc   :  { %1720 = vmatpush2.bf16.msra.mxu0 %v5519_v59  ;;  %v1859_v59 = vld [vmem:[%s6721_s3 + $0xc8] sm:$0xff] }
  0xcd   :  { %1747 = vmatpush1.bf16.msra.mxu1 %v5522_v4  ;;  %1721 = vmatprep.subr.bf16.mxu0 %v5527_v49  ;;  %v1843_v4 = vld [vmem:[%s6721_s3 + $0x48] sm:$0xff]  ;;  %v1858_v49 = vld [vmem:[%s6721_s3 + $0xc0] sm:$0xff] }
  0xce   :  { %1748 = vmatprep.subr.bf16.mxu1 %v5530_v60  ;;  %v1842_v60 = vld [vmem:[%s6721_s3 + $0x40] sm:$0xff] }
  0xd0   :  { %1722 = vmatpush2.bf16.msra.mxu0 %v5525_v61  ;;  %v1857_v61 = vld [vmem:[%s6721_s3 + $0xb8] sm:$0xff] }
  0xd1   :  { %1749 = vmatpush1.bf16.msra.mxu1 %v5528_v62  ;;  %1723 = vmatprep.subr.bf16.mxu0 %v5533_v63  ;;  %v1841_v62 = vld [vmem:[%s6721_s3 + $0x38] sm:$0xff]  ;;  %v1856_v63 = vld [vmem:[%s6721_s3 + $0xb0] sm:$0xff] }
  0xd2   :  { %1750 = vmatprep.subr.bf16.mxu1 %v5536_v35  ;;  %v1840_v35 = vld [vmem:[%s6721_s3 + $0x30] sm:$0xff] }
  0xd4   :  { %1724 = vmatpush2.bf16.msra.mxu0 %v5531_v0  ;;  %v1855_v0 = vld [vmem:[%s6721_s3 + $0xa8] sm:$0xff] }
  0xd5   :  { %1751 = vmatpush1.bf16.msra.mxu1 %v5534_v1  ;;  %1725 = vmatprep.subr.bf16.mxu0 %v5539_v2  ;;  %v1839_v1 = vld [vmem:[%s6721_s3 + $0x28] sm:$0xff]  ;;  %v1854_v2 = vld [vmem:[%s6721_s3 + $0xa0] sm:$0xff] }
  0xd6   :  { %1752 = vmatprep.subr.bf16.mxu1 %v5542_v3  ;;  %v1838_v3 = vld [vmem:[%s6721_s3 + $0x20] sm:$0xff] }
  0xd8   :  { %1726 = vmatpush2.bf16.msra.mxu0 %v5537_v5  ;;  %v1853_v5 = vld [vmem:[%s6721_s3 + $0x98] sm:$0xff] }
  0xd9   :  { %1753 = vmatpush1.bf16.msra.mxu1 %v5540_v6  ;;  %1727 = vmatprep.subr.bf16.mxu0 %v5545_v7  ;;  %v1837_v6 = vld [vmem:[%s6721_s3 + $0x18] sm:$0xff]  ;;  %v1852_v7 = vld [vmem:[%s6721_s3 + $0x90] sm:$0xff] }
  0xda   :  { %1754 = vmatprep.subr.bf16.mxu1 %v5548_v8  ;;  %v1836_v8 = vld [vmem:[%s6721_s3 + $0x10] sm:$0xff] }
  0xdc   :  { %1728 = vmatpush2.bf16.msra.mxu0 %v5543_v9  ;;  %v1851_v9 = vld [vmem:[%s6721_s3 + $0x88] sm:$0xff] }
  0xdd   :  { %1755 = vmatpush1.bf16.msra.mxu1 %v5546_v10  ;;  %1783 = vmatprep.subr.bf16.mxu0 %v5554_v13  ;;  %v1835_v10 = vld [vmem:[%s6721_s3 + $0x8] sm:$0xff]  ;;  %v1834_v13 = vld [vmem:[%s6721_s3] sm:$0xff] }
  0xde   :  { %1756 = vmatprep.subr.bf16.mxu1 %v5551_v12  ;;  %v1850_v12 = vld [vmem:[%s6721_s3 + $0x80] sm:$0xff] }
  0xdf   :  { %1730 = vmatmul.mubr.bf16.vlgmr.msra.gmra.mxu0 %v5973_v20  ;;  %v1879_v20 = vld [vmem:[%s6721_s3 + $0x168] sm:$0xff] }
  0xe0   :  { %1784 = vmatpush1.bf16.msra.mxu0 %v5552_v16  ;;  %1815 = vmatprep.mubr.bf16.mxu0 %v6089_v14  ;;  %v5579_v14 = vld [vmem:[#allocation2 + $0x548] ss:$16 sps:$4 sm:$0xff]  }
  0xe1   :  { %1757 = vmatpush2.bf16.msra.mxu1 %v5549_v15  ;;  %1785 = vmatprep.subr.bf16.mxu0 %v5560_v18  ;;  %v1897_v15 = vld [vmem:[%s6721_s3 + $0x1f8] sm:$0xff]  ;;  %v1880_v18 = vld [vmem:[%s6721_s3 + $0x170] sm:$0xff] }
  0xe2   :  { %1758 = vmatprep.subr.bf16.mxu1 %v5557_v17  ;;  %v1881_v16 = vld [vmem:[%s6721_s3 + $0x178] sm:$0xff]  ;;  %v1896_v17 = vld [vmem:[%s6721_s3 + $0x1f0] sm:$0xff] }
  0xe4   :  { %1786 = vmatpush1.bf16.msra.mxu0 %v5558_v21  ;;  %v1894_v21 = vld [vmem:[%s6721_s3 + $0x1e0] sm:$0xff] }
  0xe5   :  { %1759 = vmatpush2.bf16.msra.mxu1 %v5555_v19  ;;  %1787 = vmatprep.subr.bf16.mxu0 %v5566_v23  ;;  %v1895_v19 = vld [vmem:[%s6721_s3 + $0x1e8] sm:$0xff]  ;;  %v1893_v23 = vld [vmem:[%s6721_s3 + $0x1d8] sm:$0xff] }
  0xe6   :  { %1760 = vmatprep.subr.bf16.mxu1 %v5563_v22  ;;  %v1878_v22 = vld [vmem:[%s6721_s3 + $0x160] sm:$0xff] }
  0xe8   :  { %1788 = vmatpush1.bf16.msra.mxu0 %v5564_v25  ;;  %v1892_v25 = vld [vmem:[%s6721_s3 + $0x1d0] sm:$0xff] }
  0xe9   :  { %1761 = vmatpush2.bf16.msra.mxu1 %v5561_v24  ;;  %1789 = vmatprep.subr.bf16.mxu0 %v5572_v27  ;;  %v1877_v24 = vld [vmem:[%s6721_s3 + $0x158] sm:$0xff]  ;;  %v1891_v27 = vld [vmem:[%s6721_s3 + $0x1c8] sm:$0xff] }
  0xea   :  { %1762 = vmatprep.subr.bf16.mxu1 %v5569_v26  ;;  %v1876_v26 = vld [vmem:[%s6721_s3 + $0x150] sm:$0xff] }
  0xec   :  { %1790 = vmatpush1.bf16.msra.mxu0 %v5570_v29  ;;  %v1890_v29 = vld [vmem:[%s6721_s3 + $0x1c0] sm:$0xff] }
  0xed   :  { %1763 = vmatpush2.bf16.msra.mxu1 %v5567_v28  ;;  %1791 = vmatprep.subr.bf16.mxu0 %v5578_v30  ;;  %v1875_v28 = vld [vmem:[%s6721_s3 + $0x148] sm:$0xff]  ;;  %v1889_v30 = vld [vmem:[%s6721_s3 + $0x1b8] sm:$0xff] }
  0xee   :  { %1764 = vmatprep.subr.bf16.mxu1 %v5575_v51  ;;  %v1874_v51 = vld [vmem:[%s6721_s3 + $0x140] sm:$0xff] }
  0xf0   :  { %1792 = vmatpush1.bf16.msra.mxu0 %v5576_v32  ;;  %v1888_v32 = vld [vmem:[%s6721_s3 + $0x1b0] sm:$0xff] }
  0xf1   :  { %1765 = vmatpush2.bf16.msra.mxu1 %v5573_v31  ;;  %1793 = vmatprep.subr.bf16.mxu0 %v5584_v34  ;;  %v1873_v31 = vld [vmem:[%s6721_s3 + $0x138] sm:$0xff]  ;;  %v1887_v34 = vld [vmem:[%s6721_s3 + $0x1a8] sm:$0xff] }
  0xf2   :  { %1766 = vmatprep.subr.bf16.mxu1 %v5581_v33  ;;  %v1872_v33 = vld [vmem:[%s6721_s3 + $0x130] sm:$0xff] }
  0xf4   :  { %1794 = vmatpush1.bf16.msra.mxu0 %v5582_v36  ;;  %v1886_v36 = vld [vmem:[%s6721_s3 + $0x1a0] sm:$0xff] }
  0xf5   :  { %1767 = vmatpush2.bf16.msra.mxu1 %v5579_v14  ;;  %1795 = vmatprep.subr.bf16.mxu0 %v5590_v38  ;;  %v1871_v14 = vld [vmem:[%s6721_s3 + $0x128] sm:$0xff]  ;;  %v1885_v38 = vld [vmem:[%s6721_s3 + $0x198] sm:$0xff] }
  0xf6   :  { %1768 = vmatprep.subr.bf16.mxu1 %v5587_v37  ;;  %v1870_v37 = vld [vmem:[%s6721_s3 + $0x120] sm:$0xff] }
  0xf8   :  { %1796 = vmatpush1.bf16.msra.mxu0 %v5588_v40  ;;  %v1884_v40 = vld [vmem:[%s6721_s3 + $0x190] sm:$0xff] }
  0xf9   :  { %1769 = vmatpush2.bf16.msra.mxu1 %v5585_v39  ;;  %1797 = vmatprep.subr.bf16.mxu0 %v5596_v42  ;;  %v1869_v39 = vld [vmem:[%s6721_s3 + $0x118] sm:$0xff]  ;;  %v1883_v42 = vld [vmem:[%s6721_s3 + $0x188] sm:$0xff] }
  0xfa   :  { %1770 = vmatprep.subr.bf16.mxu1 %v5593_v41  ;;  %v1868_v41 = vld [vmem:[%s6721_s3 + $0x110] sm:$0xff] }
  0xfc   :  { %1798 = vmatpush1.bf16.msra.mxu0 %v5594_v44  ;;  %v1882_v44 = vld [vmem:[%s6721_s3 + $0x180] sm:$0xff] }
  0xfd   :  { %1771 = vmatpush2.bf16.msra.mxu1 %v5591_v43  ;;  %5008 = vmatprep.subr.mxu0 %v1865_v45  ;;  %v1867_v43 = vld [vmem:[%s6721_s3 + $0x108] sm:$0xff]  ;;  %v1866_v45 = vld [vmem:[%s6721_s3 + $0x100] sm:$0xff] }
  0xfe   :  { %5046 = vmatprep.subr.mxu1 %v1897_v15 }
  0xff   :  { %1816 = vmatmul.mubr.bf16.vlgmr.msra.gmra.mxu0 %v5974_v52 }
 0x100   :  { %1773 = vmatmul.mubr.bf16.vlgmr.msra.gmra.mxu1 %v6211_v11  ;;  %5009 = vmatpush3.msra.mxu0 %v1849_v46  ;;  %v1861_v11 = vld [vmem:[%s6721_s3 + $0xd8] sm:$0xff]  ;;  %v306_v46 = vlaneseq }
 0x101   :  { %5010 = vmatprep.subr.mxu0 %v1864_v47  ;;  %5047 = vmatpush3.msra.mxu1 %v1881_v16 }
 0x102   :  { %5011 = vmatpush3.msra.mxu0 %v1848_v48  ;;  %5048 = vmatprep.subr.mxu1 %v1896_v17  ;;  %v6418_v48 = vshrl.u32 %v306_v46, 7 }
 0x103   :  { %5012 = vmatprep.subr.mxu0 %v1863_v50  ;;  %5049 = vmatpush3.msra.mxu1 %v1880_v18 }
 0x104   :  { %5013 = vmatpush3.msra.mxu0 %v1847_v53  ;;  %5050 = vmatprep.subr.mxu1 %v1895_v19  ;;  %v6421_v53 = vsub.s32 0, %v6418_v48 }
 0x105   :  { %5014 = vmatprep.subr.mxu0 %v1862_v54  ;;  %5051 = vmatpush3.msra.mxu1 %v1879_v20  ;;  %v304_v54 = vld [vmem:[%s6720_s2] sm:$0xf] }
 0x106   :  { %5015 = vmatpush3.msra.mxu0 %v1846_v55  ;;  %5052 = vmatprep.subr.mxu1 %v1894_v21  ;;  %v6427_v55 = vsub.s32 1, %v6418_v48 }
 0x107   :  { %5016 = vmatprep.subr.mxu0 %v1861_v11  ;;  %5053 = vmatpush3.msra.mxu1 %v1878_v22 }
 0x108   :  { %5017 = vmatpush3.msra.mxu0 %v1845_v56  ;;  %5054 = vmatprep.subr.mxu1 %v1893_v23 }
 0x109   :  { %5018 = vmatprep.subr.mxu0 %v1860_v57  ;;  %5055 = vmatpush3.msra.mxu1 %v1877_v24  ;;  %v309_v57 = vrot.slane %v304_v54, %v6421_v53 }
 0x10a   :  { %5019 = vmatpush3.msra.mxu0 %v1844_v58  ;;  %5056 = vmatprep.subr.mxu1 %v1892_v25  ;;  %v313_v58 = vrot.slane %v304_v54, %v6427_v55 }
 0x10b   :  { %5020 = vmatprep.subr.mxu0 %v1859_v59  ;;  %5057 = vmatpush3.msra.mxu1 %v1876_v26 }
 0x10c   :  { %5021 = vmatpush3.msra.mxu0 %v1843_v4  ;;  %5058 = vmatprep.subr.mxu1 %v1891_v27 }
 0x10d   :  { %5022 = vmatprep.subr.mxu0 %v1858_v49  ;;  %5059 = vmatpush3.msra.mxu1 %v1875_v28  ;;  %v2070_v28 = vld [vmem:[%s6723_s5 + $0x78] sm:$0xff] }
 0x10e   :  { %5023 = vmatpush3.msra.mxu0 %v1842_v60  ;;  %5060 = vmatprep.subr.mxu1 %v1890_v29  ;;  %v6437_v29 = vld [vmem:[%s6723_s5 + $0x70] sm:$0xff] }
 0x10f   :  { %5024 = vmatprep.subr.mxu0 %v1857_v61  ;;  %5061 = vmatpush3.msra.mxu1 %v1874_v51  ;;  %v6441_v51 = vsub.s32 2, %v6418_v48 }
 0x110   :  { %5025 = vmatpush3.msra.mxu0 %v1841_v62  ;;  %5062 = vmatprep.subr.mxu1 %v1889_v30 }
 0x111   :  { %5026 = vmatprep.subr.mxu0 %v1856_v63  ;;  %5063 = vmatpush3.msra.mxu1 %v1873_v31 }
 0x112   :  { %5027 = vmatpush3.msra.mxu0 %v1840_v35  ;;  %5064 = vmatprep.subr.mxu1 %v1888_v32  ;;  %v6447_v32 = vsub.s32 3, %v6418_v48 }
 0x113   :  { %5028 = vmatprep.subr.mxu0 %v1855_v0  ;;  %5065 = vmatpush3.msra.mxu1 %v1872_v33  ;;  %v2068_v33 = vld [vmem:[%s6723_s5 + $0x68] sm:$0xff] }
 0x114   :  { %5029 = vmatpush3.msra.mxu0 %v1839_v1  ;;  %5066 = vmatprep.subr.mxu1 %v1887_v34  ;;  %v317_v34 = vrot.slane %v304_v54, %v6441_v51 }
 0x115   :  { %5030 = vmatprep.subr.mxu0 %v1854_v2  ;;  %5067 = vmatpush3.msra.mxu1 %v1871_v14 }
 0x116   :  { %5031 = vmatpush3.msra.mxu0 %v1838_v3  ;;  %5068 = vmatprep.subr.mxu1 %v1886_v36 }
 0x117   :  { %5032 = vmatprep.subr.mxu0 %v1853_v5  ;;  %5069 = vmatpush3.msra.mxu1 %v1870_v37  ;;  %v321_v37 = vrot.slane %v304_v54, %v6447_v32 }
 0x118   :  { %5033 = vmatpush3.msra.mxu0 %v1837_v6  ;;  %5070 = vmatprep.subr.mxu1 %v1885_v38  ;;  %v2067_v38 = vld [vmem:[%s6723_s5 + $0x60] sm:$0xff] }
 0x119   :  { %5034 = vmatprep.subr.mxu0 %v1852_v7  ;;  %5071 = vmatpush3.msra.mxu1 %v1869_v39 }
 0x11a   :  { %5035 = vmatpush3.msra.mxu0 %v1836_v8  ;;  %5072 = vmatprep.subr.mxu1 %v1884_v40 }
 0x11b   :  { %5036 = vmatprep.subr.mxu0 %v1851_v9  ;;  %5073 = vmatpush3.msra.mxu1 %v1868_v41 }
 0x11c   :  { %5037 = vmatpush3.msra.mxu0 %v1835_v10  ;;  %5074 = vmatprep.subr.mxu1 %v1883_v42 }
 0x11d   :  { %5038 = vmatprep.subr.mxu0 %v1850_v12  ;;  %5075 = vmatpush3.msra.mxu1 %v1867_v43 }
 0x11e   :  { %5039 = vmatpush3.msra.mxu0 %v1834_v13  ;;  %5076 = vmatprep.subr.mxu1 %v1882_v44  ;;  %v2066_v44 = vld [vmem:[%s6723_s5 + $0x58] sm:$0xff] }
 0x11f   :  { %5077 = vmatpush3.msra.mxu1 %v1866_v45  ;;  %v1516_v50 = vpop.f32.mrf.mxu0  ;;  %5164 = vmatprep.subr.msk.mxu0 %vm2073_vm0, %v2070_v28 }
 0x120   :  { %v1559_v47 = vpop.f32.mrf.mxu1  ;;  %v1517_v49 = vadd.f32 %v1516_v50, %v309_v57  ;;  %5199 = vmatprep.subr.mxu1 %v2070_v28 }
 0x121   :  { %v1518_v11 = vpop.f32.mrf.mxu0 }
 0x122   :  { %v1561_v52 = vpop.f32.mrf.mxu1  ;;  %v1519_v61 = vadd.f32 %v1518_v11, %v313_v58  ;;  %v1560_v63 = vadd.f32 %v1559_v47, %v1517_v49 }
 0x123   :  { %v1520_v59 = vpop.f32.mrf.mxu0 }
 0x124   :  { %v1563_v56 = vpop.f32.mrf.mxu1  ;;  %v1521_v35 = vadd.f32 %v1520_v59, %v309_v57  ;;  %v1562_v2 = vadd.f32 %v1561_v52, %v1519_v61 }
 0x125   :  { %v1522_v62 = vpop.f32.mrf.mxu0 }
 0x126   :  { %v1565_v4 = vpop.f32.mrf.mxu1  ;;  %v1523_v3 = vadd.f32 %v1522_v62, %v313_v58  ;;  %v1564_v7 = vadd.f32 %v1563_v56, %v1521_v35 }
 0x128   :  { %v1566_v13 = vadd.f32 %v1565_v4, %v1523_v3  ;;  %v2065_v4 = vld [vmem:[%s6723_s5 + $0x50] sm:$0xff]  ;;  %v2064_v3 = vld [vmem:[%s6723_s5 + $0x48] sm:$0xff] }
 0x140   :  { %v1645_v60 = vpop.f32.mrf.mxu1 }
 0x142   :  { %v1647_v0 = vpop.f32.mrf.mxu1 }
 0x144   :  { %v1649_v9 = vpop.f32.mrf.mxu1 }
 0x146   :  { %v1651_v20 = vpop.f32.mrf.mxu1 }
 0x15f   :  { %v1602_v1 = vpop.f32.mrf.mxu0 }
 0x160   :  { %v1603_v5 = vadd.f32 %v1602_v1, %v1560_v63 }
 0x161   :  { %v1604_v6 = vpop.f32.mrf.mxu0 }
 0x162   :  { %v1605_v8 = vadd.f32 %v1604_v6, %v1562_v2  ;;  %v1646_v10 = vadd.f32 %v1645_v60, %v1603_v5 }
 0x163   :  { %v1606_v12 = vpop.f32.mrf.mxu0 }
 0x164   :  { %v1648_v15 = vadd.f32 %v1647_v0, %v1605_v8  ;;  %v1607_v16 = vadd.f32 %v1606_v12, %v1564_v7  ;;  %v1826_v21 = vmax.f32 %v1646_v10, 0.0  ;;  %v2063_v10 = vld [vmem:[%s6723_s5 + $0x40] sm:$0xff] }
 0x165   :  { %v1608_v17 = vpop.f32.mrf.mxu0 }
 0x166   :  { %v1827_v18 = vmax.f32 %v1648_v15, 0.0  ;;  %v1609_v19 = vadd.f32 %v1608_v17, %v1566_v13  ;;  %v1650_v22 = vadd.f32 %v1649_v9, %v1607_v16  ;;  %v2062_v13 = vld [vmem:[%s6723_s5 + $0x38] sm:$0xff]  ;;  %v2061_v15 = vld [vmem:[%s6723_s5 + $0x30] sm:$0xff]  ;;  %v2060_v16 = vld [vmem:[%s6723_s5 + $0x28] sm:$0xff] }
 0x167   :  { %v2059_v17 = vld [vmem:[%s6723_s5 + $0x20] sm:$0xff] }
 0x168   :  { %v1652_v23 = vadd.f32 %v1651_v20, %v1609_v19  ;;  %1969 = vmatprep.mubr.f32.mxu0 %v1827_v18  ;;  %v1830_v25 = vmax.f32 %v1650_v22, 0.0  ;;  %v2058_v18 = vld [vmem:[%s6723_s5 + $0x18] sm:$0xff]  ;;  %v2057_v19 = vld [vmem:[%s6723_s5 + $0x10] sm:$0xff]  ;;  %v2056_v20 = vld [vmem:[%s6723_s5 + $0x8] sm:$0xff] }
 0x169   :  { %1970 = vmatmul.mubr.f32.vlgmr.msra.gmra.mxu0 %v1826_v21  ;;  %v2055_v21 = vld [vmem:[%s6723_s5] sm:$0xff] }
 0x16a   :  { %v1831_v24 = vmax.f32 %v1652_v23, 0.0  ;;  %5165 = vmatpush3.xpose.msk.msra.mxu0 %vm2073_vm0, %v2070_v28 }
 0x16b   :  { %5166 = vmatprep.subr.msk.mxu0 %vm2073_vm0, %v6437_v29 }
 0x16c   :  { %1974 = vmatprep.mubr.f32.mxu0 %v1831_v24 }
 0x16d   :  { %1975 = vmatmul.mubr.f32.gmra.mxu0 %v1830_v25 }
 0x16e   :  { %5167 = vmatpush3.xpose.msk.msra.mxu0 %vm2073_vm0, %v6437_v29 }
 0x16f   :  { %5168 = vmatprep.subr.msk.mxu0 %vm2073_vm0, %v2068_v33 }
 0x172   :  { %5169 = vmatpush3.xpose.msk.msra.mxu0 %vm2073_vm0, %v2068_v33 }
 0x173   :  { %5170 = vmatprep.subr.msk.mxu0 %vm2073_vm0, %v2067_v38 }
 0x176   :  { %5171 = vmatpush3.xpose.msk.msra.mxu0 %vm2073_vm0, %v2067_v38 }
 0x177   :  { %5172 = vmatprep.subr.msk.mxu0 %vm2073_vm0, %v2066_v44 }
 0x17a   :  { %5173 = vmatpush3.xpose.msk.msra.mxu0 %vm2073_vm0, %v2066_v44 }
 0x17b   :  { %5174 = vmatprep.subr.msk.mxu0 %vm2073_vm0, %v2065_v4 }
 0x17e   :  { %5175 = vmatpush3.xpose.msk.msra.mxu0 %vm2073_vm0, %v2065_v4 }
 0x17f   :  { %5176 = vmatprep.subr.msk.mxu0 %vm2073_vm0, %v2064_v3 }
 0x180   :  { %v1688_v26 = vpop.f32.mrf.mxu1 }
 0x181   :  { %v1689_v39 = vadd.f32 %v1688_v26, %v317_v34  ;;  %v4742_v26 = vld [vmem:[%s6722_s4] ss:$0 sm:$0xff] }
 0x182   :  { %v1690_v30 = vpop.f32.mrf.mxu1  ;;  %5177 = vmatpush3.xpose.msk.msra.mxu0 %vm2073_vm0, %v2064_v3 }
 0x183   :  { %v1691_v42 = vadd.f32 %v1690_v30, %v321_v37  ;;  %5178 = vmatprep.subr.msk.mxu0 %vm2073_vm0, %v2063_v10 }
 0x184   :  { %v1692_v14 = vpop.f32.mrf.mxu1 }
 0x185   :  { %v1693_v50 = vadd.f32 %v1692_v14, %v317_v34 }
 0x186   :  { %v1694_v40 = vpop.f32.mrf.mxu1  ;;  %5179 = vmatpush3.xpose.msk.msra.mxu0 %vm2073_vm0, %v2063_v10 }
 0x187   :  { %v1695_v57 = vadd.f32 %v1694_v40, %v321_v37  ;;  %5180 = vmatprep.subr.msk.mxu0 %vm2073_vm0, %v2062_v13 }
 0x18a   :  { %5181 = vmatpush3.xpose.msk.msra.mxu0 %vm2073_vm0, %v2062_v13 }
 0x18b   :  { %5182 = vmatprep.subr.msk.mxu0 %vm2073_vm0, %v2061_v15 }
 0x18e   :  { %5183 = vmatpush3.xpose.msk.msra.mxu0 %vm2073_vm0, %v2061_v15 }
 0x18f   :  { %5184 = vmatprep.subr.msk.mxu0 %vm2073_vm0, %v2060_v16 }
 0x192   :  { %5185 = vmatpush3.xpose.msk.msra.mxu0 %vm2073_vm0, %v2060_v16 }
 0x193   :  { %5186 = vmatprep.subr.msk.mxu0 %vm2073_vm0, %v2059_v17 }
 0x196   :  { %5187 = vmatpush3.xpose.msk.msra.mxu0 %vm2073_vm0, %v2059_v17 }
 0x197   :  { %5188 = vmatprep.subr.msk.mxu0 %vm2073_vm0, %v2058_v18 }
 0x19a   :  { %5189 = vmatpush3.xpose.msk.msra.mxu0 %vm2073_vm0, %v2058_v18 }
 0x19b   :  { %5190 = vmatprep.subr.msk.mxu0 %vm2073_vm0, %v2057_v19 }
 0x19e   :  { %5191 = vmatpush3.xpose.msk.msra.mxu0 %vm2073_vm0, %v2057_v19 }
 0x19f   :  { %v1731_v27 = vpop.f32.mrf.mxu0  ;;  %5192 = vmatprep.subr.msk.mxu0 %vm2073_vm0, %v2056_v20 }
 0x1a0   :  { %v1732_v43 = vadd.f32 %v1731_v27, %v1689_v39 }
 0x1a1   :  { %v1733_v31 = vpop.f32.mrf.mxu0 }
 0x1a2   :  { %v1734_v52 = vadd.f32 %v1733_v31, %v1691_v42  ;;  %5193 = vmatpush3.xpose.msk.msra.mxu0 %vm2073_vm0, %v2056_v20 }
 0x1a3   :  { %v1735_v36 = vpop.f32.mrf.mxu0  ;;  %5194 = vmatprep.subr.msk.mxu0 %vm2073_vm0, %v2055_v21 }
 0x1a4   :  { %v1736_v58 = vadd.f32 %v1735_v36, %v1693_v50 }
 0x1a5   :  { %v1737_v41 = vpop.f32.mrf.mxu0 }
 0x1a6   :  { %v1738_v62 = vadd.f32 %v1737_v41, %v1695_v57  ;;  %5195 = vmatpush3.xpose.msk.msra.mxu0 %vm2073_vm0, %v2055_v21 }
 0x1bf   :  { %v1817_v47 = vpop.f32.mrf.mxu0 }
 0x1c0   :  { %v1774_v45 = vpop.f32.mrf.mxu1 }
 0x1c1   :  { %v1775_v54 = vadd.f32 %v1774_v45, %v1732_v43  ;;  %v1819_v56 = vpop.f32.mrf.mxu0  ;;  %v4761_v45 = vld [vmem:[%s6724_s6] ss:$0 sm:$0xff] }
 0x1c2   :  { %v1776_v11 = vpop.f32.mrf.mxu1 }
 0x1c3   :  { %v1777_v59 = vadd.f32 %v1776_v11, %v1734_v52  ;;  %v1818_v49 = vadd.f32 %v1817_v47, %v1775_v54  ;;  %v1821_v61 = vpop.f32.mrf.mxu0 }
 0x1c4   :  { %v1778_v60 = vpop.f32.mrf.mxu1 }
 0x1c5   :  { %v1820_v63 = vadd.f32 %v1819_v56, %v1777_v59  ;;  %v1779_v35 = vadd.f32 %v1778_v60, %v1736_v58  ;;  %v1828_v5 = vmax.f32 %v1818_v49, 0.0  ;;  %v1823_v7 = vpop.f32.mrf.mxu0 }
 0x1c6   :  { %v1780_v0 = vpop.f32.mrf.mxu1 }
 0x1c7   :  { %v1829_v1 = vmax.f32 %v1820_v63, 0.0  ;;  %v1781_v2 = vadd.f32 %v1780_v0, %v1738_v62  ;;  %v1822_v6 = vadd.f32 %v1821_v61, %v1779_v35 }
 0x1c9   :  { %v1824_v8 = vadd.f32 %v1823_v7, %v1781_v2  ;;  %2044 = vmatprep.mubr.f32.mxu1 %v1829_v1  ;;  %v1832_v12 = vmax.f32 %v1822_v6, 0.0 }
 0x1ca   :  { %2045 = vmatmul.mubr.f32.vlgmr.msra.gmra.mxu1 %v1828_v5 }
 0x1cb   :  { %v1833_v9 = vmax.f32 %v1824_v8, 0.0  ;;  %5200 = vmatpush3.msra.mxu1 %v2070_v28 }
 0x1cc   :  { %5201 = vmatprep.subr.mxu1 %v6437_v29 }
 0x1cd   :  { %2049 = vmatprep.mubr.f32.mxu1 %v1833_v9  ;;  %5202 = vmatpush3.msra.mxu1 %v6437_v29 }
 0x1ce   :  { %2050 = vmatmul.mubr.f32.gmra.mxu1 %v1832_v12  ;;  %5203 = vmatprep.subr.mxu1 %v2068_v33 }
 0x1cf   :  { %5204 = vmatpush3.msra.mxu1 %v2068_v33 }
 0x1d0   :  { %5205 = vmatprep.subr.mxu1 %v2067_v38 }
 0x1d1   :  { %5206 = vmatpush3.msra.mxu1 %v2067_v38 }
 0x1d2   :  { %5207 = vmatprep.subr.mxu1 %v2066_v44 }
 0x1d3   :  { %5208 = vmatpush3.msra.mxu1 %v2066_v44 }
 0x1d4   :  { %5209 = vmatprep.subr.mxu1 %v2065_v4 }
 0x1d5   :  { %5210 = vmatpush3.msra.mxu1 %v2065_v4  ;;  %v2227_v4 = vand.u32 127, %v306_v46 }
 0x1d6   :  { %5211 = vmatprep.subr.mxu1 %v2064_v3 }
 0x1d7   :  { %5212 = vmatpush3.msra.mxu1 %v2064_v3 }
 0x1d8   :  { %5213 = vmatprep.subr.mxu1 %v2063_v10 }
 0x1d9   :  { %5214 = vmatpush3.msra.mxu1 %v2063_v10  ;;  %v2384_v10 = vld [vmem:[%s6725_s7 + $0xe8] sm:$0xff] }
 0x1da   :  { %5215 = vmatprep.subr.mxu1 %v2062_v13 }
 0x1db   :  { %5216 = vmatpush3.msra.mxu1 %v2062_v13 }
 0x1dc   :  { %5217 = vmatprep.subr.mxu1 %v2061_v15 }
 0x1dd   :  { %5218 = vmatpush3.msra.mxu1 %v2061_v15 }
 0x1de   :  { %5219 = vmatprep.subr.mxu1 %v2060_v16 }
 0x1df   :  { %5220 = vmatpush3.msra.mxu1 %v2060_v16 }
 0x1e0   :  { %5221 = vmatprep.subr.mxu1 %v2059_v17 }
 0x1e1   :  { %5222 = vmatpush3.msra.mxu1 %v2059_v17 }
 0x1e2   :  { %5223 = vmatprep.subr.mxu1 %v2058_v18 }
 0x1e3   :  { %5224 = vmatpush3.msra.mxu1 %v2058_v18 }
 0x1e4   :  { %5225 = vmatprep.subr.mxu1 %v2057_v19 }
 0x1e5   :  { %5226 = vmatpush3.msra.mxu1 %v2057_v19 }
 0x1e6   :  { %5227 = vmatprep.subr.mxu1 %v2056_v20 }
 0x1e7   :  { %5228 = vmatpush3.msra.mxu1 %v2056_v20 }
 0x1e8   :  { %5229 = vmatprep.subr.mxu1 %v2055_v21 }
 0x1e9   :  { %5230 = vmatpush3.msra.mxu1 %v2055_v21 }
 0x1ea   :  { %2429 = vmatprep.subr.mxu1 %v2384_v10  ;;  %v2358_v10 = vld [vmem:[%s6725_s7 + $0x18] sm:$0xff] }
 0x229   :  { %v5040_v22 = vpop.f32.mrf.mxu0 }
 0x22b   :  { %v5041_v23 = vpop.f32.mrf.mxu0 }
 0x22c   :  { %v5042_v25 = vadd.f32 %v5041_v23, %v5040_v22  ;;  %v6090_v22 = vmov 1.0  }
 0x22d   :  { %v5043_v24 = vpop.f32.mrf.mxu0 }
 0x22e   :  { %v1972_v30 = vadd.f32 %v5042_v25, %v4742_v26  ;;  %v2380_v25 = vld [vmem:[%s6725_s7 + $0xc8] sm:$0xff] }
 0x22f   :  { %v5044_v27 = vpop.f32.mrf.mxu0 }
 0x230   :  { %v5045_v31 = vadd.f32 %v5044_v27, %v5043_v24  ;;  %v2383_v24 = vld [vmem:[%s6725_s7 + $0xe0] sm:$0xff]  ;;  %v2376_v27 = vld [vmem:[%s6725_s7 + $0xa8] sm:$0xff] }
 0x232   :  { %v1977_v37 = vadd.f32 %v5045_v31, %v4742_v26  ;;  %v2379_v26 = vld [vmem:[%s6725_s7 + $0xc0] sm:$0xff]  ;;  %v2368_v31 = vld [vmem:[%s6725_s7 + $0x68] sm:$0xff] }
 0x28a   :  { %v5078_v28 = vpop.f32.mrf.mxu1 }
 0x28c   :  { %v5079_v29 = vpop.f32.mrf.mxu1 }
 0x28d   :  { %v5080_v33 = vadd.f32 %v5079_v29, %v5078_v28  ;;  %v2375_v28 = vld [vmem:[%s6725_s7 + $0xa0] sm:$0xff]  ;;  %v2372_v29 = vld [vmem:[%s6725_s7 + $0x88] sm:$0xff] }
 0x28e   :  { %v5081_v34 = vpop.f32.mrf.mxu1 }
 0x28f   :  { %v6528_v14 = vadd.f32 %v5080_v33, %v1972_v30  ;;  %v2371_v30 = vld [vmem:[%s6725_s7 + $0x80] sm:$0xff] }
 0x290   :  { %v5082_v36 = vpop.f32.mrf.mxu1  ;;  %v2367_v33 = vld [vmem:[%s6725_s7 + $0x60] sm:$0xff] }
 0x291   :  { %v5083_v38 = vadd.f32 %v5082_v36, %v5081_v34  ;;  %5196 = vmatprep.mubr.msk.f32.mxu0 %vm2073_vm0, %v6528_v14  ;;  %v2071_v39 = vmul.f32 %v6528_v14, %v6528_v14  ;;  %v2364_v34 = vld [vmem:[%s6725_s7 + $0x48] sm:$0xff]  ;;  %v2363_v36 = vld [vmem:[%s6725_s7 + $0x40] sm:$0xff] }
 0x293   :  { %v6534_v40 = vadd.f32 %v5083_v38, %v1977_v37  ;;  %v2074_v41 = vsel %vm2073_vm0, %v2071_v39, 0.0  ;;  %v2360_v37 = vld [vmem:[%s6725_s7 + $0x28] sm:$0xff]  ;;  %v2359_v38 = vld [vmem:[%s6725_s7 + $0x20] sm:$0xff] }
 0x294   :  { %2075 = vadd.xlane.f32.xlu0 %v2074_v41  ;;  %v2356_v39 = vld [vmem:[%s6725_s7 + $0x8] sm:$0xff]  ;;  %v2355_v41 = vld [vmem:[%s6725_s7] sm:$0xff] }
 0x295   :  { %5197 = vmatmul.mubr.msk.f32.vlgmr.msra.gmra.mxu0 %vm2073_vm0, %v6534_v40  ;;  %v2072_v42 = vmul.f32 %v6534_v40, %v6534_v40 }
 0x297   :  { %v2077_v43 = vsel %vm2073_vm0, %v2072_v42, 0.0  ;;  %v2386_v42 = vld [vmem:[%s6725_s7 + $0xf8] sm:$0xff] }
 0x298   :  { %2078 = vadd.xlane.f32.xlu0 %v2077_v43  ;;  %v6091_v43 = vmov 0.0  }
 0x31d   :  { %v2076_v44 = vpop.xlane.xlu0 %2075 }
 0x31e   :  { %v2216_v52 = vadd.f32 %v4761_v45, %v2076_v44  ;;  %v5597_v44 = vld [vmem:[#allocation5 + $0x188] ss:$28 sps:$4 sm:$0xff]  }
 0x321   :  { %v2079_v11 = vpop.xlane.xlu0 %2078 }
 0x322   :  { %v2217_v58 = vadd.f32 %v4761_v45, %v2079_v11  ;;  %v5599_v45 = vld [vmem:[#allocation5 + $0x18c] ss:$28 sps:$4 sm:$0xff]  }
 0x323   :  { %4024 = vmatprep.subr.bf16.mxu0 %v5599_v45  ;;  %v5651_v45 = vld [vmem:[#allocation5 + $0x380] ss:$28 sps:$4 sm:$0xff]  }
 0x324   :  { %4025 = vmatpush1.bf16.msra.mxu0 %v5597_v44  ;;  %v5653_v44 = vld [vmem:[#allocation5 + $0x384] ss:$28 sps:$4 sm:$0xff]  }
 0x355   :  { %v5198_v47 = vpop.f32.mrf.mxu0 }
 0x356   :  { %v2219_v56 = vmul.f32 2.0, %v5198_v47  ;;  %v5602_v47 = vld [vmem:[#allocation5 + $0x154] ss:$28 sps:$4 sm:$0xff]  }
 0x357   :  { %v2200_v50 = vpop.f32.mrf.mxu0  ;;  %4026 = vmatprep.subr.bf16.mxu0 %v5602_v47  ;;  %v5659_v47 = vld [vmem:[#allocation5 + $0x6cc] ss:$28 sps:$4 sm:$0xff]  }
 0x358   :  { %v2218_v54 = vmul.f32 2.0, %v2200_v50  ;;  %v2221_v59 = vsub.f32 %v2217_v58, %v2219_v56  ;;  %v5600_v50 = vld [vmem:[#allocation5 + $0x150] ss:$28 sps:$4 sm:$0xff]  }
 0x359   :  { %4027 = vmatpush1.bf16.msra.mxu0 %v5600_v50  ;;  %v2385_v56 = vld [vmem:[%s6725_s7 + $0xf0] sm:$0xff]  ;;  %v5657_v50 = vld [vmem:[#allocation5 + $0x6c8] ss:$28 sps:$4 sm:$0xff]  }
 0x35a   :  { %v2220_v57 = vsub.f32 %v2216_v52, %v2218_v54  ;;  %v5605_v52 = vld [vmem:[#allocation5 + $0x11c] ss:$28 sps:$4 sm:$0xff]  }
 0x35b   :  { %v5603_v54 = vld [vmem:[#allocation5 + $0x118] ss:$28 sps:$4 sm:$0xff]   ;;  %4028 = vmatprep.subr.bf16.mxu0 %v5605_v52 }
 0x35c   :  { %2222 = vmin.xlane.f32.xlu1 %v2220_v57  ;;  %v5665_v52 = vld [vmem:[#allocation5 + $0x694] ss:$28 sps:$4 sm:$0xff]  }
 0x35d   :  { %4029 = vmatpush1.bf16.msra.mxu0 %v5603_v54  ;;  %v5663_v54 = vld [vmem:[#allocation5 + $0x690] ss:$28 sps:$4 sm:$0xff]  }
 0x360   :  { %2224 = vmin.xlane.f32.xlu1 %v2221_v59 }
 0x3e5   :  { %v2223_v49 = vpop.xlane.xlu1 %2222 }
 0x3e6   :  { %vm2228_vm1 = vcmp.le.f32.partialorder %v2220_v57, %v2223_v49  ;;  %v5608_v57 = vld [vmem:[#allocation5 + $0xe4] ss:$28 sps:$4 sm:$0xff]   ;;  %v2381_v49 = vld [vmem:[%s6725_s7 + $0xd0] sm:$0xff] }
 0x3e7   :  { %v2230_v60 = vsel %vm2228_vm1, %v2227_v4, 128  ;;  %4030 = vmatprep.subr.bf16.mxu0 %v5608_v57  ;;  %v5671_v57 = vld [vmem:[#allocation5 + $0x65c] ss:$28 sps:$4 sm:$0xff]  }
 0x3e8   :  { %v2233_v61 = vshra.s32 %v2230_v60, 16  ;;  %v2232_v2 = vand.u32 65535, %v2230_v60  ;;  %v2378_v60 = vld [vmem:[%s6725_s7 + $0xb8] sm:$0xff] }
 0x3e9   :  { %v2225_v62 = vpop.xlane.xlu1 %2224 }
 0x3ea   :  { %vm2229_vm2 = vcmp.le.f32.partialorder %v2221_v59, %v2225_v62  ;;  %v2235_v63 = vcvt.s32.f32 %v2233_v61  ;;  %v2234_v6 = vcvt.s32.f32 %v2232_v2  ;;  %v2382_v59 = vld [vmem:[%s6725_s7 + $0xd8] sm:$0xff]  ;;  %v2377_v61 = vld [vmem:[%s6725_s7 + $0xb0] sm:$0xff]  ;;  %v5614_v62 = vld [vmem:[#allocation5 + $0xac] ss:$28 sps:$4 sm:$0xff]  }
 0x3eb   :  { %v2231_v35 = vsel %vm2229_vm2, %v2227_v4, 128  ;;  %v2370_v2 = vld [vmem:[%s6725_s7 + $0x78] sm:$0xff] }
 0x3ec   :  { %2236 = vmin.xlane.f32.xlu0 %v2235_v63  ;;  %v2247_v0 = vshra.s32 %v2231_v35, 16  ;;  %v2246_v3 = vand.u32 65535, %v2231_v35  ;;  %v5612_v35 = vld [vmem:[#allocation5 + $0xa8] ss:$28 sps:$4 sm:$0xff]  }
 0x3ee   :  { %v2249_v1 = vcvt.s32.f32 %v2247_v0  ;;  %v2248_v8 = vcvt.s32.f32 %v2246_v3  ;;  %v2373_v0 = vld [vmem:[%s6725_s7 + $0x90] sm:$0xff] }
 0x3ef   :  { %v2369_v3 = vld [vmem:[%s6725_s7 + $0x70] sm:$0xff] }
 0x3f0   :  { %2250 = vmin.xlane.f32.xlu1 %v2249_v1 }
 0x475   :  { %v2237_v5 = vpop.xlane.xlu0 %2236 }
 0x476   :  { %vm2238_vm3 = vcmp.eq.f32.partialorder %v2235_v63, %v2237_v5  ;;  %v2243_v12 = vcvt.f32.s32 %v2237_v5  ;;  %v2374_v63 = vld [vmem:[%s6725_s7 + $0x98] sm:$0xff] }
 0x477   :  { %v2239_v7 = vsel %vm2238_vm3, %v2234_v6, inf  ;;  %v2366_v5 = vld [vmem:[%s6725_s7 + $0x58] sm:$0xff]  ;;  %v5618_v6 = vld [vmem:[#allocation5 + $0x70] ss:$28 sps:$4 sm:$0xff]  }
 0x478   :  { %2240 = vmin.xlane.f32.xlu0 %v2239_v7  ;;  %v2244_v15 = vshll.u32 %v2243_v12, 16  ;;  %v2365_v7 = vld [vmem:[%s6725_s7 + $0x50] sm:$0xff] }
 0x479   :  { %v2251_v46 = vpop.xlane.xlu1 %2250  ;;  %v5624_v12 = vld [vmem:[#allocation5 + $0x38] ss:$28 sps:$4 sm:$0xff]  }
 0x47a   :  { %vm2252_vm4 = vcmp.eq.f32.partialorder %v2249_v1, %v2251_v46  ;;  %v2257_v16 = vcvt.f32.s32 %v2251_v46  ;;  %v5620_v1 = vld [vmem:[#allocation5 + $0x74] ss:$28 sps:$4 sm:$0xff]   ;;  %v5626_v46 = vld [vmem:[#allocation5 + $0x3c] ss:$28 sps:$4 sm:$0xff]  }
 0x47b   :  { %v2253_v9 = vsel %vm2252_vm4, %v2248_v8, inf  ;;  %v2362_v8 = vld [vmem:[%s6725_s7 + $0x38] sm:$0xff] }
 0x47c   :  { %2254 = vmin.xlane.f32.xlu1 %v2253_v9  ;;  %v2258_v20 = vshll.u32 %v2257_v16, 16  ;;  %v2361_v9 = vld [vmem:[%s6725_s7 + $0x30] sm:$0xff]  ;;  %v5609_v16 = vld [vmem:[#allocation5 + $0x508] ss:$28 sps:$4 sm:$0xff]  }
 0x501   :  { %v2241_v13 = vpop.xlane.xlu0 %2240 }
 0x502   :  { %v2242_v17 = vcvt.f32.s32 %v2241_v13  ;;  %v2357_v13 = vld [vmem:[%s6725_s7 + $0x10] sm:$0xff] }
 0x504   :  { %v2245_v18 = vadd.s32 %v2244_v15, %v2242_v17  ;;  %v5611_v15 = vld [vmem:[#allocation5 + $0x50c] ss:$28 sps:$4 sm:$0xff]   ;;  %v5617_v17 = vld [vmem:[#allocation5 + $0x4d4] ss:$28 sps:$4 sm:$0xff]  }
 0x505   :  { %v2255_v19 = vpop.xlane.xlu1 %2254 }
 0x506   :  { %2260 = vst [vmem:[#allocation10] sm:$0xff] %v2245_v18  ;;  %v2256_v21 = vcvt.f32.s32 %v2255_v19  ;;  %vm2262_vm5 = vcmp.eq.s32.totalorder %v2227_v4, %v2245_v18  ;;  %v5632_v18 = vld [vmem:[#allocation5 + $0x4] ss:$28 sps:$4 sm:$0xff]  }
 0x507   :  { %5231 = vmatprep.mubr.msk.f32.mxu1 %vm2262_vm5, %v6090_v22  ;;  %v5630_v19 = vld [vmem:[#allocation5] ss:$28 sps:$4 sm:$0xff]  }
 0x508   :  { %v2259_v23 = vadd.s32 %v2258_v20, %v2256_v21  ;;  %v5638_v20 = vld [vmem:[#allocation5 + $0x34c] ss:$28 sps:$4 sm:$0xff]  }
 0x509   :  { %v5615_v21 = vld [vmem:[#allocation5 + $0x4d0] ss:$28 sps:$4 sm:$0xff]  }
 0x50a   :  { %2261 = vst [vmem:[#allocation10 + $0x8] sm:$0xff] %v2259_v23  ;;  %vm2263_vm6 = vcmp.eq.s32.totalorder %v2227_v4, %v2259_v23  ;;  %v5606_v4 = vld [vmem:[#allocation5 + $0xe0] ss:$28 sps:$4 sm:$0xff]   ;;  %v5636_v23 = vld [vmem:[#allocation5 + $0x348] ss:$28 sps:$4 sm:$0xff]  }
 0x50b   :  { %5232 = vmatmul.mubr.msk.f32.vlgmr.msra.gmra.mxu1 %vm2263_vm6, %v6090_v22  ;;  %4031 = vmatpush1.bf16.msra.mxu0 %v5606_v4  ;;  %v5623_v22 = vld [vmem:[#allocation5 + $0x49c] ss:$28 sps:$4 sm:$0xff]  }
 0x50c   :  { %2430 = vmatpush1.msra.mxu1 %v2383_v24  ;;  %2477 = vmatprep.mubr.f32.mxu1 %v6091_v43  ;;  %v5644_v24 = vld [vmem:[#allocation5 + $0x314] ss:$28 sps:$4 sm:$0xff]  }
 0x50d   :  { %2431 = vmatprep.subr.mxu1 %v2380_v25  ;;  %4032 = vmatprep.subr.bf16.mxu0 %v5614_v62  ;;  %v5621_v25 = vld [vmem:[#allocation5 + $0x498] ss:$28 sps:$4 sm:$0xff]   ;;  %v5678_v62 = vld [vmem:[#allocation5 + $0x1c0] ss:$28 sps:$4 sm:$0xff]  }
 0x50e   :  { %2432 = vmatpush1.msra.mxu1 %v2379_v26  ;;  %v5629_v26 = vld [vmem:[#allocation5 + $0x464] ss:$28 sps:$4 sm:$0xff]   ;;  %v5672_v4 = vld [vmem:[#allocation5 + $0x1f8] ss:$28 sps:$4 sm:$0xff]  }
 0x50f   :  { %2433 = vmatprep.subr.mxu1 %v2376_v27  ;;  %4033 = vmatpush1.bf16.msra.mxu0 %v5612_v35  ;;  %v5642_v27 = vld [vmem:[#allocation5 + $0x310] ss:$28 sps:$4 sm:$0xff]  }
 0x510   :  { %2434 = vmatpush1.msra.mxu1 %v2375_v28  ;;  %4034 = vmatprep.subr.bf16.mxu0 %v5620_v1  ;;  %v5650_v28 = vld [vmem:[#allocation5 + $0x2dc] ss:$28 sps:$4 sm:$0xff]   ;;  %v5683_v35 = vld [vmem:[#allocation5 + $0x5ec] ss:$28 sps:$4 sm:$0xff]   ;;  %v5689_v1 = vld [vmem:[#allocation5 + $0x5b4] ss:$28 sps:$4 sm:$0xff]  }
 0x511   :  { %2435 = vmatprep.subr.mxu1 %v2372_v29  ;;  %v5627_v29 = vld [vmem:[#allocation5 + $0x460] ss:$28 sps:$4 sm:$0xff]  }
 0x512   :  { %2436 = vmatpush1.msra.mxu1 %v2371_v30  ;;  %v5635_v30 = vld [vmem:[#allocation5 + $0x42c] ss:$28 sps:$4 sm:$0xff]  }
 0x513   :  { %2437 = vmatprep.subr.mxu1 %v2368_v31  ;;  %4035 = vmatpush1.bf16.msra.mxu0 %v5618_v6  ;;  %v5648_v31 = vld [vmem:[#allocation5 + $0x2d8] ss:$28 sps:$4 sm:$0xff]   ;;  %v5701_v6 = vld [vmem:[#allocation5 + $0x544] ss:$28 sps:$4 sm:$0xff]  }
 0x514   :  { %2438 = vmatpush1.msra.mxu1 %v2367_v33  ;;  %4036 = vmatprep.subr.bf16.mxu0 %v5626_v46  ;;  %v5656_v33 = vld [vmem:[#allocation5 + $0x2a4] ss:$28 sps:$4 sm:$0xff]   ;;  %v5707_v46 = vld [vmem:[#allocation5 + $0x514] ss:$28 sps:$4 sm:$0xff]  }
 0x515   :  { %2439 = vmatprep.subr.mxu1 %v2364_v34  ;;  %v5633_v34 = vld [vmem:[#allocation5 + $0x428] ss:$28 sps:$4 sm:$0xff]  }
 0x516   :  { %2440 = vmatpush1.msra.mxu1 %v2363_v36  ;;  %v5641_v36 = vld [vmem:[#allocation5 + $0x3f4] ss:$28 sps:$4 sm:$0xff]  }
 0x517   :  { %2441 = vmatprep.subr.mxu1 %v2360_v37  ;;  %4037 = vmatpush1.bf16.msra.mxu0 %v5624_v12  ;;  %v5654_v37 = vld [vmem:[#allocation5 + $0x2a0] ss:$28 sps:$4 sm:$0xff]  }
 0x518   :  { %2442 = vmatpush1.msra.mxu1 %v2359_v38  ;;  %4038 = vmatprep.subr.bf16.mxu0 %v5632_v18  ;;  %v5662_v38 = vld [vmem:[#allocation5 + $0x26c] ss:$28 sps:$4 sm:$0xff]  }
 0x519   :  { %2443 = vmatprep.subr.mxu1 %v2356_v39  ;;  %v5639_v39 = vld [vmem:[#allocation5 + $0x3f0] ss:$28 sps:$4 sm:$0xff]  }
 0x51a   :  { %2444 = vmatpush1.msra.mxu1 %v2355_v41  ;;  %v5647_v41 = vld [vmem:[#allocation5 + $0x3bc] ss:$28 sps:$4 sm:$0xff]  }
 0x51b   :  { %2506 = vmatprep.subr.mxu1 %v2386_v42  ;;  %4039 = vmatpush1.bf16.msra.mxu0 %v5630_v19  ;;  %v5660_v42 = vld [vmem:[#allocation5 + $0x268] ss:$28 sps:$4 sm:$0xff]  }
 0x51c   :  { %4040 = vmatprep.subr.bf16.mxu0 %v5638_v20 }
 0x51f   :  { %4041 = vmatpush2.bf16.msra.mxu0 %v5636_v23 }
 0x520   :  { %4042 = vmatprep.subr.bf16.mxu0 %v5644_v24 }
 0x523   :  { %4043 = vmatpush2.bf16.msra.mxu0 %v5642_v27 }
 0x524   :  { %4044 = vmatprep.subr.bf16.mxu0 %v5650_v28  ;;  %v5684_v28 = vld [vmem:[#allocation5 + $0x190] ss:$28 sps:$4 sm:$0xff]  }
 0x527   :  { %4045 = vmatpush2.bf16.msra.mxu0 %v5648_v31  ;;  %v5690_v31 = vld [vmem:[#allocation5 + $0x158] ss:$28 sps:$4 sm:$0xff]  }
 0x528   :  { %4046 = vmatprep.subr.bf16.mxu0 %v5656_v33 }
 0x52b   :  { %4047 = vmatpush2.bf16.msra.mxu0 %v5654_v37 }
 0x52c   :  { %4048 = vmatprep.subr.bf16.mxu0 %v5662_v38 }
 0x52f   :  { %4049 = vmatpush2.bf16.msra.mxu0 %v5660_v42  ;;  %v5704_v42 = vld [vmem:[#allocation5 + $0xec] ss:$28 sps:$4 sm:$0xff]  }
 0x5cb   :  { %v6598_v11 = vpop.f32.mrf.mxu1 }
 0x5cc   :  { %2347 = vrot.lane.b32.xlu1 %v6598_v11, %s6092_s27 }
 0x5cd   :  { %v2334_v58 = vpop.f32.mrf.mxu1 }
 0x5ce   :  { %2345 = vrot.lane.b32.xlu0 %v2334_v58, %s6092_s27  ;;  %4766 = vmatmul.mubr.msk.f32.vlgmr.msra.gmra.mxu1 %vm2073_vm0, %v2334_v58 }
 0x5cf   :  { %2507 = vmatpush1.msra.mxu1 %v2385_v56  ;;  %2483 = vmatprep.mubr.f32.mxu1 %v6091_v43  ;;  %v5666_v56 = vld [vmem:[#allocation5 + $0x230] ss:$28 sps:$4 sm:$0xff]  }
 0x5d0   :  { %2508 = vmatprep.subr.mxu1 %v2382_v59  ;;  %v5674_v59 = vld [vmem:[#allocation5 + $0x1fc] ss:$28 sps:$4 sm:$0xff]  }
 0x5d1   :  { %2509 = vmatpush1.msra.mxu1 %v2381_v49  ;;  %v5677_v49 = vld [vmem:[#allocation5 + $0x624] ss:$28 sps:$4 sm:$0xff]  }
 0x5d2   :  { %2510 = vmatprep.subr.mxu1 %v2378_v60  ;;  %4767 = vmatmul.mubr.msk.f32.gmra.mxu1 %vm2073_vm0, %v6598_v11  ;;  %v5675_v60 = vld [vmem:[#allocation5 + $0x620] ss:$28 sps:$4 sm:$0xff]  }
 0x5d3   :  { %2511 = vmatpush1.msra.mxu1 %v2377_v61  ;;  %2554 = vmatprep.mubr.f32.mxu1 %v6091_v43  ;;  %v5680_v61 = vld [vmem:[#allocation5 + $0x1c4] ss:$28 sps:$4 sm:$0xff]  }
 0x5d4   :  { %2512 = vmatprep.subr.mxu1 %v2374_v63  ;;  %v5681_v63 = vld [vmem:[#allocation5 + $0x5e8] ss:$28 sps:$4 sm:$0xff]  }
 0x5d5   :  { %2513 = vmatpush1.msra.mxu1 %v2373_v0  ;;  %v5686_v0 = vld [vmem:[#allocation5 + $0x194] ss:$28 sps:$4 sm:$0xff]  }
 0x5d6   :  { %2514 = vmatprep.subr.mxu1 %v2370_v2  ;;  %v5687_v2 = vld [vmem:[#allocation5 + $0x5b0] ss:$28 sps:$4 sm:$0xff]  }
 0x5d7   :  { %2515 = vmatpush1.msra.mxu1 %v2369_v3  ;;  %v5695_v3 = vld [vmem:[#allocation5 + $0x57c] ss:$28 sps:$4 sm:$0xff]  }
 0x5d8   :  { %2516 = vmatprep.subr.mxu1 %v2366_v5  ;;  %v5693_v5 = vld [vmem:[#allocation5 + $0x578] ss:$28 sps:$4 sm:$0xff]  }
 0x5d9   :  { %2517 = vmatpush1.msra.mxu1 %v2365_v7  ;;  %v5699_v7 = vld [vmem:[#allocation5 + $0x540] ss:$28 sps:$4 sm:$0xff]  }
 0x5da   :  { %2518 = vmatprep.subr.mxu1 %v2362_v8 }
 0x5db   :  { %2519 = vmatpush1.msra.mxu1 %v2361_v9 }
 0x5dc   :  { %2520 = vmatprep.subr.mxu1 %v2358_v10 }
 0x5dd   :  { %2521 = vmatpush1.msra.mxu1 %v2357_v13  ;;  %v2387_v13 = vld [vmem:[%s6726_s8] sm:$0xf] }
 0x5de   :  { %4768 = vmatmul.mubr.msk.f32.vlgmr.msra.gmra.mxu1 %vm2073_vm0, %v2334_v58  ;;  %4067 = vmatprep.subr.bf16.mxu1 %v5611_v15  ;;  %v5669_v58 = vld [vmem:[#allocation5 + $0x658] ss:$28 sps:$4 sm:$0xff]   ;;  %v2400_v37 = vrot.slane %v2387_v13, %v6441_v51 }
 0x5df   :  { %2560 = vmatprep.mubr.f32.mxu1 %v6091_v43  ;;  %4068 = vmatpush1.bf16.msra.mxu1 %v5609_v16  ;;  %v5645_v43 = vld [vmem:[#allocation5 + $0x3b8] ss:$28 sps:$4 sm:$0xff]   ;;  %v2396_v16 = vrot.slane %v2387_v13, %v6427_v55 }
 0x5e0   :  { %4069 = vmatprep.subr.bf16.mxu1 %v5617_v17  ;;  %v2392_v17 = vrot.slane %v2387_v13, %v6421_v53 }
 0x5e2   :  { %4769 = vmatmul.mubr.msk.f32.gmra.mxu1 %vm2073_vm0, %v6598_v11  ;;  %v5668_v11 = vld [vmem:[#allocation5 + $0x234] ss:$28 sps:$4 sm:$0xff]  }
 0x5e3   :  { %4070 = vmatpush1.bf16.msra.mxu1 %v5615_v21  ;;  %4050 = vmatprep.subr.bf16.mxu0 %v5668_v11  ;;  %v5710_v11 = vld [vmem:[#allocation5 + $0xb4] ss:$28 sps:$4 sm:$0xff]  }
 0x5e4   :  { %4071 = vmatprep.subr.bf16.mxu1 %v5623_v22  ;;  %4051 = vmatpush2.bf16.msra.mxu0 %v5666_v56 }
 0x5e5   :  { %4052 = vmatprep.subr.bf16.mxu0 %v5674_v59 }
 0x5e7   :  { %4072 = vmatpush1.bf16.msra.mxu1 %v5621_v25 }
 0x5e8   :  { %4073 = vmatprep.subr.bf16.mxu1 %v5629_v26  ;;  %4053 = vmatpush2.bf16.msra.mxu0 %v5672_v4  ;;  %v5705_v4 = vld [vmem:[#allocation5 + $0x510] ss:$28 sps:$4 sm:$0xff]  }
 0x5e9   :  { %4054 = vmatprep.subr.bf16.mxu0 %v5680_v61  ;;  %v5713_v61 = vld [vmem:[#allocation5 + $0x4dc] ss:$28 sps:$4 sm:$0xff]  }
 0x5eb   :  { %4074 = vmatpush1.bf16.msra.mxu1 %v5627_v29 }
 0x5ec   :  { %4075 = vmatprep.subr.bf16.mxu1 %v5635_v30  ;;  %4055 = vmatpush2.bf16.msra.mxu0 %v5678_v62  ;;  %v5692_v30 = vld [vmem:[#allocation5 + $0x15c] ss:$28 sps:$4 sm:$0xff]  }
 0x5ed   :  { %4110 = vmatprep.subr.bf16.mxu0 %v5686_v0  ;;  %v5716_v62 = vld [vmem:[#allocation5 + $0x7c] ss:$28 sps:$4 sm:$0xff]   ;;  %v5719_v0 = vld [vmem:[#allocation5 + $0x4a4] ss:$28 sps:$4 sm:$0xff]  }
 0x5ef   :  { %4076 = vmatpush1.bf16.msra.mxu1 %v5633_v34  ;;  %v5698_v34 = vld [vmem:[#allocation5 + $0x124] ss:$28 sps:$4 sm:$0xff]  }
 0x5f0   :  { %4077 = vmatprep.subr.bf16.mxu1 %v5641_v36  ;;  %v2404_v36 = vrot.slane %v2387_v13, %v6447_v32  ;;  %v5737_v13 = vld [vmem:[#allocation5 + $0x3fc] ss:$28 sps:$4 sm:$0xff]  }
 0x5f3   :  { %4078 = vmatpush1.bf16.msra.mxu1 %v5639_v39  ;;  %v5696_v39 = vld [vmem:[#allocation5 + $0x120] ss:$28 sps:$4 sm:$0xff]  }
 0x5f4   :  { %4079 = vmatprep.subr.bf16.mxu1 %v5647_v41 }
 0x5f7   :  { %4080 = vmatpush1.bf16.msra.mxu1 %v5645_v43 }
 0x5f8   :  { %4081 = vmatprep.subr.bf16.mxu1 %v5653_v44 }
 0x5fb   :  { %4082 = vmatpush1.bf16.msra.mxu1 %v5651_v45 }
 0x5fc   :  { %4083 = vmatprep.subr.bf16.mxu1 %v5659_v47 }
 0x5ff   :  { %4084 = vmatpush2.bf16.msra.mxu1 %v5657_v50 }
 0x600   :  { %4085 = vmatprep.subr.bf16.mxu1 %v5665_v52  ;;  %v5702_v52 = vld [vmem:[#allocation5 + $0xe8] ss:$28 sps:$4 sm:$0xff]  }
 0x603   :  { %4086 = vmatpush2.bf16.msra.mxu1 %v5663_v54 }
 0x604   :  { %4087 = vmatprep.subr.bf16.mxu1 %v5671_v57 }
 0x607   :  { %4088 = vmatpush2.bf16.msra.mxu1 %v5669_v58 }
 0x608   :  { %4089 = vmatprep.subr.bf16.mxu1 %v5677_v49  ;;  %v5708_v49 = vld [vmem:[#allocation5 + $0xb0] ss:$28 sps:$4 sm:$0xff]  }
 0x60b   :  { %4090 = vmatpush2.bf16.msra.mxu1 %v5675_v60 }
 0x60c   :  { %4091 = vmatprep.subr.bf16.mxu1 %v5683_v35  ;;  %v5714_v35 = vld [vmem:[#allocation5 + $0x78] ss:$28 sps:$4 sm:$0xff]  }
 0x60f   :  { %4092 = vmatpush2.bf16.msra.mxu1 %v5681_v63  ;;  %v5711_v63 = vld [vmem:[#allocation5 + $0x4d8] ss:$28 sps:$4 sm:$0xff]  }
 0x610   :  { %4093 = vmatprep.subr.bf16.mxu1 %v5689_v1  ;;  %v5722_v1 = vld [vmem:[#allocation5 + $0x44] ss:$28 sps:$4 sm:$0xff]  }
 0x613   :  { %4094 = vmatpush2.bf16.msra.mxu1 %v5687_v2  ;;  %v5717_v2 = vld [vmem:[#allocation5 + $0x4a0] ss:$28 sps:$4 sm:$0xff]  }
 0x614   :  { %4095 = vmatprep.subr.bf16.mxu1 %v5695_v3  ;;  %v5720_v3 = vld [vmem:[#allocation5 + $0x40] ss:$28 sps:$4 sm:$0xff]  }
 0x617   :  { %4096 = vmatpush2.bf16.msra.mxu1 %v5693_v5  ;;  %v5725_v5 = vld [vmem:[#allocation5 + $0x46c] ss:$28 sps:$4 sm:$0xff]  }
 0x618   :  { %4097 = vmatprep.subr.bf16.mxu1 %v5701_v6  ;;  %v5728_v6 = vld [vmem:[#allocation5 + $0xc] ss:$28 sps:$4 sm:$0xff]  }
 0x61b   :  { %4098 = vmatpush2.bf16.msra.mxu1 %v5699_v7  ;;  %v5723_v7 = vld [vmem:[#allocation5 + $0x468] ss:$28 sps:$4 sm:$0xff]  }
 0x61c   :  { %4153 = vmatprep.subr.bf16.mxu1 %v5707_v46  ;;  %v5726_v46 = vld [vmem:[#allocation5 + $0x8] ss:$28 sps:$4 sm:$0xff]  }
 0x63e   :  { %v2348_v8 = vpop.permute.xlu1 %2347 }
 0x63f   :  { %v2352_v9 = vsel %vm2073_vm0, %v6534_v40, %v2348_v8  ;;  %v5731_v8 = vld [vmem:[#allocation5 + $0x434] ss:$28 sps:$4 sm:$0xff]  }
 0x640   :  { %2354 = vst [vmem:[#allocation8 + $0x8] sm:$0xff] %v2352_v9  ;;  %v2346_v10 = vpop.permute.xlu0 %2345  ;;  %v5734_v9 = vld [vmem:[#allocation5 + $0x354] ss:$28 sps:$4 sm:$0xff]  }
 0x641   :  { %v2351_v12 = vsel %vm2073_vm0, %v6528_v14, %v2346_v10  ;;  %v5729_v10 = vld [vmem:[#allocation5 + $0x430] ss:$28 sps:$4 sm:$0xff]  }
 0x642   :  { %2353 = vst [vmem:[#allocation8] sm:$0xff] %v2351_v12  ;;  %v5732_v12 = vld [vmem:[#allocation5 + $0x350] ss:$28 sps:$4 sm:$0xff]  }
 0x68e   :  { %v2479_v15 = vpop.f32.mrf.mxu1 }
 0x68f   :  { %v2480_v40 = vadd.f32 %v2479_v15, %v2392_v17  ;;  %v5740_v15 = vld [vmem:[#allocation5 + $0x31c] ss:$28 sps:$4 sm:$0xff]  }
 0x690   :  { %v2481_v18 = vpop.f32.mrf.mxu1 }
 0x691   :  { %v2482_v20 = vadd.f32 %v2481_v18, %v2396_v16  ;;  %v2567_v26 = vmax.f32 %v2480_v40, 0.0  ;;  %v5743_v18 = vld [vmem:[#allocation5 + $0x3c4] ss:$28 sps:$4 sm:$0xff]   ;;  %v5749_v40 = vld [vmem:[#allocation5 + $0x38c] ss:$28 sps:$4 sm:$0xff]  }
 0x692   :  { %v2485_v19 = vpop.f32.mrf.mxu1 }
 0x693   :  { %v2486_v21 = vadd.f32 %v2485_v19, %v2392_v17  ;;  %v2568_v25 = vmax.f32 %v2482_v20, 0.0  ;;  %v5738_v17 = vld [vmem:[#allocation5 + $0x318] ss:$28 sps:$4 sm:$0xff]   ;;  %v5746_v19 = vld [vmem:[#allocation5 + $0x2e4] ss:$28 sps:$4 sm:$0xff]  }
 0x694   :  { %v2487_v22 = vpop.f32.mrf.mxu1  ;;  %v5741_v20 = vld [vmem:[#allocation5 + $0x3c0] ss:$28 sps:$4 sm:$0xff]  }
 0x695   :  { %v2488_v23 = vadd.f32 %v2487_v22, %v2396_v16  ;;  %v2571_v24 = vmax.f32 %v2486_v21, 0.0  ;;  %v5735_v16 = vld [vmem:[#allocation5 + $0x3f8] ss:$28 sps:$4 sm:$0xff]   ;;  %v5744_v21 = vld [vmem:[#allocation5 + $0x2e0] ss:$28 sps:$4 sm:$0xff]  }
 0x696   :  { %v5752_v22 = vld [vmem:[#allocation5 + $0x2ac] ss:$28 sps:$4 sm:$0xff]  }
 0x697   :  { %v2572_v14 = vmax.f32 %v2488_v23, 0.0  ;;  %v6666_v29 = vpack.c.bf16 %v2571_v24, %v2567_v26  ;;  %v5747_v23 = vld [vmem:[#allocation5 + $0x388] ss:$28 sps:$4 sm:$0xff]   ;;  %v5753_v26 = vld [vmem:[#allocation5 + $0x6d0] ss:$28 sps:$4 sm:$0xff]  }
 0x698   :  { %v5750_v24 = vld [vmem:[#allocation5 + $0x2a8] ss:$28 sps:$4 sm:$0xff]  }
 0x699   :  { %v6664_v27 = vpack.c.bf16 %v2572_v14, %v2568_v25  ;;  %v5755_v25 = vld [vmem:[#allocation5 + $0x6d4] ss:$28 sps:$4 sm:$0xff]  }
 0x69a   :  { %v5758_v14 = vld [vmem:[#allocation5 + $0x274] ss:$28 sps:$4 sm:$0xff]  }
 0x69b   :  { %4056 = vmatprep.mubr.bf16.mxu0 %v6664_v27 }
 0x69c   :  { %4057 = vmatmul.mubr.bf16.vlgmr.msra.gmra.mxu0 %v6666_v29 }
 0x69d   :  { %4111 = vmatpush1.bf16.msra.mxu0 %v5684_v28  ;;  %4142 = vmatprep.mubr.bf16.mxu0 %v6664_v27  ;;  %v5756_v28 = vld [vmem:[#allocation5 + $0x270] ss:$28 sps:$4 sm:$0xff]  }
 0x69e   :  { %v2556_v33 = vpop.f32.mrf.mxu1  ;;  %4112 = vmatprep.subr.bf16.mxu0 %v5692_v30  ;;  %v5761_v30 = vld [vmem:[#allocation5 + $0x69c] ss:$28 sps:$4 sm:$0xff]  }
 0x69f   :  { %v2557_v45 = vadd.f32 %v2556_v33, %v2400_v37  ;;  %v5759_v33 = vld [vmem:[#allocation5 + $0x698] ss:$28 sps:$4 sm:$0xff]  }
 0x6a0   :  { %v2558_v38 = vpop.f32.mrf.mxu1 }
 0x6a1   :  { %4113 = vmatpush1.bf16.msra.mxu0 %v5690_v31  ;;  %v2559_v43 = vadd.f32 %v2558_v38, %v2404_v36  ;;  %v2569_v58 = vmax.f32 %v2557_v45, 0.0  ;;  %v5764_v31 = vld [vmem:[#allocation5 + $0x23c] ss:$28 sps:$4 sm:$0xff]   ;;  %v5779_v45 = vld [vmem:[#allocation5 + $0x5f4] ss:$28 sps:$4 sm:$0xff]  }
 0x6a2   :  { %v2562_v41 = vpop.f32.mrf.mxu1  ;;  %4114 = vmatprep.subr.bf16.mxu0 %v5698_v34  ;;  %v5762_v34 = vld [vmem:[#allocation5 + $0x238] ss:$28 sps:$4 sm:$0xff]   ;;  %v5765_v38 = vld [vmem:[#allocation5 + $0x660] ss:$28 sps:$4 sm:$0xff]  }
 0x6a3   :  { %v2563_v44 = vadd.f32 %v2562_v41, %v2400_v37  ;;  %v2570_v56 = vmax.f32 %v2559_v43, 0.0  ;;  %v5770_v37 = vld [vmem:[#allocation5 + $0x204] ss:$28 sps:$4 sm:$0xff]   ;;  %v5773_v41 = vld [vmem:[#allocation5 + $0x62c] ss:$28 sps:$4 sm:$0xff]  }
 0x6a4   :  { %v2564_v47 = vpop.f32.mrf.mxu1  ;;  %v5771_v43 = vld [vmem:[#allocation5 + $0x628] ss:$28 sps:$4 sm:$0xff]  }
 0x6a5   :  { %v2565_v50 = vadd.f32 %v2564_v47, %v2404_v36  ;;  %4115 = vmatpush1.bf16.msra.mxu0 %v5696_v39  ;;  %v2573_v54 = vmax.f32 %v2563_v44, 0.0  ;;  %v5767_v36 = vld [vmem:[#allocation5 + $0x664] ss:$28 sps:$4 sm:$0xff]   ;;  %v5782_v47 = vld [vmem:[#allocation5 + $0x19c] ss:$28 sps:$4 sm:$0xff]  }
 0x6a6   :  { %4116 = vmatprep.subr.bf16.mxu0 %v5704_v42  ;;  %v5768_v39 = vld [vmem:[#allocation5 + $0x200] ss:$28 sps:$4 sm:$0xff]   ;;  %v5776_v42 = vld [vmem:[#allocation5 + $0x1cc] ss:$28 sps:$4 sm:$0xff]  }
 0x6a7   :  { %v2574_v57 = vmax.f32 %v2565_v50, 0.0  ;;  %v6675_v60 = vpack.c.bf16 %v2573_v54, %v2569_v58  ;;  %v5774_v44 = vld [vmem:[#allocation5 + $0x1c8] ss:$28 sps:$4 sm:$0xff]   ;;  %v5777_v50 = vld [vmem:[#allocation5 + $0x5f0] ss:$28 sps:$4 sm:$0xff]  }
 0x6a8   :  { %v5785_v54 = vld [vmem:[#allocation5 + $0x5bc] ss:$28 sps:$4 sm:$0xff]   ;;  %v5791_v58 = vld [vmem:[#allocation5 + $0x584] ss:$28 sps:$4 sm:$0xff]  }
 0x6a9   :  { %v6673_v59 = vpack.c.bf16 %v2574_v57, %v2570_v56  ;;  %4117 = vmatpush1.bf16.msra.mxu0 %v5702_v52  ;;  %v5780_v52 = vld [vmem:[#allocation5 + $0x198] ss:$28 sps:$4 sm:$0xff]   ;;  %v5786_v57 = vld [vmem:[#allocation5 + $0x160] ss:$28 sps:$4 sm:$0xff]  }
 0x6aa   :  { %4118 = vmatprep.subr.bf16.mxu0 %v5710_v11  ;;  %v5788_v11 = vld [vmem:[#allocation5 + $0x164] ss:$28 sps:$4 sm:$0xff]   ;;  %v5783_v56 = vld [vmem:[#allocation5 + $0x5b8] ss:$28 sps:$4 sm:$0xff]  }
 0x6ab   :  { %4099 = vmatprep.mubr.bf16.mxu1 %v6673_v59 }
 0x6ac   :  { %4100 = vmatmul.mubr.bf16.vlgmr.msra.gmra.mxu1 %v6675_v60 }
 0x6ad   :  { %4154 = vmatpush1.bf16.msra.mxu1 %v5705_v4  ;;  %4119 = vmatpush1.bf16.msra.mxu0 %v5708_v49  ;;  %v5794_v4 = vld [vmem:[#allocation5 + $0x12c] ss:$28 sps:$4 sm:$0xff]   ;;  %v5789_v49 = vld [vmem:[#allocation5 + $0x580] ss:$28 sps:$4 sm:$0xff]  }
 0x6ae   :  { %4185 = vmatprep.mubr.bf16.mxu1 %v6673_v59  ;;  %4155 = vmatprep.subr.bf16.mxu1 %v5713_v61  ;;  %v5792_v61 = vld [vmem:[#allocation5 + $0x128] ss:$28 sps:$4 sm:$0xff]  }
 0x6af   :  { %4120 = vmatprep.subr.bf16.mxu0 %v5716_v62  ;;  %v5797_v62 = vld [vmem:[#allocation5 + $0x54c] ss:$28 sps:$4 sm:$0xff]  }
 0x6b1   :  { %4156 = vmatpush1.bf16.msra.mxu1 %v5711_v63  ;;  %4121 = vmatpush1.bf16.msra.mxu0 %v5714_v35  ;;  %v5800_v63 = vld [vmem:[#allocation5 + $0xf4] ss:$28 sps:$4 sm:$0xff]   ;;  %v5795_v35 = vld [vmem:[#allocation5 + $0x548] ss:$28 sps:$4 sm:$0xff]  }
 0x6b2   :  { %4157 = vmatprep.subr.bf16.mxu1 %v5719_v0  ;;  %4122 = vmatprep.subr.bf16.mxu0 %v5722_v1  ;;  %v5798_v0 = vld [vmem:[#allocation5 + $0xf0] ss:$28 sps:$4 sm:$0xff]   ;;  %v5803_v1 = vld [vmem:[#allocation5 + $0x51c] ss:$28 sps:$4 sm:$0xff]  }
 0x6b5   :  { %4158 = vmatpush1.bf16.msra.mxu1 %v5717_v2  ;;  %4123 = vmatpush1.bf16.msra.mxu0 %v5720_v3  ;;  %v5806_v2 = vld [vmem:[#allocation5 + $0xbc] ss:$28 sps:$4 sm:$0xff]  }
 0x6b6   :  { %4159 = vmatprep.subr.bf16.mxu1 %v5725_v5  ;;  %4124 = vmatprep.subr.bf16.mxu0 %v5728_v6  ;;  %v5801_v3 = vld [vmem:[#allocation5 + $0x518] ss:$28 sps:$4 sm:$0xff]   ;;  %v5809_v6 = vld [vmem:[#allocation5 + $0x4e4] ss:$28 sps:$4 sm:$0xff]  }
 0x6b7   :  { %v5804_v5 = vld [vmem:[#allocation5 + $0xb8] ss:$28 sps:$4 sm:$0xff]  }
 0x6b9   :  { %4160 = vmatpush1.bf16.msra.mxu1 %v5723_v7  ;;  %4125 = vmatpush1.bf16.msra.mxu0 %v5726_v46  ;;  %v5812_v7 = vld [vmem:[#allocation5 + $0x84] ss:$28 sps:$4 sm:$0xff]  }
 0x6ba   :  { %4161 = vmatprep.subr.bf16.mxu1 %v5731_v8  ;;  %4126 = vmatprep.subr.bf16.mxu0 %v5734_v9  ;;  %v5807_v46 = vld [vmem:[#allocation5 + $0x4e0] ss:$28 sps:$4 sm:$0xff]   ;;  %v5815_v9 = vld [vmem:[#allocation5 + $0x4ac] ss:$28 sps:$4 sm:$0xff]  }
 0x6bb   :  { %v5810_v8 = vld [vmem:[#allocation5 + $0x80] ss:$28 sps:$4 sm:$0xff]  }
 0x6bd   :  { %4162 = vmatpush1.bf16.msra.mxu1 %v5729_v10  ;;  %4127 = vmatpush2.bf16.msra.mxu0 %v5732_v12  ;;  %v5818_v10 = vld [vmem:[#allocation5 + $0x4c] ss:$28 sps:$4 sm:$0xff]  }
 0x6be   :  { %4163 = vmatprep.subr.bf16.mxu1 %v5737_v13  ;;  %4128 = vmatprep.subr.bf16.mxu0 %v5740_v15  ;;  %v5813_v12 = vld [vmem:[#allocation5 + $0x4a8] ss:$28 sps:$4 sm:$0xff]   ;;  %v5821_v15 = vld [vmem:[#allocation5 + $0x474] ss:$28 sps:$4 sm:$0xff]  }
 0x6bf   :  { %v5816_v13 = vld [vmem:[#allocation5 + $0x48] ss:$28 sps:$4 sm:$0xff]  }
 0x6c1   :  { %4164 = vmatpush1.bf16.msra.mxu1 %v5735_v16  ;;  %4129 = vmatpush2.bf16.msra.mxu0 %v5738_v17  ;;  %v5824_v16 = vld [vmem:[#allocation5 + $0x14] ss:$28 sps:$4 sm:$0xff]  }
 0x6c2   :  { %4165 = vmatprep.subr.bf16.mxu1 %v5743_v18  ;;  %4130 = vmatprep.subr.bf16.mxu0 %v5746_v19  ;;  %v5819_v17 = vld [vmem:[#allocation5 + $0x470] ss:$28 sps:$4 sm:$0xff]   ;;  %v5827_v19 = vld [vmem:[#allocation5 + $0x43c] ss:$28 sps:$4 sm:$0xff]  }
 0x6c3   :  { %v5822_v18 = vld [vmem:[#allocation5 + $0x10] ss:$28 sps:$4 sm:$0xff]  }
 0x6c5   :  { %4166 = vmatpush1.bf16.msra.mxu1 %v5741_v20  ;;  %4131 = vmatpush2.bf16.msra.mxu0 %v5744_v21  ;;  %v5830_v20 = vld [vmem:[#allocation5 + $0x35c] ss:$28 sps:$4 sm:$0xff]  }
 0x6c6   :  { %4167 = vmatprep.subr.bf16.mxu1 %v5749_v40  ;;  %4132 = vmatprep.subr.bf16.mxu0 %v5752_v22  ;;  %v5825_v21 = vld [vmem:[#allocation5 + $0x438] ss:$28 sps:$4 sm:$0xff]   ;;  %v5833_v22 = vld [vmem:[#allocation5 + $0x404] ss:$28 sps:$4 sm:$0xff]  }
 0x6c7   :  { %v5828_v40 = vld [vmem:[#allocation5 + $0x358] ss:$28 sps:$4 sm:$0xff]  }
 0x6c9   :  { %4168 = vmatpush1.bf16.msra.mxu1 %v5747_v23  ;;  %4133 = vmatpush2.bf16.msra.mxu0 %v5750_v24  ;;  %v5836_v23 = vld [vmem:[#allocation5 + $0x324] ss:$28 sps:$4 sm:$0xff]  }
 0x6ca   :  { %4169 = vmatprep.subr.bf16.mxu1 %v5755_v25  ;;  %4134 = vmatprep.subr.bf16.mxu0 %v5758_v14  ;;  %v5831_v24 = vld [vmem:[#allocation5 + $0x400] ss:$28 sps:$4 sm:$0xff]   ;;  %v5839_v14 = vld [vmem:[#allocation5 + $0x3cc] ss:$28 sps:$4 sm:$0xff]  }
 0x6cb   :  { %v5834_v25 = vld [vmem:[#allocation5 + $0x320] ss:$28 sps:$4 sm:$0xff]  }
 0x6cd   :  { %4170 = vmatpush2.bf16.msra.mxu1 %v5753_v26  ;;  %4135 = vmatpush2.bf16.msra.mxu0 %v5756_v28  ;;  %v5842_v26 = vld [vmem:[#allocation5 + $0x2ec] ss:$28 sps:$4 sm:$0xff]  }
 0x6ce   :  { %4171 = vmatprep.subr.bf16.mxu1 %v5761_v30  ;;  %4136 = vmatprep.subr.bf16.mxu0 %v5764_v31  ;;  %v5837_v28 = vld [vmem:[#allocation5 + $0x3c8] ss:$28 sps:$4 sm:$0xff]   ;;  %v5845_v31 = vld [vmem:[#allocation5 + $0x394] ss:$28 sps:$4 sm:$0xff]  }
 0x6cf   :  { %v5840_v30 = vld [vmem:[#allocation5 + $0x2e8] ss:$28 sps:$4 sm:$0xff]  }
 0x6d1   :  { %4172 = vmatpush2.bf16.msra.mxu1 %v5759_v33  ;;  %4137 = vmatpush2.bf16.msra.mxu0 %v5762_v34  ;;  %v5848_v33 = vld [vmem:[#allocation5 + $0x2b4] ss:$28 sps:$4 sm:$0xff]  }
 0x6d2   :  { %4173 = vmatprep.subr.bf16.mxu1 %v5767_v36  ;;  %4138 = vmatprep.subr.bf16.mxu0 %v5770_v37  ;;  %v5843_v34 = vld [vmem:[#allocation5 + $0x390] ss:$28 sps:$4 sm:$0xff]   ;;  %v5851_v37 = vld [vmem:[#allocation5 + $0x6dc] ss:$28 sps:$4 sm:$0xff]  }
 0x6d3   :  { %v5846_v36 = vld [vmem:[#allocation5 + $0x2b0] ss:$28 sps:$4 sm:$0xff]  }
 0x6d5   :  { %4174 = vmatpush2.bf16.msra.mxu1 %v5765_v38  ;;  %4139 = vmatpush2.bf16.msra.mxu0 %v5768_v39  ;;  %v5854_v38 = vld [vmem:[#allocation5 + $0x27c] ss:$28 sps:$4 sm:$0xff]  }
 0x6d6   :  { %4175 = vmatprep.subr.bf16.mxu1 %v5773_v41  ;;  %4140 = vmatprep.subr.bf16.mxu0 %v5776_v42  ;;  %v5849_v39 = vld [vmem:[#allocation5 + $0x6d8] ss:$28 sps:$4 sm:$0xff]   ;;  %v5857_v42 = vld [vmem:[#allocation5 + $0x6a4] ss:$28 sps:$4 sm:$0xff]  }
 0x6d7   :  { %v5852_v41 = vld [vmem:[#allocation5 + $0x278] ss:$28 sps:$4 sm:$0xff]  }
 0x6d9   :  { %4176 = vmatpush2.bf16.msra.mxu1 %v5771_v43  ;;  %4141 = vmatpush2.bf16.msra.mxu0 %v5774_v44  ;;  %v5860_v43 = vld [vmem:[#allocation5 + $0x244] ss:$28 sps:$4 sm:$0xff]  }
 0x6da   :  { %4177 = vmatprep.subr.bf16.mxu1 %v5779_v45  ;;  %4196 = vmatprep.subr.bf16.mxu0 %v5782_v47  ;;  %v5855_v44 = vld [vmem:[#allocation5 + $0x6a0] ss:$28 sps:$4 sm:$0xff]   ;;  %v5863_v47 = vld [vmem:[#allocation5 + $0x66c] ss:$28 sps:$4 sm:$0xff]  }
 0x6db   :  { %v5858_v45 = vld [vmem:[#allocation5 + $0x240] ss:$28 sps:$4 sm:$0xff]  }
 0x6dc   :  { %4143 = vmatmul.mubr.bf16.vlgmr.msra.gmra.mxu0 %v6666_v29 }
 0x6dd   :  { %4178 = vmatpush2.bf16.msra.mxu1 %v5777_v50  ;;  %4197 = vmatpush1.bf16.msra.mxu0 %v5780_v52  ;;  %v5866_v50 = vld [vmem:[#allocation5 + $0x20c] ss:$28 sps:$4 sm:$0xff]  }
 0x6de   :  { %4228 = vmatprep.mubr.bf16.mxu0 %v6664_v27  ;;  %4179 = vmatprep.subr.bf16.mxu1 %v5785_v54  ;;  %v5861_v52 = vld [vmem:[#allocation5 + $0x668] ss:$28 sps:$4 sm:$0xff]  }
 0x6df   :  { %4198 = vmatprep.subr.bf16.mxu0 %v5788_v11  ;;  %v5864_v54 = vld [vmem:[#allocation5 + $0x208] ss:$28 sps:$4 sm:$0xff]   ;;  %v5869_v11 = vld [vmem:[#allocation5 + $0x634] ss:$28 sps:$4 sm:$0xff]  }
 0x6e1   :  { %4180 = vmatpush2.bf16.msra.mxu1 %v5783_v56  ;;  %4199 = vmatpush1.bf16.msra.mxu0 %v5786_v57  ;;  %v5872_v56 = vld [vmem:[#allocation5 + $0x1d4] ss:$28 sps:$4 sm:$0xff]  }
 0x6e2   :  { %4181 = vmatprep.subr.bf16.mxu1 %v5791_v58  ;;  %4200 = vmatprep.subr.bf16.mxu0 %v5794_v4  ;;  %v5867_v57 = vld [vmem:[#allocation5 + $0x630] ss:$28 sps:$4 sm:$0xff]   ;;  %v5875_v4 = vld [vmem:[#allocation5 + $0x5fc] ss:$28 sps:$4 sm:$0xff]  }
 0x6e3   :  { %v5870_v58 = vld [vmem:[#allocation5 + $0x1d0] ss:$28 sps:$4 sm:$0xff]  }
 0x6e5   :  { %4182 = vmatpush2.bf16.msra.mxu1 %v5789_v49  ;;  %4201 = vmatpush1.bf16.msra.mxu0 %v5792_v61  ;;  %v5876_v49 = vld [vmem:[#allocation5 + $0x360] ss:$28 sps:$4 sm:$0xff]   ;;  %v5873_v61 = vld [vmem:[#allocation5 + $0x5f8] ss:$28 sps:$4 sm:$0xff]  }
 0x6e6   :  { %4183 = vmatprep.subr.bf16.mxu1 %v5797_v62  ;;  %4202 = vmatprep.subr.bf16.mxu0 %v5800_v63  ;;  %v5877_v62 = vld [vmem:[#allocation5 + $0x1a0] ss:$28 sps:$4 sm:$0xff]  }
 0x6e7   :  { %v5880_v63 = vld [vmem:[#allocation5 + $0x5c4] ss:$28 sps:$4 sm:$0xff]  }
 0x6e9   :  { %4184 = vmatpush2.bf16.msra.mxu1 %v5795_v35  ;;  %4203 = vmatpush1.bf16.msra.mxu0 %v5798_v0  ;;  %v5881_v35 = vld [vmem:[#allocation5 + $0x328] ss:$28 sps:$4 sm:$0xff]   ;;  %v5878_v0 = vld [vmem:[#allocation5 + $0x5c0] ss:$28 sps:$4 sm:$0xff]  }
 0x6ea   :  { %4239 = vmatprep.subr.bf16.mxu1 %v5803_v1  ;;  %4204 = vmatprep.subr.bf16.mxu0 %v5806_v2  ;;  %v5882_v1 = vld [vmem:[#allocation5 + $0x168] ss:$28 sps:$4 sm:$0xff]  }
 0x6eb   :  { %v5885_v2 = vld [vmem:[#allocation5 + $0x58c] ss:$28 sps:$4 sm:$0xff]  }
 0x6ec   :  { %4186 = vmatmul.mubr.bf16.vlgmr.msra.gmra.mxu1 %v6675_v60 }
 0x6ed   :  { %4240 = vmatpush1.bf16.msra.mxu1 %v5801_v3  ;;  %4271 = vmatprep.mubr.bf16.mxu1 %v6673_v59  ;;  %v5886_v3 = vld [vmem:[#allocation5 + $0x2f0] ss:$28 sps:$4 sm:$0xff]  }
 0x6ee   :  { %4205 = vmatpush1.bf16.msra.mxu0 %v5804_v5  ;;  %4241 = vmatprep.subr.bf16.mxu1 %v5809_v6  ;;  %v5883_v5 = vld [vmem:[#allocation5 + $0x588] ss:$28 sps:$4 sm:$0xff]   ;;  %v5887_v6 = vld [vmem:[#allocation5 + $0x130] ss:$28 sps:$4 sm:$0xff]  }
 0x6ef   :  { %4206 = vmatprep.subr.bf16.mxu0 %v5812_v7  ;;  %v5890_v7 = vld [vmem:[#allocation5 + $0x554] ss:$28 sps:$4 sm:$0xff]  }
 0x6f1   :  { %4242 = vmatpush1.bf16.msra.mxu1 %v5807_v46  ;;  %v5891_v46 = vld [vmem:[#allocation5 + $0x2b8] ss:$28 sps:$4 sm:$0xff]  }
 0x6f2   :  { %4207 = vmatpush1.bf16.msra.mxu0 %v5810_v8  ;;  %4243 = vmatprep.subr.bf16.mxu1 %v5815_v9  ;;  %v5888_v8 = vld [vmem:[#allocation5 + $0x550] ss:$28 sps:$4 sm:$0xff]   ;;  %v5892_v9 = vld [vmem:[#allocation5 + $0xf8] ss:$28 sps:$4 sm:$0xff]  }
 0x6f3   :  { %4208 = vmatprep.subr.bf16.mxu0 %v5818_v10  ;;  %v5893_v10 = vld [vmem:[#allocation5 + $0x6e0] ss:$28 sps:$4 sm:$0xff]  }
 0x6f5   :  { %4244 = vmatpush1.bf16.msra.mxu1 %v5813_v12  ;;  %v5895_v12 = vld [vmem:[#allocation5 + $0x520] ss:$28 sps:$4 sm:$0xff]  }
 0x6f6   :  { %4209 = vmatpush1.bf16.msra.mxu0 %v5816_v13  ;;  %4245 = vmatprep.subr.bf16.mxu1 %v5821_v15  ;;  %v5896_v13 = vld [vmem:[#allocation5 + $0xc0] ss:$28 sps:$4 sm:$0xff]   ;;  %v5897_v15 = vld [vmem:[#allocation5 + $0x6a8] ss:$28 sps:$4 sm:$0xff]  }
 0x6f7   :  { %4210 = vmatprep.subr.bf16.mxu0 %v5824_v16  ;;  %v5898_v16 = vld [vmem:[#allocation5 + $0x248] ss:$28 sps:$4 sm:$0xff]  }
 0x6f9   :  { %4246 = vmatpush1.bf16.msra.mxu1 %v5819_v17  ;;  %v5899_v17 = vld [vmem:[#allocation5 + $0x4e8] ss:$28 sps:$4 sm:$0xff]  }
 0x6fa   :  { %4211 = vmatpush1.bf16.msra.mxu0 %v5822_v18  ;;  %4247 = vmatprep.subr.bf16.mxu1 %v5827_v19  ;;  %v5900_v18 = vld [vmem:[#allocation5 + $0x88] ss:$28 sps:$4 sm:$0xff]   ;;  %v5901_v19 = vld [vmem:[#allocation5 + $0x670] ss:$28 sps:$4 sm:$0xff]  }
 0x6fb   :  { %4212 = vmatprep.subr.bf16.mxu0 %v5830_v20  ;;  %v5902_v20 = vld [vmem:[#allocation5 + $0x210] ss:$28 sps:$4 sm:$0xff]  }
 0x6fd   :  { %4248 = vmatpush1.bf16.msra.mxu1 %v5825_v21  ;;  %v5903_v21 = vld [vmem:[#allocation5 + $0x4b0] ss:$28 sps:$4 sm:$0xff]  }
 0x6fe   :  { %4213 = vmatpush2.bf16.msra.mxu0 %v5828_v40  ;;  %4249 = vmatprep.subr.bf16.mxu1 %v5833_v22  ;;  %v5904_v40 = vld [vmem:[#allocation5 + $0x50] ss:$28 sps:$4 sm:$0xff]   ;;  %v5905_v22 = vld [vmem:[#allocation5 + $0x638] ss:$28 sps:$4 sm:$0xff]  }
 0x6ff   :  { %4214 = vmatprep.subr.bf16.mxu0 %v5836_v23  ;;  %v5906_v23 = vld [vmem:[#allocation5 + $0x1d8] ss:$28 sps:$4 sm:$0xff]  }
 0x701   :  { %4250 = vmatpush1.bf16.msra.mxu1 %v5831_v24  ;;  %v5907_v24 = vld [vmem:[#allocation5 + $0x478] ss:$28 sps:$4 sm:$0xff]  }
 0x702   :  { %4215 = vmatpush2.bf16.msra.mxu0 %v5834_v25  ;;  %4251 = vmatprep.subr.bf16.mxu1 %v5839_v14  ;;  %v5909_v25 = vld [vmem:[#allocation5 + $0x600] ss:$28 sps:$4 sm:$0xff]  }
 0x703   :  { %4216 = vmatprep.subr.bf16.mxu0 %v5842_v26  ;;  %v5910_v14 = vld [vmem:[#allocation5 + $0x440] ss:$28 sps:$4 sm:$0xff]   ;;  %v5911_v26 = vld [vmem:[#allocation5 + $0x5c8] ss:$28 sps:$4 sm:$0xff]  }
 0x705   :  { %4252 = vmatpush1.bf16.msra.mxu1 %v5837_v28  ;;  %v5912_v28 = vld [vmem:[#allocation5 + $0x408] ss:$28 sps:$4 sm:$0xff]  }
 0x706   :  { %4217 = vmatpush2.bf16.msra.mxu0 %v5840_v30  ;;  %4253 = vmatprep.subr.bf16.mxu1 %v5845_v31  ;;  %v5913_v30 = vld [vmem:[#allocation5 + $0x590] ss:$28 sps:$4 sm:$0xff]  }
 0x707   :  { %4218 = vmatprep.subr.bf16.mxu0 %v5848_v33  ;;  %v5914_v31 = vld [vmem:[#allocation5 + $0x3d0] ss:$28 sps:$4 sm:$0xff]   ;;  %v5915_v33 = vld [vmem:[#allocation5 + $0x558] ss:$28 sps:$4 sm:$0xff]  }
 0x709   :  { %4254 = vmatpush1.bf16.msra.mxu1 %v5843_v34  ;;  %v5916_v34 = vld [vmem:[#allocation5 + $0x398] ss:$28 sps:$4 sm:$0xff]  }
 0x70a   :  { %4219 = vmatpush2.bf16.msra.mxu0 %v5846_v36  ;;  %4255 = vmatprep.subr.bf16.mxu1 %v5851_v37  ;;  %v6693_v37 = vld [vmem:[%s6728_s10] sm:$0xff]  ;;  %s6093_s10 = smov [#allocation8]  }
 0x70b   :  { %4220 = vmatprep.subr.bf16.mxu0 %v5854_v38  ;;  %v2840_v38 = vrot.slane %v6693_v37, %v6421_v53  ;;  %s4479_s16 = sshll.u32 %s6093_s10, 4  ;;  %s4480_s16 = int_to_ptr.vmem [resolvable:$true] %s4479_s16 }
 0x70c   :  { %s6015_s17 = scalar_lea.vmem %s4480_s16, 256  ;;  %p6020_p11 = scmp.lt.s32.totalorder %s4480_s16, %s4480_s16 }
 0x70d   :  { %4256 = vmatpush2.bf16.msra.mxu1 %v5849_v39  ;;  %v2844_v39 = vrot.slane %v6693_v37, %v6427_v55  ;;  %p6016_p10 = scmp.ne.s32.totalorder %s4480_s16, %s6015_s17  ;;  %p6021_p12 = scmp.lt.s32.totalorder %s6015_s17, %s6015_s17 }
 0x70e   :  { %4221 = vmatpush2.bf16.msra.mxu0 %v5852_v41  ;;  %4257 = vmatprep.subr.bf16.mxu1 %v5857_v42 }
 0x70f   :  { %4222 = vmatprep.subr.bf16.mxu0 %v5860_v43  ;;  %p6022_p13 = por %p6021_p12, %p6020_p11 }
 0x711   :  { %4258 = vmatpush2.bf16.msra.mxu1 %v5855_v44  ;;  %p6023_p0 = pnand %p6022_p13, %p6016_p10 }
 0x712   :  { %4223 = vmatpush2.bf16.msra.mxu0 %v5858_v45  ;;  %4259 = vmatprep.subr.bf16.mxu1 %v5863_v47 }
 0x713   :  { %4224 = vmatprep.subr.bf16.mxu0 %v5866_v50 }
 0x715   :  { %4260 = vmatpush2.bf16.msra.mxu1 %v5861_v52 }
 0x716   :  { %4225 = vmatpush2.bf16.msra.mxu0 %v5864_v54  ;;  %4261 = vmatprep.subr.bf16.mxu1 %v5869_v11 }
 0x717   :  { %4226 = vmatprep.subr.bf16.mxu0 %v5872_v56 }
 0x719   :  { %4262 = vmatpush2.bf16.msra.mxu1 %v5867_v57 }
 0x71a   :  { %4227 = vmatpush2.bf16.msra.mxu0 %v5870_v58  ;;  %4263 = vmatprep.subr.bf16.mxu1 %v5875_v4 }
 0x71b   :  { %5120 = vmatprep.subr.bf16.mxu0 %v5876_v49 }
 0x71d   :  { %4229 = vmatmul.mubr.bf16.vlgmr.msra.gmra.mxu0 %v6666_v29  ;;  %4264 = vmatpush2.bf16.msra.mxu1 %v5873_v61 }
 0x71e   :  { %5121 = vmatpush3.bf16.msra.mxu0 %v5877_v62  ;;  %4314 = vmatprep.mubr.bf16.mxu0 %v6664_v27  ;;  %v5894_v27 = vld [vmem:[#allocation5 + $0x280] ss:$28 sps:$4 sm:$0xff]  }
 0x71f   :  { %4265 = vmatprep.subr.bf16.mxu1 %v5880_v63  ;;  %5122 = vmatprep.subr.bf16.mxu0 %v5881_v35 }
 0x721   :  { %4266 = vmatpush2.bf16.msra.mxu1 %v5878_v0 }
 0x722   :  { %5123 = vmatpush3.bf16.msra.mxu0 %v5882_v1  ;;  %4267 = vmatprep.subr.bf16.mxu1 %v5885_v2 }
 0x723   :  { %5124 = vmatprep.subr.bf16.mxu0 %v5886_v3 }
 0x725   :  { %4268 = vmatpush2.bf16.msra.mxu1 %v5883_v5 }
 0x726   :  { %5125 = vmatpush3.bf16.msra.mxu0 %v5887_v6  ;;  %4269 = vmatprep.subr.bf16.mxu1 %v5890_v7 }
 0x727   :  { %5126 = vmatprep.subr.bf16.mxu0 %v5891_v46 }
 0x729   :  { %4270 = vmatpush2.bf16.msra.mxu1 %v5888_v8 }
 0x72a   :  { %5127 = vmatpush3.bf16.msra.mxu0 %v5892_v9  ;;  %5142 = vmatprep.subr.bf16.mxu1 %v5893_v10  ;;  %v2848_v10 = vrot.slane %v6693_v37, %v6441_v51 }
 0x72b   :  { %5128 = vmatprep.subr.bf16.mxu0 %v5894_v27  ;;  %v2852_v27 = vrot.slane %v6693_v37, %v6447_v32 }
 0x72c   :  { %4272 = vmatmul.mubr.bf16.vlgmr.msra.gmra.mxu1 %v6675_v60 }
 0x72d   :  { %5143 = vmatpush3.bf16.msra.mxu1 %v5895_v12  ;;  %4355 = vmatprep.mubr.bf16.mxu1 %v6673_v59  ;;  %v5908_v59 = vld [vmem:[#allocation5 + $0x18] ss:$28 sps:$4 sm:$0xff]  }
 0x72e   :  { %5129 = vmatpush3.bf16.msra.mxu0 %v5896_v13  ;;  %5144 = vmatprep.subr.bf16.mxu1 %v5897_v15 }
 0x72f   :  { %5130 = vmatprep.subr.bf16.mxu0 %v5898_v16 }
 0x731   :  { %5145 = vmatpush3.bf16.msra.mxu1 %v5899_v17 }
 0x732   :  { %5131 = vmatpush3.bf16.msra.mxu0 %v5900_v18  ;;  %5146 = vmatprep.subr.bf16.mxu1 %v5901_v19 }
 0x733   :  { %5132 = vmatprep.subr.bf16.mxu0 %v5902_v20 }
 0x735   :  { %5147 = vmatpush3.bf16.msra.mxu1 %v5903_v21 }
 0x736   :  { %5133 = vmatpush3.bf16.msra.mxu0 %v5904_v40  ;;  %5148 = vmatprep.subr.bf16.mxu1 %v5905_v22 }
 0x737   :  { %5134 = vmatprep.subr.bf16.mxu0 %v5906_v23 }
 0x739   :  { %5149 = vmatpush3.bf16.msra.mxu1 %v5907_v24 }
 0x73a   :  { %5135 = vmatpush3.bf16.msra.mxu0 %v5908_v59  ;;  %5150 = vmatprep.subr.bf16.mxu1 %v5909_v25 }
 0x73d   :  { %4315 = vmatmul.mubr.bf16.vlgmr.msra.gmra.mxu0 %v6666_v29  ;;  %5151 = vmatpush3.bf16.msra.mxu1 %v5910_v14 }
 0x73e   :  { %5152 = vmatprep.subr.bf16.mxu1 %v5911_v26 }
 0x741   :  { %5153 = vmatpush3.bf16.msra.mxu1 %v5912_v28 }
 0x742   :  { %5154 = vmatprep.subr.bf16.mxu1 %v5913_v30 }
 0x745   :  { %5155 = vmatpush3.bf16.msra.mxu1 %v5914_v31 }
 0x746   :  { %5156 = vmatprep.subr.bf16.mxu1 %v5915_v33 }
 0x749   :  { %5157 = vmatpush3.bf16.msra.mxu1 %v5916_v34 }
 0x74c   :  { %4356 = vmatmul.mubr.bf16.vlgmr.msra.gmra.mxu1 %v6675_v60 }
 0x75c   :  { %v4058_v36 = vpop.f32.mrf.mxu0 }
 0x75d   :  { %v4059_v42 = vadd.f32 %v4058_v36, %v2840_v38 }
 0x75e   :  { %v4060_v29 = vpop.f32.mrf.mxu0 }
 0x75f   :  { %v4061_v44 = vadd.f32 %v4060_v29, %v2844_v39 }
 0x760   :  { %v4062_v41 = vpop.f32.mrf.mxu0 }
 0x761   :  { %v4063_v50 = vadd.f32 %v4062_v41, %v2840_v38 }
 0x762   :  { %v4064_v47 = vpop.f32.mrf.mxu0 }
 0x763   :  { %v4065_v56 = vadd.f32 %v4064_v47, %v2844_v39 }
 0x76c   :  { %v4101_v43 = vpop.f32.mrf.mxu1 }
 0x76d   :  { %v4102_v45 = vadd.f32 %v4101_v43, %v4059_v42 }
 0x76e   :  { %v4103_v60 = vpop.f32.mrf.mxu1 }
 0x76f   :  { %v4994_v52 = vmul.f32 -1.442695, %v4102_v45  ;;  %v4104_v54 = vadd.f32 %v4103_v60, %v4061_v44 }
 0x770   :  { %v4105_v11 = vpop.f32.mrf.mxu1 }
 0x771   :  { %5917 = vpow2.f32 %v4994_v52  ;;  %v4995_v57 = vmul.f32 -1.442695, %v4104_v54  ;;  %v4106_v58 = vadd.f32 %v4105_v11, %v4063_v50 }
 0x772   :  { %v4107_v4 = vpop.f32.mrf.mxu1 }
 0x773   :  { %5919 = vpow2.f32 %v4995_v57  ;;  %v5001_v53 = vmul.f32 -1.442695, %v4106_v58  ;;  %v4108_v49 = vadd.f32 %v4107_v4, %v4065_v56 }
 0x775   :  { %5921 = vpow2.f32 %v5001_v53  ;;  %v5002_v55 = vmul.f32 -1.442695, %v4108_v49 }
 0x777   :  { %5923 = vpow2.f32 %v5002_v55 }
 0x77e   :  { %v5918_v61 = vpop.eup %5917 }
 0x77f   :  { %v4406_v62 = vadd.f32 1.0, %v5918_v61 }
 0x780   :  { %v5920_v63 = vpop.eup %5919 }
 0x781   :  { %5925 = vrcp.f32 %v4406_v62  ;;  %v4407_v35 = vadd.f32 1.0, %v5920_v63 }
 0x782   :  { %v5922_v0 = vpop.eup %5921 }
 0x783   :  { %5927 = vrcp.f32 %v4407_v35  ;;  %v4413_v1 = vadd.f32 1.0, %v5922_v0 }
 0x784   :  { %v5924_v2 = vpop.eup %5923 }
 0x785   :  { %5929 = vrcp.f32 %v4413_v1  ;;  %v4414_v3 = vadd.f32 1.0, %v5924_v2 }
 0x787   :  { %5931 = vrcp.f32 %v4414_v3 }
 0x78e   :  { %v5926_v5 = vpop.eup %5925 }
 0x78f   :  { %4448 = vst [vmem:[#allocation7] sm:$0xff] %v5926_v5 }
 0x790   :  { %v5928_v6 = vpop.eup %5927 }
 0x791   :  { %4449 = vst [vmem:[#allocation7 + $0x8] sm:$0xff] %v5928_v6 }
 0x792   :  { %v5930_v7 = vpop.eup %5929 }
 0x793   :  { %4455 = vst [vmem:[#allocation7 + $0x38] sm:$0xff] %v5930_v7 }
 0x794   :  { %v5932_v46 = vpop.eup %5931 }
 0x795   :  { %4456 = vst [vmem:[#allocation7 + $0x40] sm:$0xff] %v5932_v46 }
 0x79c   :  { %v4144_v8 = vpop.f32.mrf.mxu0 }
 0x79d   :  { %v4145_v13 = vadd.f32 %v4144_v8, %v2848_v10 }
 0x79e   :  { %v4146_v9 = vpop.f32.mrf.mxu0 }
 0x79f   :  { %v4147_v16 = vadd.f32 %v4146_v9, %v2852_v27 }
 0x7a0   :  { %v4148_v12 = vpop.f32.mrf.mxu0 }
 0x7a1   :  { %v4149_v20 = vadd.f32 %v4148_v12, %v2848_v10 }
 0x7a2   :  { %v4150_v18 = vpop.f32.mrf.mxu0 }
 0x7a3   :  { %v4151_v23 = vadd.f32 %v4150_v18, %v2852_v27 }
 0x7ac   :  { %v4187_v15 = vpop.f32.mrf.mxu1 }
 0x7ad   :  { %v4188_v17 = vadd.f32 %v4187_v15, %v4145_v13 }
 0x7ae   :  { %v4189_v19 = vpop.f32.mrf.mxu1 }
 0x7af   :  { %v4996_v21 = vmul.f32 -1.442695, %v4188_v17  ;;  %v4190_v40 = vadd.f32 %v4189_v19, %v4147_v16 }
 0x7b0   :  { %v4191_v22 = vpop.f32.mrf.mxu1 }
 0x7b1   :  { %5933 = vpow2.f32 %v4996_v21  ;;  %v4997_v24 = vmul.f32 -1.442695, %v4190_v40  ;;  %v4192_v59 = vadd.f32 %v4191_v22, %v4149_v20 }
 0x7b2   :  { %v4193_v25 = vpop.f32.mrf.mxu1 }
 0x7b3   :  { %5935 = vpow2.f32 %v4997_v24  ;;  %v5003_v51 = vmul.f32 -1.442695, %v4192_v59  ;;  %v4194_v14 = vadd.f32 %v4193_v25, %v4151_v23 }
 0x7b5   :  { %5937 = vpow2.f32 %v5003_v51  ;;  %v5004_v32 = vmul.f32 -1.442695, %v4194_v14 }
 0x7b7   :  { %5939 = vpow2.f32 %v5004_v32 }
 0x7b8   :  { %6026 = shalt.err (!%p6023_p0)
}
 0x7b9   :  { %s6094_s18 = smov 128   ;;  %s6095_s19 = smov 8  }
 0x7ba   :  { %4485 = dma.vmem_to_hbm [thread:$0]  %s4480_s16, 256, %s6730_s12, [#allocation9], %s6094_s18, %s6094_s18, %s6095_s19  }
 0x7bb   :  { %s6096_s4 = smov [#allocation10]  }
 0x7bc   :  { %s4491_s5 = sshll.u32 %s6096_s4, 4  ;;  %s4492_s5 = int_to_ptr.vmem [resolvable:$true] %s4491_s5 }
 0x7bd   :  { %s6035_s6 = scalar_lea.vmem %s4492_s5, 256  ;;  %p6040_p2 = scmp.lt.s32.totalorder %s4492_s5, %s4492_s5 }
 0x7be   :  { %p6036_p1 = scmp.ne.s32.totalorder %s4492_s5, %s6035_s6  ;;  %p6041_p3 = scmp.lt.s32.totalorder %s6035_s6, %s6035_s6 }
 0x7c0   :  { %p6042_p4 = por %p6041_p3, %p6040_p2 }
 0x7c2   :  { %p6043_p5 = pnand %p6042_p4, %p6036_p1 }
 0x7c4   :  { %6046 = shalt.err (!%p6043_p5)
}
 0x7c5   :  { %4497 = dma.vmem_to_hbm [thread:$0]  %s4492_s5, 256, %s6731_s13, [#allocation9], %s6094_s18, %s6094_s18, %s6095_s19   ;;  %v5934_v26 = vpop.eup %5933  ;;  %v2855_v44 = vsub.s32 4, %v6418_v48  ;;  %v2859_v45 = vsub.s32 5, %v6418_v48  ;;  %v2863_v15 = vsub.s32 6, %v6418_v48 }
 0x7c6   :  { %v4408_v28 = vadd.f32 1.0, %v5934_v26  ;;  %v5936_v30 = vpop.eup %5935  ;;  %s6097_s12 = smov [#allocation7]  }
 0x7c7   :  { %v4409_v31 = vadd.f32 1.0, %v5936_v30  ;;  %v5938_v33 = vpop.eup %5937  ;;  %v2856_v60 = vrot.slane %v6693_v37, %v2855_v44  ;;  %v2860_v50 = vrot.slane %v6693_v37, %v2859_v45  ;;  %v2864_v17 = vrot.slane %v6693_v37, %v2863_v15  ;;  %s4467_s13 = sshll.u32 %s6097_s12, 4  ;;  %s4468_s13 = int_to_ptr.vmem [resolvable:$true] %s4467_s13 }
 0x7c8   :  { %5941 = vrcp.f32 %v4408_v28  ;;  %v4415_v34 = vadd.f32 1.0, %v5938_v33  ;;  %v5940_v36 = vpop.eup %5939  ;;  %s6055_s9 = scalar_lea.vmem %s4468_s13, 1792  ;;  %p6060_p7 = scmp.lt.s32.totalorder %s4468_s13, %s4468_s13 }
 0x7c9   :  { %5943 = vrcp.f32 %v4409_v31  ;;  %v4416_v29 = vadd.f32 1.0, %v5940_v36  ;;  %p6056_p6 = scmp.ne.s32.totalorder %s4468_s13, %s6055_s9  ;;  %p6061_p8 = scmp.lt.s32.totalorder %s6055_s9, %s6055_s9 }
 0x7ca   :  { %5945 = vrcp.f32 %v4415_v34 }
 0x7cb   :  { %5947 = vrcp.f32 %v4416_v29  ;;  %p6062_p9 = por %p6061_p8, %p6060_p7 }
 0x7cd   :  { %p6063_p10 = pnand %p6062_p9, %p6056_p6 }
 0x7d5   :  { %v5942_v38 = vpop.eup %5941 }
 0x7d6   :  { %4450 = vst [vmem:[#allocation7 + $0x10] sm:$0xff] %v5942_v38  ;;  %v5944_v39 = vpop.eup %5943 }
 0x7d7   :  { %4451 = vst [vmem:[#allocation7 + $0x18] sm:$0xff] %v5944_v39  ;;  %v5946_v41 = vpop.eup %5945 }
 0x7d8   :  { %4457 = vst [vmem:[#allocation7 + $0x48] sm:$0xff] %v5946_v41  ;;  %v5948_v42 = vpop.eup %5947 }
 0x7d9   :  { %4458 = vst [vmem:[#allocation7 + $0x50] sm:$0xff] %v5948_v42 }
 0x7dd   :  { %v4230_v43 = vpop.f32.mrf.mxu0 }
 0x7de   :  { %v4231_v54 = vadd.f32 %v4230_v43, %v2856_v60 }
 0x7df   :  { %v4232_v47 = vpop.f32.mrf.mxu0 }
 0x7e0   :  { %v4233_v56 = vadd.f32 %v4232_v47, %v2860_v50 }
 0x7e1   :  { %v4234_v52 = vpop.f32.mrf.mxu0 }
 0x7e2   :  { %v4235_v53 = vadd.f32 %v4234_v52, %v2856_v60 }
 0x7e3   :  { %v4236_v58 = vpop.f32.mrf.mxu0 }
 0x7e4   :  { %v4237_v62 = vadd.f32 %v4236_v58, %v2860_v50 }
 0x7ec   :  { %v4273_v11 = vpop.f32.mrf.mxu1 }
 0x7ed   :  { %v4274_v57 = vadd.f32 %v4273_v11, %v4231_v54 }
 0x7ee   :  { %v4275_v4 = vpop.f32.mrf.mxu1 }
 0x7ef   :  { %v4998_v49 = vmul.f32 -1.442695, %v4274_v57  ;;  %v4276_v55 = vadd.f32 %v4275_v4, %v4233_v56 }
 0x7f0   :  { %v4277_v61 = vpop.f32.mrf.mxu1 }
 0x7f1   :  { %5949 = vpow2.f32 %v4998_v49  ;;  %v4999_v63 = vmul.f32 -1.442695, %v4276_v55  ;;  %v4278_v35 = vadd.f32 %v4277_v61, %v4235_v53 }
 0x7f2   :  { %v4279_v0 = vpop.f32.mrf.mxu1 }
 0x7f3   :  { %5951 = vpow2.f32 %v4999_v63  ;;  %v5005_v1 = vmul.f32 -1.442695, %v4278_v35  ;;  %v4280_v2 = vadd.f32 %v4279_v0, %v4237_v62 }
 0x7f5   :  { %5953 = vpow2.f32 %v5005_v1  ;;  %v5006_v3 = vmul.f32 -1.442695, %v4280_v2 }
 0x7f7   :  { %5955 = vpow2.f32 %v5006_v3 }
 0x7fd   :  { %v5136_v46 = vpop.f32.mrf.mxu0 }
 0x7fe   :  { %v5950_v5 = vpop.eup %5949 }
 0x7ff   :  { %v4410_v6 = vadd.f32 1.0, %v5950_v5  ;;  %v5137_v12 = vpop.f32.mrf.mxu0 }
 0x800   :  { %v5952_v7 = vpop.eup %5951  ;;  %v5138_v18 = vadd.f32 %v5137_v12, %v5136_v46 }
 0x801   :  { %5957 = vrcp.f32 %v4410_v6  ;;  %v4411_v8 = vadd.f32 1.0, %v5952_v7  ;;  %v5139_v16 = vpop.f32.mrf.mxu0 }
 0x802   :  { %v5954_v9 = vpop.eup %5953  ;;  %v4317_v22 = vadd.f32 %v5138_v18, %v2864_v17 }
 0x803   :  { %5959 = vrcp.f32 %v4411_v8  ;;  %v4417_v10 = vadd.f32 1.0, %v5954_v9  ;;  %v5140_v19 = vpop.f32.mrf.mxu0 }
 0x804   :  { %v5956_v27 = vpop.eup %5955  ;;  %v5141_v23 = vadd.f32 %v5140_v19, %v5139_v16 }
 0x805   :  { %5961 = vrcp.f32 %v4417_v10  ;;  %v4418_v13 = vadd.f32 1.0, %v5956_v27 }
 0x806   :  { %v4320_v48 = vadd.f32 %v5141_v23, %v2864_v17 }
 0x807   :  { %5963 = vrcp.f32 %v4418_v13 }
 0x80c   :  { %v5158_v20 = vpop.f32.mrf.mxu1 }
 0x80e   :  { %v5958_v21 = vpop.eup %5957  ;;  %v5159_v40 = vpop.f32.mrf.mxu1 }
 0x80f   :  { %4452 = vst [vmem:[#allocation7 + $0x20] sm:$0xff] %v5958_v21  ;;  %v5160_v24 = vadd.f32 %v5159_v40, %v5158_v20 }
 0x810   :  { %v5960_v59 = vpop.eup %5959  ;;  %v5161_v25 = vpop.f32.mrf.mxu1 }
 0x811   :  { %4453 = vst [vmem:[#allocation7 + $0x28] sm:$0xff] %v5960_v59  ;;  %v4358_v51 = vadd.f32 %v5160_v24, %v4317_v22 }
 0x812   :  { %v5962_v14 = vpop.eup %5961  ;;  %v5162_v32 = vpop.f32.mrf.mxu1 }
 0x813   :  { %4459 = vst [vmem:[#allocation7 + $0x58] sm:$0xff] %v5962_v14  ;;  %v5000_v26 = vmul.f32 -1.442695, %v4358_v51  ;;  %v5163_v28 = vadd.f32 %v5162_v32, %v5161_v25 }
 0x814   :  { %v5964_v37 = vpop.eup %5963 }
 0x815   :  { %4460 = vst [vmem:[#allocation7 + $0x60] sm:$0xff] %v5964_v37  ;;  %5965 = vpow2.f32 %v5000_v26  ;;  %v4361_v30 = vadd.f32 %v5163_v28, %v4320_v48 }
 0x817   :  { %v5007_v31 = vmul.f32 -1.442695, %v4361_v30 }
 0x819   :  { %5967 = vpow2.f32 %v5007_v31 }
 0x822   :  { %v5966_v33 = vpop.eup %5965 }
 0x823   :  { %v4412_v34 = vadd.f32 1.0, %v5966_v33 }
 0x825   :  { %5969 = vrcp.f32 %v4412_v34 }
 0x826   :  { %v5968_v36 = vpop.eup %5967 }
 0x827   :  { %v4419_v29 = vadd.f32 1.0, %v5968_v36 }
 0x829   :  { %5971 = vrcp.f32 %v4419_v29 }
 0x832   :  { %v5970_v38 = vpop.eup %5969 }
 0x833   :  { %4454 = vst [vmem:[#allocation7 + $0x30] sm:$0xff] %v5970_v38 }
 0x836   :  { %v5972_v39 = vpop.eup %5971 }
 0x837   :  { %4461 = vst [vmem:[#allocation7 + $0x68] sm:$0xff] %v5972_v39 }
 0x838   :  { %6066 = shalt.err (!%p6063_p10)
}
 0x839   :  { %s6098_s22 = smov 896   ;;  %s6099_s23 = smov 56  }
 0x83a   :  { %4473 = dma.vmem_to_hbm [thread:$0]  %s4468_s13, 1792, %s6729_s11, [#allocation4], %s6098_s22, %s6098_s22, %s6099_s23  }
 0x83b   :  { %6079 = dma.done.wait [#allocation4], 1792  }
 0x83c   :  { %6080 = vsyncadd [#allocation4], 4294965504 }
 0x83d   :  { %6081 = dma.done.wait [#allocation9], 512  }
 0x83e   :  { %6082 = vsyncadd [#allocation9], 4294966784 }
 0x83f   :  { %4507 = vsyncpa [#allocation3], 1 }
 0x840   :  { %4508 = vsyncpa [#allocation6], 1 }
 0x841   :  { %4509 = vsyncpa [#allocation4], 1 }
 0x842   :  { %4510 = vsyncpa [#allocation9], 1 }

</bundles_post_ra>
